<compile_context>
chip_gen: v5e
topology: v5e:2x2
jax: 0.10.0
libtpu: 0.0.40
codegen_flags: <defaults>
</compile_context>

<pallas_src>
import functools

import jax
import jax.numpy as jnp
from jax.experimental import pallas as pl
from jax.experimental.pallas import tpu as pltpu

EPS = 1e-5


def _round_up(x, m):
    return (x + m - 1) // m * m


def _choose_row_tile(oh, ow, wp, cin, kh, ocs, kp, csize, budget_bytes=8 << 20):
    """Pick the largest output-row tile TH that
         * divides OH,
         * is a multiple of (KH-1) so the halo BlockSpec lands on block boundaries,
         * keeps the (OCs, TH*OW) output block lane-dense (TH*OW % 128 == 0, or TH == OH;
           multiples of 256 fall out naturally and keep the v6e/v7x MXU N-dim full),
         * fits an honest double-buffered VMEM budget (x window + weights + patch scratch
           + output blocks + f32 temporaries), targeted well under v5e's 16 MiB scoped
           default so it is safe on every generation (v5e/v6e/v7x).
       Returns (TH, vmem_estimate_bytes)."""
    hb = kh - 1
    cands = [t for t in range(1, oh + 1)
             if oh % t == 0 and t % hb == 0 and ((t * ow) % 128 == 0 or t == oh)]
    if not cands:
        # TODO(synk): fall back to a full-image-resident x BlockSpec when OH is odd or
        # too small for an aligned halo tiling.
        raise ValueError(f"no valid row tile for oh={oh}, ow={ow}, kh={kh}")

    def vmem_need(t):
        rows = t * ow
        need = 2 * (t + hb) * wp * cin * csize      # x main + halo blocks, double-buffered
        need += 2 * ocs * kp * csize                # weights (double-buffered by Pallas)
        need += 2 * ocs * rows * 4                  # pass-2 output block, double-buffered
        need += 8 * ocs * 4                         # stats blocks + scale/shift
        need += rows * kp * csize                   # im2col patch scratch
        need += 2 * ocs * rows * 4 + rows * kp * 4  # f32 acc / epilogue / tap temporaries
        return need + (1 << 20)                     # slop for compiler-internal scratch

    fitting = [t for t in cands if vmem_need(t) <= budget_bytes]
    th = max(fitting) if fitting else min(cands)
    return th, vmem_need(th)


def _conv_tile(x_main_ref, x_halo_ref, w_ref, patch_ref, *, th, ow, cin, kh, kw):
    """Fused-im2col conv for one output-row tile.

    x_main_ref: (1, TH, Wp, Cin)     padded-NHWC rows [r*TH, r*TH+TH).
    x_halo_ref: (1, KH-1, Wp, Cin)   halo rows [r*TH+TH, r*TH+TH+KH-1).
    w_ref:      (OCs, KP)            zero-padded weights, row-major (oc; i, j, c).
    patch_ref:  (TH*OW, KP)          VMEM im2col scratch (compute dtype).

    Builds the patch matrix with KH*KW shifted-slice copies, then runs ONE MXU matmul
    over the full K = KH*KW*Cin contraction.  The dot is rhs-transposed (attention-style
    q@k^T dimension numbers) so the f32 result is (OCs, TH*OW): channels on sublanes,
    spatial lane-dense -- no XLU transpose needed before the store.
    """
    # Zero the scratch so its K-padding lanes contribute exact zeros to the matmul.
    patch_ref[...] = jnp.zeros_like(patch_ref)
    for i in range(kh):                    # static unroll: KH*KW shifted-slice copies
        for j in range(kw):
            c0 = (i * kw + j) * cin
            nmain = th - i                 # rows of this tap supplied by the main block
            if nmain > 0:
                xs = x_main_ref[0, i:, j:j + ow, :].reshape(nmain * ow, cin)
                patch_ref[:nmain * ow, c0:c0 + cin] = xs
            if i > 0:                      # remaining rows come from the halo block
                hs = x_halo_ref[0, :i, j:j + ow, :].reshape(i * ow, cin)
                patch_ref[nmain * ow:, c0:c0 + cin] = hs
    return jax.lax.dot_general(
        w_ref[...], patch_ref[...],
        dimension_numbers=(((1,), (1,)), ((), ())),
        preferred_element_type=jnp.float32)            # (OCs, TH*OW) f32


def _stats_kernel(x_main_ref, x_halo_ref, w_ref, sum_ref, sumsq_ref, patch_ref,
                  *, th, ow, cin, ocs, kh, kw):
    """Pass 1: per-sample channel sum / sum-of-squares of the conv output, accumulated
    across row tiles (row-tile axis 'arbitrary'; the output block stays resident)."""
    r = pl.program_id(1)
    acc = _conv_tile(x_main_ref, x_halo_ref, w_ref, patch_ref,
                     th=th, ow=ow, cin=cin, kh=kh, kw=kw)           # (OCs, rows) f32
    psum = jnp.sum(acc, axis=1, keepdims=True).reshape(1, ocs, 1)
    psumsq = jnp.sum(acc * acc, axis=1, keepdims=True).reshape(1, ocs, 1)

    @pl.when(r == 0)
    def _():
        sum_ref[...] = psum
        sumsq_ref[...] = psumsq

    @pl.when(r != 0)
    def _():
        sum_ref[...] += psum
        sumsq_ref[...] += psumsq


def _norm_kernel(x_main_ref, x_halo_ref, w_ref, scale_ref, shift_ref, o_ref, patch_ref,
                 *, th, ow, cin, ocs, kh, kw):
    """Pass 2: recompute the conv tile, apply the folded BN affine (y*scale + shift) and
    ReLU, and store the channels-major (OCs, TH*OW) tile (only real channels hit HBM)."""
    rows = th * ow
    acc = _conv_tile(x_main_ref, x_halo_ref, w_ref, patch_ref,
                     th=th, ow=ow, cin=cin, kh=kh, kw=kw)           # (OCs, rows) f32
    y = jnp.maximum(acc * scale_ref[...] + shift_ref[...], 0.0)     # scale/shift: (OCs, 1)
    o_ref[...] = y.reshape(1, ocs, rows).astype(o_ref.dtype)


@functools.partial(jax.jit, static_argnames=("padding", "compute_dtype"))
def simple_conv2d(x, weight, bias, gamma, beta, padding=1, compute_dtype=jnp.bfloat16):
    """x: (N, Cin, H, W) f32.  weight: (OC, Cin, KH, KW).  Returns (N, OC, OH, OW) f32.

    Conv2d(kernel_size=3, padding=1, stride=1) -> BatchNorm2d(train-mode batch stats) ->
    ReLU.  The conv bias is exactly cancelled by the BN batch-mean subtraction so it is
    dropped; gamma is folded into 1/std, making the epilogue one FMA + max per element.
    """
    del bias  # per-channel constant cancelled exactly by the BN batch-mean subtraction
    n, cin, h, w = x.shape
    oc, _, kh, kw = weight.shape
    assert kh >= 2, "TODO(synk): 1x1 kernels need no halo input; not wired up"
    oh = h + 2 * padding - kh + 1
    ow = w + 2 * padding - kw + 1
    wp = w + 2 * padding
    hb = kh - 1

    ktot = kh * kw * cin
    kp = _round_up(ktot, 128)     # lane-exact patch scratch; padded K rows are zero
    ocs = _round_up(oc, 8)        # channel (sublane) padding actually written back
    csize = jnp.dtype(compute_dtype).itemsize

    th, vmem_need = _choose_row_tile(oh, ow, wp, cin, kh, ocs, kp, csize)
    rt = oh // th
    rows = th * ow
    grid = (n, rt)
    # Raise the scoped-VMEM limit only when the honest estimate exceeds the default.
    vmem_limit = None if vmem_need < (16 << 20) else int(vmem_need * 1.25)

    # NCHW -> padded NHWC (one fused XLA pad+transpose pass), cast to the MXU dtype.
    xp = jnp.pad(x.transpose(0, 2, 3, 1),
                 ((0, 0), (padding, padding), (padding, padding), (0, 0))
                 ).astype(compute_dtype)
    # (OC, Cin, KH, KW) -> (OCs, KH*KW*Cin) zero-padded to (OCs, KP); column order matches
    # the patch-column order (i, j, c) used in _conv_tile.
    w_p = jnp.transpose(weight, (0, 2, 3, 1)).reshape(oc, ktot)
    w_p = jnp.pad(w_p, ((0, ocs - oc), (0, kp - ktot))).astype(compute_dtype)

    # x is row-tiled with an explicit halo: a TH-row main block plus a (KH-1)-row halo
    # block (same array passed twice), so VMEM holds only TH+KH-1 image rows per buffer.
    x_main_spec = pl.BlockSpec((1, th, wp, cin), lambda b, r: (b, r, 0, 0))
    x_halo_spec = pl.BlockSpec((1, hb, wp, cin),
                               lambda b, r: (b, (r + 1) * (th // hb), 0, 0))
    w_spec = pl.BlockSpec((ocs, kp), lambda b, r: (0, 0))

    static = dict(th=th, ow=ow, cin=cin, ocs=ocs, kh=kh, kw=kw)
    patch_scratch = pltpu.VMEM((rows, kp), compute_dtype)

    # ---- Pass 1: BN batch statistics (per-channel sum / sum-of-squares, f32) ----------
    sums, sumsqs = pl.pallas_call(
        functools.partial(_stats_kernel, **static),
        out_shape=(jax.ShapeDtypeStruct((n, ocs, 1), jnp.float32),
                   jax.ShapeDtypeStruct((n, ocs, 1), jnp.float32)),
        grid=grid,
        in_specs=[x_main_spec, x_halo_spec, w_spec],
        out_specs=(pl.BlockSpec((1, ocs, 1), lambda b, r: (b, 0, 0)),
                   pl.BlockSpec((1, ocs, 1), lambda b, r: (b, 0, 0))),
        scratch_shapes=[patch_scratch],
        compiler_params=pltpu.CompilerParams(
            dimension_semantics=("parallel", "arbitrary"),
            vmem_limit_bytes=vmem_limit),
    )(xp, xp, w_p)

    # Tiny per-channel reduction + BN folding in plain JAX (f32).
    m = n * oh * ow
    tot = jnp.sum(sums[:, :oc, 0], axis=0)
    totsq = jnp.sum(sumsqs[:, :oc, 0], axis=0)
    mean = tot / m
    var = jnp.maximum(totsq / m - mean * mean, 0.0)   # biased, train-mode batch variance
    scale = gamma * jax.lax.rsqrt(var + EPS)          # gamma folded into 1/std
    shift = beta - mean * scale
    scale_p = jnp.pad(scale, (0, ocs - oc)).reshape(ocs, 1).astype(jnp.float32)
    shift_p = jnp.pad(shift, (0, ocs - oc)).reshape(ocs, 1).astype(jnp.float32)
    ss_spec = pl.BlockSpec((ocs, 1), lambda b, r: (0, 0))

    # ---- Pass 2: recompute conv (cheaper than an HBM round trip of y at small OC),
    # folded BN + ReLU, channels-major lane-dense stores. -------------------------------
    out = pl.pallas_call(
        functools.partial(_norm_kernel, **static),
        out_shape=jax.ShapeDtypeStruct((n, ocs, oh * ow), jnp.float32),
        grid=grid,
        in_specs=[x_main_spec, x_halo_spec, w_spec, ss_spec, ss_spec],
        out_specs=pl.BlockSpec((1, ocs, rows), lambda b, r: (b, 0, r)),
        scratch_shapes=[patch_scratch],
        compiler_params=pltpu.CompilerParams(
            dimension_semantics=("parallel", "parallel"),
            vmem_limit_bytes=vmem_limit),
    )(xp, xp, w_p, scale_p, shift_p)

    # Channels already lead; just slice the (at most 7) pad channels and reshape -- no
    # whole-output transpose pass.
    return out[:, :oc, :].reshape(n, oc, oh, ow)


def _reference(x, weight, bias, gamma, beta, padding=1):
    # Plain-JAX reference of Conv2d + BatchNorm2d(training batch stats) + ReLU, NCHW.
    y = jax.lax.conv_general_dilated(
        x, weight, window_strides=(1, 1), padding=[(padding, padding)] * 2,
        dimension_numbers=("NCHW", "OIHW", "NCHW"))
    y = y + bias[None, :, None, None]
    mean = jnp.mean(y, axis=(0, 2, 3), keepdims=True)
    var = jnp.mean((y - mean) ** 2, axis=(0, 2, 3), keepdims=True)
    y = (y - mean) * jax.lax.rsqrt(var + EPS)
    y = y * gamma[None, :, None, None] + beta[None, :, None, None]
    return jnp.maximum(y, 0.0)


if __name__ == "__main__":
    key = jax.random.PRNGKey(0)
    k_x, k_w, k_b = jax.random.split(key, 3)

    N, C, H, W = 2, 4, 16, 16
    OC, KH, KW = 8, 3, 3

    x = jax.random.normal(k_x, (N, C, H, W), dtype=jnp.float32)
    fan_in = C * KH * KW
    weight = jax.random.normal(k_w, (OC, C, KH, KW), dtype=jnp.float32) / jnp.sqrt(fan_in)
    bias = jax.random.normal(k_b, (OC,), dtype=jnp.float32) * 0.1
    gamma = jnp.linspace(0.5, 1.5, OC, dtype=jnp.float32)   # non-trivial affine
    beta = jnp.linspace(-0.2, 0.2, OC, dtype=jnp.float32)

    ref = jax.block_until_ready(_reference(x, weight, bias, gamma, beta, padding=1))

    # Exact-precision path (f32 operands on the MXU): must match the f32 reference tightly.
    out_f32 = jax.block_until_ready(
        simple_conv2d(x, weight, bias, gamma, beta, padding=1,
                      compute_dtype=jnp.float32))
    assert out_f32.shape == (N, OC, H, W), out_f32.shape
    assert jnp.allclose(out_f32, ref, atol=1e-4, rtol=1e-4), \
        float(jnp.max(jnp.abs(out_f32 - ref)))

    # Default fast path (bf16 operands, f32 accumulation + f32 BN statistics): the looser
    # tolerance reflects bf16 input rounding of the 3x3xCin contraction, not a kernel bug.
    out_bf16 = jax.block_until_ready(
        simple_conv2d(x, weight, bias, gamma, beta, padding=1))
    assert out_bf16.shape == (N, OC, H, W), out_bf16.shape
    assert jnp.allclose(out_bf16, ref, atol=5e-2, rtol=5e-2), \
        float(jnp.max(jnp.abs(out_bf16 - ref)))

    print("KERNEL_OK")
</pallas_src>

<mosaic_0001>
module attributes {stable_mosaic.version = 11 : i64} {
  func.func @_stats_kernel(%arg0: i32, %arg1: i32, %arg2: memref<1x16x18x4xf32, #tpu.memory_space<vmem>>, %arg3: memref<1x2x18x4xf32, #tpu.memory_space<vmem>>, %arg4: memref<8x128xf32, #tpu.memory_space<vmem>>, %arg5: memref<1x8x1xf32, #tpu.memory_space<vmem>>, %arg6: memref<1x8x1xf32, #tpu.memory_space<vmem>>, %arg7: memref<256x128xf32, #tpu.memory_space<vmem>>) attributes {dimension_semantics = [#tpu.dimension_semantics<parallel>, #tpu.dimension_semantics<arbitrary>], iteration_bounds = array<i64: 2, 1>, scalar_prefetch = 0 : i64, scratch_operands = 1 : i64, tpu.core_type = #tpu.core_type<tc>, window_params = [{transform_indices = @transform_0, window_bounds = array<i64: 1, 16, 18, 4>}, {transform_indices = @transform_1, window_bounds = array<i64: 1, 2, 18, 4>}, {pipeline_mode = #tpu.pipeline_mode<synchronous>, transform_indices = @transform_2, window_bounds = array<i64: 8, 128>}, {transform_indices = @transform_3, window_bounds = array<i64: 1, 8, 1>}, {transform_indices = @transform_4, window_bounds = array<i64: 1, 8, 1>}]} {
    %cst = arith.constant 0.000000e+00 : f32
    %0 = vector.broadcast %cst : f32 to vector<256x128xf32>
    %c0 = arith.constant 0 : index
    %c0_0 = arith.constant 0 : index
    %1 = vector.load %arg7[%c0, %c0_0] : memref<256x128xf32, #tpu.memory_space<vmem>>, vector<256x128xf32>
    tpu.vector_store %arg7[%c0, %c0_0], %0 {strides = array<i32>} : memref<256x128xf32, #tpu.memory_space<vmem>>, vector<256x128xf32>,
    %c0_1 = arith.constant 0 : index
    %c0_2 = arith.constant 0 : index
    %c0_3 = arith.constant 0 : index
    %c0_4 = arith.constant 0 : index
    %2 = vector.load %arg2[%c0_1, %c0_2, %c0_3, %c0_4] : memref<1x16x18x4xf32, #tpu.memory_space<vmem>>, vector<1x16x16x4xf32>
    %3 = vector.shape_cast %2 : vector<1x16x16x4xf32> to vector<16x16x4xf32>
    %4 = vector.shape_cast %3 : vector<16x16x4xf32> to vector<256x4xf32>
    %c0_5 = arith.constant 0 : index
    %c0_6 = arith.constant 0 : index
    %5 = vector.load %arg7[%c0_5, %c0_6] : memref<256x128xf32, #tpu.memory_space<vmem>>, vector<256x4xf32>
    tpu.vector_store %arg7[%c0_5, %c0_6], %4 {strides = array<i32>} : memref<256x128xf32, #tpu.memory_space<vmem>>, vector<256x4xf32>,
    %c0_7 = arith.constant 0 : index
    %c0_8 = arith.constant 0 : index
    %c1 = arith.constant 1 : index
    %c0_9 = arith.constant 0 : index
    %6 = vector.load %arg2[%c0_7, %c0_8, %c1, %c0_9] : memref<1x16x18x4xf32, #tpu.memory_space<vmem>>, vector<1x16x16x4xf32>
    %7 = vector.shape_cast %6 : vector<1x16x16x4xf32> to vector<16x16x4xf32>
    %8 = vector.shape_cast %7 : vector<16x16x4xf32> to vector<256x4xf32>
    %c0_10 = arith.constant 0 : index
    %c4 = arith.constant 4 : index
    %9 = vector.load %arg7[%c0_10, %c4] : memref<256x128xf32, #tpu.memory_space<vmem>>, vector<256x4xf32>
    tpu.vector_store %arg7[%c0_10, %c4], %8 {strides = array<i32>} : memref<256x128xf32, #tpu.memory_space<vmem>>, vector<256x4xf32>,
    %c0_11 = arith.constant 0 : index
    %c0_12 = arith.constant 0 : index
    %c2 = arith.constant 2 : index
    %c0_13 = arith.constant 0 : index
    %10 = vector.load %arg2[%c0_11, %c0_12, %c2, %c0_13] : memref<1x16x18x4xf32, #tpu.memory_space<vmem>>, vector<1x16x16x4xf32>
    %11 = vector.shape_cast %10 : vector<1x16x16x4xf32> to vector<16x16x4xf32>
    %12 = vector.shape_cast %11 : vector<16x16x4xf32> to vector<256x4xf32>
    %c0_14 = arith.constant 0 : index
    %c8 = arith.constant 8 : index
    %13 = vector.load %arg7[%c0_14, %c8] : memref<256x128xf32, #tpu.memory_space<vmem>>, vector<256x4xf32>
    tpu.vector_store %arg7[%c0_14, %c8], %12 {strides = array<i32>} : memref<256x128xf32, #tpu.memory_space<vmem>>, vector<256x4xf32>,
    %c0_15 = arith.constant 0 : index
    %c1_16 = arith.constant 1 : index
    %c0_17 = arith.constant 0 : index
    %c0_18 = arith.constant 0 : index
    %14 = vector.load %arg2[%c0_15, %c1_16, %c0_17, %c0_18] : memref<1x16x18x4xf32, #tpu.memory_space<vmem>>, vector<1x15x16x4xf32>
    %15 = vector.shape_cast %14 : vector<1x15x16x4xf32> to vector<15x16x4xf32>
    %16 = vector.shape_cast %15 : vector<15x16x4xf32> to vector<240x4xf32>
    %c0_19 = arith.constant 0 : index
    %c12 = arith.constant 12 : index
    %17 = vector.load %arg7[%c0_19, %c12] : memref<256x128xf32, #tpu.memory_space<vmem>>, vector<240x4xf32>
    tpu.vector_store %arg7[%c0_19, %c12], %16 {strides = array<i32>} : memref<256x128xf32, #tpu.memory_space<vmem>>, vector<240x4xf32>,
    %c0_20 = arith.constant 0 : index
    %c0_21 = arith.constant 0 : index
    %c0_22 = arith.constant 0 : index
    %c0_23 = arith.constant 0 : index
    %18 = vector.load %arg3[%c0_20, %c0_21, %c0_22, %c0_23] : memref<1x2x18x4xf32, #tpu.memory_space<vmem>>, vector<1x1x16x4xf32>
    %19 = vector.shape_cast %18 : vector<1x1x16x4xf32> to vector<1x16x4xf32>
    %20 = vector.shape_cast %19 : vector<1x16x4xf32> to vector<16x4xf32>
    %c240 = arith.constant 240 : index
    %c12_24 = arith.constant 12 : index
    %21 = vector.load %arg7[%c240, %c12_24] : memref<256x128xf32, #tpu.memory_space<vmem>>, vector<16x4xf32>
    tpu.vector_store %arg7[%c240, %c12_24], %20 {strides = array<i32>} : memref<256x128xf32, #tpu.memory_space<vmem>>, vector<16x4xf32>,
    %c0_25 = arith.constant 0 : index
    %c1_26 = arith.constant 1 : index
    %c1_27 = arith.constant 1 : index
    %c0_28 = arith.constant 0 : index
    %22 = vector.load %arg2[%c0_25, %c1_26, %c1_27, %c0_28] : memref<1x16x18x4xf32, #tpu.memory_space<vmem>>, vector<1x15x16x4xf32>
    %23 = vector.shape_cast %22 : vector<1x15x16x4xf32> to vector<15x16x4xf32>
    %24 = vector.shape_cast %23 : vector<15x16x4xf32> to vector<240x4xf32>
    %c0_29 = arith.constant 0 : index
    %c16 = arith.constant 16 : index
    %25 = vector.load %arg7[%c0_29, %c16] : memref<256x128xf32, #tpu.memory_space<vmem>>, vector<240x4xf32>
    tpu.vector_store %arg7[%c0_29, %c16], %24 {strides = array<i32>} : memref<256x128xf32, #tpu.memory_space<vmem>>, vector<240x4xf32>,
    %c0_30 = arith.constant 0 : index
    %c0_31 = arith.constant 0 : index
    %c1_32 = arith.constant 1 : index
    %c0_33 = arith.constant 0 : index
    %26 = vector.load %arg3[%c0_30, %c0_31, %c1_32, %c0_33] : memref<1x2x18x4xf32, #tpu.memory_space<vmem>>, vector<1x1x16x4xf32>
    %27 = vector.shape_cast %26 : vector<1x1x16x4xf32> to vector<1x16x4xf32>
    %28 = vector.shape_cast %27 : vector<1x16x4xf32> to vector<16x4xf32>
    %c240_34 = arith.constant 240 : index
    %c16_35 = arith.constant 16 : index
    %29 = vector.load %arg7[%c240_34, %c16_35] : memref<256x128xf32, #tpu.memory_space<vmem>>, vector<16x4xf32>
    tpu.vector_store %arg7[%c240_34, %c16_35], %28 {strides = array<i32>} : memref<256x128xf32, #tpu.memory_space<vmem>>, vector<16x4xf32>,
    %c0_36 = arith.constant 0 : index
    %c1_37 = arith.constant 1 : index
    %c2_38 = arith.constant 2 : index
    %c0_39 = arith.constant 0 : index
    %30 = vector.load %arg2[%c0_36, %c1_37, %c2_38, %c0_39] : memref<1x16x18x4xf32, #tpu.memory_space<vmem>>, vector<1x15x16x4xf32>
    %31 = vector.shape_cast %30 : vector<1x15x16x4xf32> to vector<15x16x4xf32>
    %32 = vector.shape_cast %31 : vector<15x16x4xf32> to vector<240x4xf32>
    %c0_40 = arith.constant 0 : index
    %c20 = arith.constant 20 : index
    %33 = vector.load %arg7[%c0_40, %c20] : memref<256x128xf32, #tpu.memory_space<vmem>>, vector<240x4xf32>
    tpu.vector_store %arg7[%c0_40, %c20], %32 {strides = array<i32>} : memref<256x128xf32, #tpu.memory_space<vmem>>, vector<240x4xf32>,
    %c0_41 = arith.constant 0 : index
    %c0_42 = arith.constant 0 : index
    %c2_43 = arith.constant 2 : index
    %c0_44 = arith.constant 0 : index
    %34 = vector.load %arg3[%c0_41, %c0_42, %c2_43, %c0_44] : memref<1x2x18x4xf32, #tpu.memory_space<vmem>>, vector<1x1x16x4xf32>
    %35 = vector.shape_cast %34 : vector<1x1x16x4xf32> to vector<1x16x4xf32>
    %36 = vector.shape_cast %35 : vector<1x16x4xf32> to vector<16x4xf32>
    %c240_45 = arith.constant 240 : index
    %c20_46 = arith.constant 20 : index
    %37 = vector.load %arg7[%c240_45, %c20_46] : memref<256x128xf32, #tpu.memory_space<vmem>>, vector<16x4xf32>
    tpu.vector_store %arg7[%c240_45, %c20_46], %36 {strides = array<i32>} : memref<256x128xf32, #tpu.memory_space<vmem>>, vector<16x4xf32>,
    %c0_47 = arith.constant 0 : index
    %c2_48 = arith.constant 2 : index
    %c0_49 = arith.constant 0 : index
    %c0_50 = arith.constant 0 : index
    %38 = vector.load %arg2[%c0_47, %c2_48, %c0_49, %c0_50] : memref<1x16x18x4xf32, #tpu.memory_space<vmem>>, vector<1x14x16x4xf32>
    %39 = vector.shape_cast %38 : vector<1x14x16x4xf32> to vector<14x16x4xf32>
    %40 = vector.shape_cast %39 : vector<14x16x4xf32> to vector<224x4xf32>
    %c0_51 = arith.constant 0 : index
    %c24 = arith.constant 24 : index
    %41 = vector.load %arg7[%c0_51, %c24] : memref<256x128xf32, #tpu.memory_space<vmem>>, vector<224x4xf32>
    tpu.vector_store %arg7[%c0_51, %c24], %40 {strides = array<i32>} : memref<256x128xf32, #tpu.memory_space<vmem>>, vector<224x4xf32>,
    %c0_52 = arith.constant 0 : index
    %c0_53 = arith.constant 0 : index
    %c0_54 = arith.constant 0 : index
    %c0_55 = arith.constant 0 : index
    %42 = vector.load %arg3[%c0_52, %c0_53, %c0_54, %c0_55] : memref<1x2x18x4xf32, #tpu.memory_space<vmem>>, vector<1x2x16x4xf32>
    %43 = vector.shape_cast %42 : vector<1x2x16x4xf32> to vector<2x16x4xf32>
    %44 = vector.shape_cast %43 : vector<2x16x4xf32> to vector<32x4xf32>
    %c224 = arith.constant 224 : index
    %c24_56 = arith.constant 24 : index
    %45 = vector.load %arg7[%c224, %c24_56] : memref<256x128xf32, #tpu.memory_space<vmem>>, vector<32x4xf32>
    tpu.vector_store %arg7[%c224, %c24_56], %44 {strides = array<i32>} : memref<256x128xf32, #tpu.memory_space<vmem>>, vector<32x4xf32>,
    %c0_57 = arith.constant 0 : index
    %c2_58 = arith.constant 2 : index
    %c1_59 = arith.constant 1 : index
    %c0_60 = arith.constant 0 : index
    %46 = vector.load %arg2[%c0_57, %c2_58, %c1_59, %c0_60] : memref<1x16x18x4xf32, #tpu.memory_space<vmem>>, vector<1x14x16x4xf32>
    %47 = vector.shape_cast %46 : vector<1x14x16x4xf32> to vector<14x16x4xf32>
    %48 = vector.shape_cast %47 : vector<14x16x4xf32> to vector<224x4xf32>
    %c0_61 = arith.constant 0 : index
    %c28 = arith.constant 28 : index
    %49 = vector.load %arg7[%c0_61, %c28] : memref<256x128xf32, #tpu.memory_space<vmem>>, vector<224x4xf32>
    tpu.vector_store %arg7[%c0_61, %c28], %48 {strides = array<i32>} : memref<256x128xf32, #tpu.memory_space<vmem>>, vector<224x4xf32>,
    %c0_62 = arith.constant 0 : index
    %c0_63 = arith.constant 0 : index
    %c1_64 = arith.constant 1 : index
    %c0_65 = arith.constant 0 : index
    %50 = vector.load %arg3[%c0_62, %c0_63, %c1_64, %c0_65] : memref<1x2x18x4xf32, #tpu.memory_space<vmem>>, vector<1x2x16x4xf32>
    %51 = vector.shape_cast %50 : vector<1x2x16x4xf32> to vector<2x16x4xf32>
    %52 = vector.shape_cast %51 : vector<2x16x4xf32> to vector<32x4xf32>
    %c224_66 = arith.constant 224 : index
    %c28_67 = arith.constant 28 : index
    %53 = vector.load %arg7[%c224_66, %c28_67] : memref<256x128xf32, #tpu.memory_space<vmem>>, vector<32x4xf32>
    tpu.vector_store %arg7[%c224_66, %c28_67], %52 {strides = array<i32>} : memref<256x128xf32, #tpu.memory_space<vmem>>, vector<32x4xf32>,
    %c0_68 = arith.constant 0 : index
    %c2_69 = arith.constant 2 : index
    %c2_70 = arith.constant 2 : index
    %c0_71 = arith.constant 0 : index
    %54 = vector.load %arg2[%c0_68, %c2_69, %c2_70, %c0_71] : memref<1x16x18x4xf32, #tpu.memory_space<vmem>>, vector<1x14x16x4xf32>
    %55 = vector.shape_cast %54 : vector<1x14x16x4xf32> to vector<14x16x4xf32>
    %56 = vector.shape_cast %55 : vector<14x16x4xf32> to vector<224x4xf32>
    %c0_72 = arith.constant 0 : index
    %c32 = arith.constant 32 : index
    %57 = vector.load %arg7[%c0_72, %c32] : memref<256x128xf32, #tpu.memory_space<vmem>>, vector<224x4xf32>
    tpu.vector_store %arg7[%c0_72, %c32], %56 {strides = array<i32>} : memref<256x128xf32, #tpu.memory_space<vmem>>, vector<224x4xf32>,
    %c0_73 = arith.constant 0 : index
    %c0_74 = arith.constant 0 : index
    %c2_75 = arith.constant 2 : index
    %c0_76 = arith.constant 0 : index
    %58 = vector.load %arg3[%c0_73, %c0_74, %c2_75, %c0_76] : memref<1x2x18x4xf32, #tpu.memory_space<vmem>>, vector<1x2x16x4xf32>
    %59 = vector.shape_cast %58 : vector<1x2x16x4xf32> to vector<2x16x4xf32>
    %60 = vector.shape_cast %59 : vector<2x16x4xf32> to vector<32x4xf32>
    %c224_77 = arith.constant 224 : index
    %c32_78 = arith.constant 32 : index
    %61 = vector.load %arg7[%c224_77, %c32_78] : memref<256x128xf32, #tpu.memory_space<vmem>>, vector<32x4xf32>
    tpu.vector_store %arg7[%c224_77, %c32_78], %60 {strides = array<i32>} : memref<256x128xf32, #tpu.memory_space<vmem>>, vector<32x4xf32>,
    %c0_79 = arith.constant 0 : index
    %c0_80 = arith.constant 0 : index
    %62 = vector.load %arg4[%c0_79, %c0_80] : memref<8x128xf32, #tpu.memory_space<vmem>>, vector<8x128xf32>
    %c0_81 = arith.constant 0 : index
    %c0_82 = arith.constant 0 : index
    %63 = vector.load %arg7[%c0_81, %c0_82] : memref<256x128xf32, #tpu.memory_space<vmem>>, vector<256x128xf32>
    %cst_83 = arith.constant dense<0.000000e+00> : vector<8x256xf32>
    %64 = tpu.matmul %62, %63, %cst_83 {dimension_numbers = #tpu.dot_dimension_numbers<[1], [1], [0], [0], [0, 0, 1, 0], [], []>} : vector<8x128xf32>, vector<256x128xf32>, vector<8x256xf32> -> vector<8x256xf32>
    %cst_84 = arith.constant dense<0.000000e+00> : vector<8xf32>
    %65 = vector.multi_reduction <add>, %64, %cst_84 [1] : vector<8x256xf32> to vector<8xf32>
    %66 = vector.shape_cast %65 : vector<8xf32> to vector<8x1xf32>
    %67 = vector.shape_cast %66 : vector<8x1xf32> to vector<1x8x1xf32>
    %68 = arith.mulf %64, %64 : vector<8x256xf32>
    %cst_85 = arith.constant dense<0.000000e+00> : vector<8xf32>
    %69 = vector.multi_reduction <add>, %68, %cst_85 [1] : vector<8x256xf32> to vector<8xf32>
    %70 = vector.shape_cast %69 : vector<8xf32> to vector<8x1xf32>
    %71 = vector.shape_cast %70 : vector<8x1xf32> to vector<1x8x1xf32>
    %c0_i32 = arith.constant 0 : i32
    %72 = arith.cmpi eq, %arg1, %c0_i32 : i32
    %73 = arith.extui %72 : i1 to i32
    %c0_i32_86 = arith.constant 0 : i32
    %74 = arith.cmpi ne, %73, %c0_i32_86 : i32
    scf.if %74 {
      %c0_89 = arith.constant 0 : index
      %c0_90 = arith.constant 0 : index
      %c0_91 = arith.constant 0 : index
      %78 = vector.load %arg5[%c0_89, %c0_90, %c0_91] : memref<1x8x1xf32, #tpu.memory_space<vmem>>, vector<1x8x1xf32>
      tpu.vector_store %arg5[%c0_89, %c0_90, %c0_91], %67 {strides = array<i32>} : memref<1x8x1xf32, #tpu.memory_space<vmem>>, vector<1x8x1xf32>,
      %c0_92 = arith.constant 0 : index
      %c0_93 = arith.constant 0 : index
      %c0_94 = arith.constant 0 : index
      %79 = vector.load %arg6[%c0_92, %c0_93, %c0_94] : memref<1x8x1xf32, #tpu.memory_space<vmem>>, vector<1x8x1xf32>
      tpu.vector_store %arg6[%c0_92, %c0_93, %c0_94], %71 {strides = array<i32>} : memref<1x8x1xf32, #tpu.memory_space<vmem>>, vector<1x8x1xf32>,
    } else {
    }
    %c0_i32_87 = arith.constant 0 : i32
    %75 = arith.cmpi ne, %arg1, %c0_i32_87 : i32
    %76 = arith.extui %75 : i1 to i32
    %c0_i32_88 = arith.constant 0 : i32
    %77 = arith.cmpi ne, %76, %c0_i32_88 : i32
    scf.if %77 {
      %c0_89 = arith.constant 0 : index
      %c0_90 = arith.constant 0 : index
      %c0_91 = arith.constant 0 : index
      %78 = vector.load %arg5[%c0_89, %c0_90, %c0_91] : memref<1x8x1xf32, #tpu.memory_space<vmem>>, vector<1x8x1xf32>
      %79 = arith.addf %78, %67 : vector<1x8x1xf32>
      %c0_92 = arith.constant 0 : index
      %c0_93 = arith.constant 0 : index
      %c0_94 = arith.constant 0 : index
      %80 = vector.load %arg5[%c0_92, %c0_93, %c0_94] : memref<1x8x1xf32, #tpu.memory_space<vmem>>, vector<1x8x1xf32>
      tpu.vector_store %arg5[%c0_92, %c0_93, %c0_94], %79 {strides = array<i32>} : memref<1x8x1xf32, #tpu.memory_space<vmem>>, vector<1x8x1xf32>,
      %c0_95 = arith.constant 0 : index
      %c0_96 = arith.constant 0 : index
      %c0_97 = arith.constant 0 : index
      %81 = vector.load %arg6[%c0_95, %c0_96, %c0_97] : memref<1x8x1xf32, #tpu.memory_space<vmem>>, vector<1x8x1xf32>
      %82 = arith.addf %81, %71 : vector<1x8x1xf32>
      %c0_98 = arith.constant 0 : index
      %c0_99 = arith.constant 0 : index
      %c0_100 = arith.constant 0 : index
      %83 = vector.load %arg6[%c0_98, %c0_99, %c0_100] : memref<1x8x1xf32, #tpu.memory_space<vmem>>, vector<1x8x1xf32>
      tpu.vector_store %arg6[%c0_98, %c0_99, %c0_100], %82 {strides = array<i32>} : memref<1x8x1xf32, #tpu.memory_space<vmem>>, vector<1x8x1xf32>,
    } else {
    }
    return
  }
  func.func @transform_0(%arg0: i32, %arg1: i32) -> (i32, i32, i32, i32) {
    %c0_i32 = arith.constant 0 : i32
    %c0_i32_0 = arith.constant 0 : i32
    %c0_i32_1 = arith.constant 0 : i32
    return %arg0, %arg1, %c0_i32, %c0_i32_0 : i32, i32, i32, i32
  }
  func.func @transform_1(%arg0: i32, %arg1: i32) -> (i32, i32, i32, i32) {
    %c1_i32 = arith.constant 1 : i32
    %0 = arith.addi %arg1, %c1_i32 : i32
    %c8_i32 = arith.constant 8 : i32
    %1 = arith.muli %0, %c8_i32 : i32
    %c0_i32 = arith.constant 0 : i32
    %c0_i32_0 = arith.constant 0 : i32
    %c0_i32_1 = arith.constant 0 : i32
    return %arg0, %1, %c0_i32, %c0_i32_0 : i32, i32, i32, i32
  }
  func.func @transform_2(%arg0: i32, %arg1: i32) -> (i32, i32) {
    %c0_i32 = arith.constant 0 : i32
    %c0_i32_0 = arith.constant 0 : i32
    %c0_i32_1 = arith.constant 0 : i32
    return %c0_i32, %c0_i32_0 : i32, i32
  }
  func.func @transform_3(%arg0: i32, %arg1: i32) -> (i32, i32, i32) {
    %c0_i32 = arith.constant 0 : i32
    %c0_i32_0 = arith.constant 0 : i32
    %c0_i32_1 = arith.constant 0 : i32
    return %arg0, %c0_i32, %c0_i32_0 : i32, i32, i32
  }
  func.func @transform_4(%arg0: i32, %arg1: i32) -> (i32, i32, i32) {
    %c0_i32 = arith.constant 0 : i32
    %c0_i32_0 = arith.constant 0 : i32
    %c0_i32_1 = arith.constant 0 : i32
    return %arg0, %c0_i32, %c0_i32_0 : i32, i32, i32
  }
}

module attributes {stable_mosaic.version = 11 : i64} {
  func.func @_norm_kernel(%arg0: i32, %arg1: i32, %arg2: memref<1x16x18x4xf32, #tpu.memory_space<vmem>>, %arg3: memref<1x2x18x4xf32, #tpu.memory_space<vmem>>, %arg4: memref<8x128xf32, #tpu.memory_space<vmem>>, %arg5: memref<8x1xf32, #tpu.memory_space<vmem>>, %arg6: memref<8x1xf32, #tpu.memory_space<vmem>>, %arg7: memref<1x8x256xf32, #tpu.memory_space<vmem>>, %arg8: memref<256x128xf32, #tpu.memory_space<vmem>>) attributes {dimension_semantics = [#tpu.dimension_semantics<parallel>, #tpu.dimension_semantics<parallel>], iteration_bounds = array<i64: 2, 1>, scalar_prefetch = 0 : i64, scratch_operands = 1 : i64, tpu.core_type = #tpu.core_type<tc>, window_params = [{transform_indices = @transform_0, window_bounds = array<i64: 1, 16, 18, 4>}, {transform_indices = @transform_1, window_bounds = array<i64: 1, 2, 18, 4>}, {pipeline_mode = #tpu.pipeline_mode<synchronous>, transform_indices = @transform_2, window_bounds = array<i64: 8, 128>}, {pipeline_mode = #tpu.pipeline_mode<synchronous>, transform_indices = @transform_3, window_bounds = array<i64: 8, 1>}, {pipeline_mode = #tpu.pipeline_mode<synchronous>, transform_indices = @transform_4, window_bounds = array<i64: 8, 1>}, {transform_indices = @transform_5, window_bounds = array<i64: 1, 8, 256>}]} {
    %cst = arith.constant 0.000000e+00 : f32
    %0 = vector.broadcast %cst : f32 to vector<256x128xf32>
    %c0 = arith.constant 0 : index
    %c0_0 = arith.constant 0 : index
    %1 = vector.load %arg8[%c0, %c0_0] : memref<256x128xf32, #tpu.memory_space<vmem>>, vector<256x128xf32>
    tpu.vector_store %arg8[%c0, %c0_0], %0 {strides = array<i32>} : memref<256x128xf32, #tpu.memory_space<vmem>>, vector<256x128xf32>,
    %c0_1 = arith.constant 0 : index
    %c0_2 = arith.constant 0 : index
    %c0_3 = arith.constant 0 : index
    %c0_4 = arith.constant 0 : index
    %2 = vector.load %arg2[%c0_1, %c0_2, %c0_3, %c0_4] : memref<1x16x18x4xf32, #tpu.memory_space<vmem>>, vector<1x16x16x4xf32>
    %3 = vector.shape_cast %2 : vector<1x16x16x4xf32> to vector<16x16x4xf32>
    %4 = vector.shape_cast %3 : vector<16x16x4xf32> to vector<256x4xf32>
    %c0_5 = arith.constant 0 : index
    %c0_6 = arith.constant 0 : index
    %5 = vector.load %arg8[%c0_5, %c0_6] : memref<256x128xf32, #tpu.memory_space<vmem>>, vector<256x4xf32>
    tpu.vector_store %arg8[%c0_5, %c0_6], %4 {strides = array<i32>} : memref<256x128xf32, #tpu.memory_space<vmem>>, vector<256x4xf32>,
    %c0_7 = arith.constant 0 : index
    %c0_8 = arith.constant 0 : index
    %c1 = arith.constant 1 : index
    %c0_9 = arith.constant 0 : index
    %6 = vector.load %arg2[%c0_7, %c0_8, %c1, %c0_9] : memref<1x16x18x4xf32, #tpu.memory_space<vmem>>, vector<1x16x16x4xf32>
    %7 = vector.shape_cast %6 : vector<1x16x16x4xf32> to vector<16x16x4xf32>
    %8 = vector.shape_cast %7 : vector<16x16x4xf32> to vector<256x4xf32>
    %c0_10 = arith.constant 0 : index
    %c4 = arith.constant 4 : index
    %9 = vector.load %arg8[%c0_10, %c4] : memref<256x128xf32, #tpu.memory_space<vmem>>, vector<256x4xf32>
    tpu.vector_store %arg8[%c0_10, %c4], %8 {strides = array<i32>} : memref<256x128xf32, #tpu.memory_space<vmem>>, vector<256x4xf32>,
    %c0_11 = arith.constant 0 : index
    %c0_12 = arith.constant 0 : index
    %c2 = arith.constant 2 : index
    %c0_13 = arith.constant 0 : index
    %10 = vector.load %arg2[%c0_11, %c0_12, %c2, %c0_13] : memref<1x16x18x4xf32, #tpu.memory_space<vmem>>, vector<1x16x16x4xf32>
    %11 = vector.shape_cast %10 : vector<1x16x16x4xf32> to vector<16x16x4xf32>
    %12 = vector.shape_cast %11 : vector<16x16x4xf32> to vector<256x4xf32>
    %c0_14 = arith.constant 0 : index
    %c8 = arith.constant 8 : index
    %13 = vector.load %arg8[%c0_14, %c8] : memref<256x128xf32, #tpu.memory_space<vmem>>, vector<256x4xf32>
    tpu.vector_store %arg8[%c0_14, %c8], %12 {strides = array<i32>} : memref<256x128xf32, #tpu.memory_space<vmem>>, vector<256x4xf32>,
    %c0_15 = arith.constant 0 : index
    %c1_16 = arith.constant 1 : index
    %c0_17 = arith.constant 0 : index
    %c0_18 = arith.constant 0 : index
    %14 = vector.load %arg2[%c0_15, %c1_16, %c0_17, %c0_18] : memref<1x16x18x4xf32, #tpu.memory_space<vmem>>, vector<1x15x16x4xf32>
    %15 = vector.shape_cast %14 : vector<1x15x16x4xf32> to vector<15x16x4xf32>
    %16 = vector.shape_cast %15 : vector<15x16x4xf32> to vector<240x4xf32>
    %c0_19 = arith.constant 0 : index
    %c12 = arith.constant 12 : index
    %17 = vector.load %arg8[%c0_19, %c12] : memref<256x128xf32, #tpu.memory_space<vmem>>, vector<240x4xf32>
    tpu.vector_store %arg8[%c0_19, %c12], %16 {strides = array<i32>} : memref<256x128xf32, #tpu.memory_space<vmem>>, vector<240x4xf32>,
    %c0_20 = arith.constant 0 : index
    %c0_21 = arith.constant 0 : index
    %c0_22 = arith.constant 0 : index
    %c0_23 = arith.constant 0 : index
    %18 = vector.load %arg3[%c0_20, %c0_21, %c0_22, %c0_23] : memref<1x2x18x4xf32, #tpu.memory_space<vmem>>, vector<1x1x16x4xf32>
    %19 = vector.shape_cast %18 : vector<1x1x16x4xf32> to vector<1x16x4xf32>
    %20 = vector.shape_cast %19 : vector<1x16x4xf32> to vector<16x4xf32>
    %c240 = arith.constant 240 : index
    %c12_24 = arith.constant 12 : index
    %21 = vector.load %arg8[%c240, %c12_24] : memref<256x128xf32, #tpu.memory_space<vmem>>, vector<16x4xf32>
    tpu.vector_store %arg8[%c240, %c12_24], %20 {strides = array<i32>} : memref<256x128xf32, #tpu.memory_space<vmem>>, vector<16x4xf32>,
    %c0_25 = arith.constant 0 : index
    %c1_26 = arith.constant 1 : index
    %c1_27 = arith.constant 1 : index
    %c0_28 = arith.constant 0 : index
    %22 = vector.load %arg2[%c0_25, %c1_26, %c1_27, %c0_28] : memref<1x16x18x4xf32, #tpu.memory_space<vmem>>, vector<1x15x16x4xf32>
    %23 = vector.shape_cast %22 : vector<1x15x16x4xf32> to vector<15x16x4xf32>
    %24 = vector.shape_cast %23 : vector<15x16x4xf32> to vector<240x4xf32>
    %c0_29 = arith.constant 0 : index
    %c16 = arith.constant 16 : index
    %25 = vector.load %arg8[%c0_29, %c16] : memref<256x128xf32, #tpu.memory_space<vmem>>, vector<240x4xf32>
    tpu.vector_store %arg8[%c0_29, %c16], %24 {strides = array<i32>} : memref<256x128xf32, #tpu.memory_space<vmem>>, vector<240x4xf32>,
    %c0_30 = arith.constant 0 : index
    %c0_31 = arith.constant 0 : index
    %c1_32 = arith.constant 1 : index
    %c0_33 = arith.constant 0 : index
    %26 = vector.load %arg3[%c0_30, %c0_31, %c1_32, %c0_33] : memref<1x2x18x4xf32, #tpu.memory_space<vmem>>, vector<1x1x16x4xf32>
    %27 = vector.shape_cast %26 : vector<1x1x16x4xf32> to vector<1x16x4xf32>
    %28 = vector.shape_cast %27 : vector<1x16x4xf32> to vector<16x4xf32>
    %c240_34 = arith.constant 240 : index
    %c16_35 = arith.constant 16 : index
    %29 = vector.load %arg8[%c240_34, %c16_35] : memref<256x128xf32, #tpu.memory_space<vmem>>, vector<16x4xf32>
    tpu.vector_store %arg8[%c240_34, %c16_35], %28 {strides = array<i32>} : memref<256x128xf32, #tpu.memory_space<vmem>>, vector<16x4xf32>,
    %c0_36 = arith.constant 0 : index
    %c1_37 = arith.constant 1 : index
    %c2_38 = arith.constant 2 : index
    %c0_39 = arith.constant 0 : index
    %30 = vector.load %arg2[%c0_36, %c1_37, %c2_38, %c0_39] : memref<1x16x18x4xf32, #tpu.memory_space<vmem>>, vector<1x15x16x4xf32>
    %31 = vector.shape_cast %30 : vector<1x15x16x4xf32> to vector<15x16x4xf32>
    %32 = vector.shape_cast %31 : vector<15x16x4xf32> to vector<240x4xf32>
    %c0_40 = arith.constant 0 : index
    %c20 = arith.constant 20 : index
    %33 = vector.load %arg8[%c0_40, %c20] : memref<256x128xf32, #tpu.memory_space<vmem>>, vector<240x4xf32>
    tpu.vector_store %arg8[%c0_40, %c20], %32 {strides = array<i32>} : memref<256x128xf32, #tpu.memory_space<vmem>>, vector<240x4xf32>,
    %c0_41 = arith.constant 0 : index
    %c0_42 = arith.constant 0 : index
    %c2_43 = arith.constant 2 : index
    %c0_44 = arith.constant 0 : index
    %34 = vector.load %arg3[%c0_41, %c0_42, %c2_43, %c0_44] : memref<1x2x18x4xf32, #tpu.memory_space<vmem>>, vector<1x1x16x4xf32>
    %35 = vector.shape_cast %34 : vector<1x1x16x4xf32> to vector<1x16x4xf32>
    %36 = vector.shape_cast %35 : vector<1x16x4xf32> to vector<16x4xf32>
    %c240_45 = arith.constant 240 : index
    %c20_46 = arith.constant 20 : index
    %37 = vector.load %arg8[%c240_45, %c20_46] : memref<256x128xf32, #tpu.memory_space<vmem>>, vector<16x4xf32>
    tpu.vector_store %arg8[%c240_45, %c20_46], %36 {strides = array<i32>} : memref<256x128xf32, #tpu.memory_space<vmem>>, vector<16x4xf32>,
    %c0_47 = arith.constant 0 : index
    %c2_48 = arith.constant 2 : index
    %c0_49 = arith.constant 0 : index
    %c0_50 = arith.constant 0 : index
    %38 = vector.load %arg2[%c0_47, %c2_48, %c0_49, %c0_50] : memref<1x16x18x4xf32, #tpu.memory_space<vmem>>, vector<1x14x16x4xf32>
    %39 = vector.shape_cast %38 : vector<1x14x16x4xf32> to vector<14x16x4xf32>
    %40 = vector.shape_cast %39 : vector<14x16x4xf32> to vector<224x4xf32>
    %c0_51 = arith.constant 0 : index
    %c24 = arith.constant 24 : index
    %41 = vector.load %arg8[%c0_51, %c24] : memref<256x128xf32, #tpu.memory_space<vmem>>, vector<224x4xf32>
    tpu.vector_store %arg8[%c0_51, %c24], %40 {strides = array<i32>} : memref<256x128xf32, #tpu.memory_space<vmem>>, vector<224x4xf32>,
    %c0_52 = arith.constant 0 : index
    %c0_53 = arith.constant 0 : index
    %c0_54 = arith.constant 0 : index
    %c0_55 = arith.constant 0 : index
    %42 = vector.load %arg3[%c0_52, %c0_53, %c0_54, %c0_55] : memref<1x2x18x4xf32, #tpu.memory_space<vmem>>, vector<1x2x16x4xf32>
    %43 = vector.shape_cast %42 : vector<1x2x16x4xf32> to vector<2x16x4xf32>
    %44 = vector.shape_cast %43 : vector<2x16x4xf32> to vector<32x4xf32>
    %c224 = arith.constant 224 : index
    %c24_56 = arith.constant 24 : index
    %45 = vector.load %arg8[%c224, %c24_56] : memref<256x128xf32, #tpu.memory_space<vmem>>, vector<32x4xf32>
    tpu.vector_store %arg8[%c224, %c24_56], %44 {strides = array<i32>} : memref<256x128xf32, #tpu.memory_space<vmem>>, vector<32x4xf32>,
    %c0_57 = arith.constant 0 : index
    %c2_58 = arith.constant 2 : index
    %c1_59 = arith.constant 1 : index
    %c0_60 = arith.constant 0 : index
    %46 = vector.load %arg2[%c0_57, %c2_58, %c1_59, %c0_60] : memref<1x16x18x4xf32, #tpu.memory_space<vmem>>, vector<1x14x16x4xf32>
    %47 = vector.shape_cast %46 : vector<1x14x16x4xf32> to vector<14x16x4xf32>
    %48 = vector.shape_cast %47 : vector<14x16x4xf32> to vector<224x4xf32>
    %c0_61 = arith.constant 0 : index
    %c28 = arith.constant 28 : index
    %49 = vector.load %arg8[%c0_61, %c28] : memref<256x128xf32, #tpu.memory_space<vmem>>, vector<224x4xf32>
    tpu.vector_store %arg8[%c0_61, %c28], %48 {strides = array<i32>} : memref<256x128xf32, #tpu.memory_space<vmem>>, vector<224x4xf32>,
    %c0_62 = arith.constant 0 : index
    %c0_63 = arith.constant 0 : index
    %c1_64 = arith.constant 1 : index
    %c0_65 = arith.constant 0 : index
    %50 = vector.load %arg3[%c0_62, %c0_63, %c1_64, %c0_65] : memref<1x2x18x4xf32, #tpu.memory_space<vmem>>, vector<1x2x16x4xf32>
    %51 = vector.shape_cast %50 : vector<1x2x16x4xf32> to vector<2x16x4xf32>
    %52 = vector.shape_cast %51 : vector<2x16x4xf32> to vector<32x4xf32>
    %c224_66 = arith.constant 224 : index
    %c28_67 = arith.constant 28 : index
    %53 = vector.load %arg8[%c224_66, %c28_67] : memref<256x128xf32, #tpu.memory_space<vmem>>, vector<32x4xf32>
    tpu.vector_store %arg8[%c224_66, %c28_67], %52 {strides = array<i32>} : memref<256x128xf32, #tpu.memory_space<vmem>>, vector<32x4xf32>,
    %c0_68 = arith.constant 0 : index
    %c2_69 = arith.constant 2 : index
    %c2_70 = arith.constant 2 : index
    %c0_71 = arith.constant 0 : index
    %54 = vector.load %arg2[%c0_68, %c2_69, %c2_70, %c0_71] : memref<1x16x18x4xf32, #tpu.memory_space<vmem>>, vector<1x14x16x4xf32>
    %55 = vector.shape_cast %54 : vector<1x14x16x4xf32> to vector<14x16x4xf32>
    %56 = vector.shape_cast %55 : vector<14x16x4xf32> to vector<224x4xf32>
    %c0_72 = arith.constant 0 : index
    %c32 = arith.constant 32 : index
    %57 = vector.load %arg8[%c0_72, %c32] : memref<256x128xf32, #tpu.memory_space<vmem>>, vector<224x4xf32>
    tpu.vector_store %arg8[%c0_72, %c32], %56 {strides = array<i32>} : memref<256x128xf32, #tpu.memory_space<vmem>>, vector<224x4xf32>,
    %c0_73 = arith.constant 0 : index
    %c0_74 = arith.constant 0 : index
    %c2_75 = arith.constant 2 : index
    %c0_76 = arith.constant 0 : index
    %58 = vector.load %arg3[%c0_73, %c0_74, %c2_75, %c0_76] : memref<1x2x18x4xf32, #tpu.memory_space<vmem>>, vector<1x2x16x4xf32>
    %59 = vector.shape_cast %58 : vector<1x2x16x4xf32> to vector<2x16x4xf32>
    %60 = vector.shape_cast %59 : vector<2x16x4xf32> to vector<32x4xf32>
    %c224_77 = arith.constant 224 : index
    %c32_78 = arith.constant 32 : index
    %61 = vector.load %arg8[%c224_77, %c32_78] : memref<256x128xf32, #tpu.memory_space<vmem>>, vector<32x4xf32>
    tpu.vector_store %arg8[%c224_77, %c32_78], %60 {strides = array<i32>} : memref<256x128xf32, #tpu.memory_space<vmem>>, vector<32x4xf32>,
    %c0_79 = arith.constant 0 : index
    %c0_80 = arith.constant 0 : index
    %62 = vector.load %arg4[%c0_79, %c0_80] : memref<8x128xf32, #tpu.memory_space<vmem>>, vector<8x128xf32>
    %c0_81 = arith.constant 0 : index
    %c0_82 = arith.constant 0 : index
    %63 = vector.load %arg8[%c0_81, %c0_82] : memref<256x128xf32, #tpu.memory_space<vmem>>, vector<256x128xf32>
    %cst_83 = arith.constant dense<0.000000e+00> : vector<8x256xf32>
    %64 = tpu.matmul %62, %63, %cst_83 {dimension_numbers = #tpu.dot_dimension_numbers<[1], [1], [0], [0], [0, 0, 1, 0], [], []>} : vector<8x128xf32>, vector<256x128xf32>, vector<8x256xf32> -> vector<8x256xf32>
    %c0_84 = arith.constant 0 : index
    %c0_85 = arith.constant 0 : index
    %65 = vector.load %arg5[%c0_84, %c0_85] : memref<8x1xf32, #tpu.memory_space<vmem>>, vector<8x1xf32>
    %66 = vector.broadcast %65 : vector<8x1xf32> to vector<8x256xf32>
    %67 = arith.mulf %64, %66 : vector<8x256xf32>
    %c0_86 = arith.constant 0 : index
    %c0_87 = arith.constant 0 : index
    %68 = vector.load %arg6[%c0_86, %c0_87] : memref<8x1xf32, #tpu.memory_space<vmem>>, vector<8x1xf32>
    %69 = vector.broadcast %68 : vector<8x1xf32> to vector<8x256xf32>
    %70 = arith.addf %67, %69 : vector<8x256xf32>
    %cst_88 = arith.constant 0.000000e+00 : f32
    %71 = vector.broadcast %cst_88 : f32 to vector<8x256xf32>
    %72 = arith.maximumf %70, %71 : vector<8x256xf32>
    %73 = vector.shape_cast %72 : vector<8x256xf32> to vector<1x8x256xf32>
    %c0_89 = arith.constant 0 : index
    %c0_90 = arith.constant 0 : index
    %c0_91 = arith.constant 0 : index
    %74 = vector.load %arg7[%c0_89, %c0_90, %c0_91] : memref<1x8x256xf32, #tpu.memory_space<vmem>>, vector<1x8x256xf32>
    tpu.vector_store %arg7[%c0_89, %c0_90, %c0_91], %73 {strides = array<i32>} : memref<1x8x256xf32, #tpu.memory_space<vmem>>, vector<1x8x256xf32>,
    return
  }
  func.func @transform_0(%arg0: i32, %arg1: i32) -> (i32, i32, i32, i32) {
    %c0_i32 = arith.constant 0 : i32
    %c0_i32_0 = arith.constant 0 : i32
    %c0_i32_1 = arith.constant 0 : i32
    return %arg0, %arg1, %c0_i32, %c0_i32_0 : i32, i32, i32, i32
  }
  func.func @transform_1(%arg0: i32, %arg1: i32) -> (i32, i32, i32, i32) {
    %c1_i32 = arith.constant 1 : i32
    %0 = arith.addi %arg1, %c1_i32 : i32
    %c8_i32 = arith.constant 8 : i32
    %1 = arith.muli %0, %c8_i32 : i32
    %c0_i32 = arith.constant 0 : i32
    %c0_i32_0 = arith.constant 0 : i32
    %c0_i32_1 = arith.constant 0 : i32
    return %arg0, %1, %c0_i32, %c0_i32_0 : i32, i32, i32, i32
  }
  func.func @transform_2(%arg0: i32, %arg1: i32) -> (i32, i32) {
    %c0_i32 = arith.constant 0 : i32
    %c0_i32_0 = arith.constant 0 : i32
    %c0_i32_1 = arith.constant 0 : i32
    return %c0_i32, %c0_i32_0 : i32, i32
  }
  func.func @transform_3(%arg0: i32, %arg1: i32) -> (i32, i32) {
    %c0_i32 = arith.constant 0 : i32
    %c0_i32_0 = arith.constant 0 : i32
    %c0_i32_1 = arith.constant 0 : i32
    return %c0_i32, %c0_i32_0 : i32, i32
  }
  func.func @transform_4(%arg0: i32, %arg1: i32) -> (i32, i32) {
    %c0_i32 = arith.constant 0 : i32
    %c0_i32_0 = arith.constant 0 : i32
    %c0_i32_1 = arith.constant 0 : i32
    return %c0_i32, %c0_i32_0 : i32, i32
  }
  func.func @transform_5(%arg0: i32, %arg1: i32) -> (i32, i32, i32) {
    %c0_i32 = arith.constant 0 : i32
    %c0_i32_0 = arith.constant 0 : i32
    return %arg0, %c0_i32, %arg1 : i32, i32, i32
  }
}

</mosaic_0001>

<bundles_post_ra>
// kernel: simple_conv2d.3
= control target key start
LH: loop header
LB: loop body
LE: loop exit
PB: predicated region body
PF: predicated region fallthrough
CT: control target
= control target key end

     0   :  { %s2484_s18 = smov 0   ;;  %s2486_s19 = smov 0   ;;  %s3693_s0 = inlined_call_operand.vmem [shape: f32[2,18,18,4], index: 0, kind: input, shape index: {}, may-alias: {0,1}]   ;;  %s3694_s1 = inlined_call_operand.vmem [shape: f32[2,18,18,4], index: 1, kind: input, shape index: {}, may-alias: {0,1}]   ;;  %s3695_s2 = inlined_call_operand.vmem [shape: f32[8,128], index: 2, kind: input, shape index: {}]   ;;  %s3696_s3 = inlined_call_operand.vmem [shape: f32[8,1], index: 3, kind: input, shape index: {}]   ;;  %s3697_s4 = inlined_call_operand.vmem [shape: f32[8,1], index: 4, kind: input, shape index: {}]   ;;  %s3698_s5 = inlined_call_operand.vmem [shape: f32[2,8,256], index: 5, kind: output, shape index: {}]  }
   0x1   :  { %s2488_s20 = smov 0  }
   0x2 LB: > { %s27_s21 = sadd.s32 1, %s2438_s19  ;;  %p2196_p0 = scmp.ge.s32.totalorder %s2442_s20, 1  ;;  %s2442_s20 = sphi %s2488_s20, %s15_s20   ;;  %s2438_s19 = sphi %s2486_s19, %s3787_s19   ;;  %s2434_s18 = sphi %s2484_s18, %s3786_s18  }
   0x3   : > { %p29_p1 = scmp.ge.s32.totalorder %s27_s21, 2  ;;  %p245_p2 = scmp.lt.s32.totalorder %s2442_s20, 3 }
   0x5   : > { %s3789_s21 = smov (%p29_p1, %s27_s21), 0  ;;  %p246_p3 = pnand %p2196_p0, %p245_p2 }
   0x7   : > { %249 = sbr.rel (%p246_p3) target bundleno = 958 (0x3be), region = 40 }
   0xc   : > { %p305_p4 = scmp.lt.s32.totalorder %s2434_s18, 1  ;;  %s2444_s26 = smov 4   ;;  %vm409_vm0 = vcmask 31744   ;;  %v2445_v33 = vmov 0.0   ;;  %vm602_vm1 = vcmask 64544   ;;  %vm795_vm2 = vcmask 97344  }
   0xd   : > { %345 = vst [vmem:[#allocation2] sm:$0xff] %v2445_v33  ;;  %s2446_s27 = smov 8   ;;  %s2447_s28 = smov 12   ;;  %vm979_vm3 = vcmask 130144   ;;  %vm1172_vm4 = vcmask 162944   ;;  %vm1365_vm5 = vcmask 195744  }
   0xe   : > { %s3791_s18 = smov (!%p305_p4, %s2434_s18), 1  ;;  %346 = vst [vmem:[#allocation2 + $0x8] sm:$0xff] %v2445_v33  ;;  %s2448_s8 = smov 16   ;;  %vm1549_vm6 = vcmask 228544   ;;  %vm1742_vm7 = vcmask 261344   ;;  %vm1935_vm8 = vcmask 294144  }
   0xf   : > { %s2380_s22 = smul.u32 432, %s3791_s18  ;;  %347 = vst [vmem:[#allocation2 + $0x10] sm:$0xff] %v2445_v33  ;;  %s2449_s9 = smov 20  }
  0x10   : > { %348 = vst [vmem:[#allocation2 + $0x18] sm:$0xff] %v2445_v33  ;;  %s2450_s10 = smov 24   ;;  %s2451_s11 = smov 28  }
  0x11   : > { %s2510_s25 = scalar_lea.vmem %s3693_s0, %s2380_s22  ;;  %349 = vst [vmem:[#allocation2 + $0x20] sm:$0xff] %v2445_v33  ;;  %s2378_s29 = sadd.s32 384, %s2380_s22 }
  0x12   : > { %v442_v0 = vld [vmem:[%s2510_s25 + $0x1] sm:$0xff]  ;;  %v2514_v1 = vld [vmem:[%s2510_s25 + $0x19] sm:$0xff]  ;;  %v2520_v2 = vld [vmem:[%s2510_s25 + $0x31] sm:$0xff]  ;;  %350 = vst [vmem:[#allocation2 + $0x28] sm:$0xff] %v2445_v33  ;;  %s3115_s7 = scalar_lea.vmem %s3694_s1, %s2378_s29  ;;  %s2452_s12 = smov 32  }
  0x13   : > { %506 = vrot.lane.b32.xlu0 %v442_v0, %s2444_s26  ;;  %510 = vrot.lane.b32.xlu1 %v2514_v1, %s2444_s26  ;;  %v443_v3 = vld [vmem:[%s2510_s25 + $0x9] sm:$0xff]  ;;  %v2526_v4 = vld [vmem:[%s2510_s25 + $0x21] sm:$0xff]  ;;  %351 = vst [vmem:[#allocation2 + $0x30] sm:$0xff] %v2445_v33  ;;  %s2379_s23 = sshll.u32 %s3791_s18, 4 }
  0x14   : > { %514 = vrot.lane.b32.xlu2 %v2520_v2, %s2444_s26  ;;  %v2532_v5 = vld [vmem:[%s2510_s25 + $0x39] sm:$0xff]  ;;  %v2537_v6 = vld [vmem:[%s2510_s25 + $0x49] sm:$0xff]  ;;  %v2540_v7 = vld [vmem:[%s2510_s25 + $0x51] sm:$0xff]  ;;  %352 = vst [vmem:[#allocation2 + $0x38] sm:$0xff] %v2445_v33 }
  0x15   : > { %v2547_v8 = vld [vmem:[%s2510_s25 + $0x61] sm:$0xff]  ;;  %v2552_v9 = vld [vmem:[%s2510_s25 + $0x69] sm:$0xff]  ;;  %v2555_v10 = vld [vmem:[%s2510_s25 + $0x79] sm:$0xff]  ;;  %353 = vst [vmem:[#allocation2 + $0x40] sm:$0xff] %v2445_v33 }
  0x16   : > { %v2562_v11 = vld [vmem:[%s2510_s25 + $0x81] sm:$0xff]  ;;  %v2567_v12 = vld [vmem:[%s2510_s25 + $0x91] sm:$0xff]  ;;  %v2570_v13 = vld [vmem:[%s2510_s25 + $0x99] sm:$0xff]  ;;  %354 = vst [vmem:[#allocation2 + $0x48] sm:$0xff] %v2445_v33 }
  0x17   : > { %v2577_v14 = vld [vmem:[%s2510_s25 + $0xa9] sm:$0xff]  ;;  %v2582_v15 = vld [vmem:[%s2510_s25 + $0xb1] sm:$0xff]  ;;  %v2585_v16 = vld [vmem:[%s2510_s25 + $0xc1] sm:$0xff]  ;;  %355 = vst [vmem:[#allocation2 + $0x50] sm:$0xff] %v2445_v33 }
  0x18   : > { %v2592_v17 = vld [vmem:[%s2510_s25 + $0xc9] sm:$0xff]  ;;  %v2597_v18 = vld [vmem:[%s2510_s25 + $0xd9] sm:$0xff]  ;;  %v2600_v19 = vld [vmem:[%s2510_s25 + $0xe1] sm:$0xff]  ;;  %356 = vst [vmem:[#allocation2 + $0x58] sm:$0xff] %v2445_v33 }
  0x19   : > { %v2607_v20 = vld [vmem:[%s2510_s25 + $0xf1] sm:$0xff]  ;;  %v2612_v21 = vld [vmem:[%s2510_s25 + $0xf9] sm:$0xff]  ;;  %v2615_v22 = vld [vmem:[%s2510_s25 + $0x109] sm:$0xff]  ;;  %357 = vst [vmem:[#allocation2 + $0x60] sm:$0xff] %v2445_v33 }
  0x1a   : > { %v2622_v23 = vld [vmem:[%s2510_s25 + $0x111] sm:$0xff]  ;;  %v2627_v24 = vld [vmem:[%s2510_s25 + $0x121] sm:$0xff]  ;;  %v2630_v25 = vld [vmem:[%s2510_s25 + $0x129] sm:$0xff]  ;;  %358 = vst [vmem:[#allocation2 + $0x68] sm:$0xff] %v2445_v33 }
  0x1b   : > { %508 = vrot.lane.b32.xlu0 %v443_v3, %s2444_s26  ;;  %512 = vrot.lane.b32.xlu1 %v2526_v4, %s2444_s26  ;;  %v2637_v26 = vld [vmem:[%s2510_s25 + $0x139] sm:$0xff]  ;;  %v2642_v27 = vld [vmem:[%s2510_s25 + $0x141] sm:$0xff]  ;;  %359 = vst [vmem:[#allocation2 + $0x70] sm:$0xff] %v2445_v33 }
  0x1c   : > { %516 = vrot.lane.b32.xlu2 %v2532_v5, %s2444_s26  ;;  %v2645_v28 = vld [vmem:[%s2510_s25 + $0x151] sm:$0xff]  ;;  %v2652_v29 = vld [vmem:[%s2510_s25 + $0x159] sm:$0xff]  ;;  %v2657_v30 = vld [vmem:[%s2510_s25 + $0x169] sm:$0xff]  ;;  %360 = vst [vmem:[#allocation2 + $0x78] sm:$0xff] %v2445_v33 }
  0x1d   : > { %v2660_v31 = vld [vmem:[%s2510_s25 + $0x171] sm:$0xff]  ;;  %v635_v32 = vld [vmem:[%s2510_s25 + $0x2] sm:$0xff]  ;;  %v2675_v36 = vld [vmem:[%s2510_s25 + $0x1a] sm:$0xff]  ;;  %361 = vst [vmem:[#allocation2 + $0x80] sm:$0xff] %v2445_v33 }
  0x1e   : > { %v377_v34 = vld [vmem:[%s2510_s25] sm:$0xff]  ;;  %v636_v35 = vld [vmem:[%s2510_s25 + $0xa] sm:$0xff]  ;;  %3728 = vst [vmem:[#allocation3_spill] sm:$0xff] %v2675_v36  ;;  %v2694_v38 = vld [vmem:[%s2510_s25 + $0x32] sm:$0xff] }
  0x1f   : > { %410 = vst.msk [vmem:[#allocation2] sm:$0xff] %vm409_vm0, %v377_v34  ;;  %v2685_v37 = vld [vmem:[%s2510_s25 + $0x22] sm:$0xff]  ;;  %v2697_v39 = vld [vmem:[%s2510_s25 + $0x3a] sm:$0xff]  ;;  %v2708_v41 = vld [vmem:[%s2510_s25 + $0x4a] sm:$0xff] }
  0x20   : > { %3729 = vst [vmem:[#allocation4_spill] sm:$0xff] %v2685_v37  ;;  %v2717_v42 = vld [vmem:[%s2510_s25 + $0x52] sm:$0xff]  ;;  %v643_v43 = vld [vmem:[%s2510_s25 + $0x62] sm:$0xff]  ;;  %v2728_v45 = vld [vmem:[%s2510_s25 + $0x6a] sm:$0xff] }
  0x21   : > { %3730 = vst [vmem:[#allocation5_spill] sm:$0xff] %v2694_v38  ;;  %v2737_v46 = vld [vmem:[%s2510_s25 + $0x7a] sm:$0xff]  ;;  %v2741_v47 = vld [vmem:[%s2510_s25 + $0x82] sm:$0xff]  ;;  %v2754_v50 = vld [vmem:[%s2510_s25 + $0x92] sm:$0xff] }
  0x22   : > { %3731 = vst [vmem:[#allocation6_spill] sm:$0xff] %v2697_v39  ;;  %v2746_v49 = vld [vmem:[%s2510_s25 + $0x18] sm:$0xff]  ;;  %v2760_v53 = vld [vmem:[%s2510_s25 + $0x30] sm:$0xff]  ;;  %v378_v54 = vld [vmem:[%s2510_s25 + $0x8] sm:$0xff] }
  0x23   : > { %518 = vrot.lane.b32.xlu0 %v2537_v6, %s2444_s26  ;;  %520 = vrot.lane.b32.xlu1 %v2540_v7, %s2444_s26  ;;  %3732 = vst [vmem:[#allocation7_spill] sm:$0xff] %v2708_v41  ;;  %v2768_v55 = vld [vmem:[%s2510_s25 + $0x9a] sm:$0xff]  ;;  %v2773_v56 = vld [vmem:[%s2510_s25 + $0xaa] sm:$0xff] }
  0x24   : > { %522 = vrot.lane.b32.xlu2 %v2547_v8, %s2444_s26  ;;  %362 = vst [vmem:[#allocation2 + $0x88] sm:$0xff] %v2445_v33  ;;  %v2776_v57 = vld [vmem:[%s2510_s25 + $0x20] sm:$0xff]  ;;  %v2780_v59 = vld [vmem:[%s2510_s25 + $0x38] sm:$0xff]  ;;  %v2796_v63 = vld [vmem:[%s2510_s25 + $0x48] sm:$0xff] }
  0x25   : > { %363 = vst [vmem:[#allocation2 + $0x90] sm:$0xff] %v2445_v33  ;;  %v2790_v60 = vld [vmem:[%s2510_s25 + $0xb2] sm:$0xff]  ;;  %v2806_v3 = vld [vmem:[%s2510_s25 + $0x60] sm:$0xff] }
  0x26   : > { %3733 = vst [vmem:[#allocation8_spill] sm:$0xff] %v2717_v42  ;;  %v2800_v0 = vld [vmem:[%s2510_s25 + $0x50] sm:$0xff] }
  0x27   : > { %364 = vst [vmem:[#allocation2 + $0x98] sm:$0xff] %v2445_v33 }
  0x28   : > { %365 = vst [vmem:[#allocation2 + $0xa0] sm:$0xff] %v2445_v33 }
  0x29   : > { %366 = vst [vmem:[#allocation2 + $0xa8] sm:$0xff] %v2445_v33 }
  0x2a   : > { %367 = vst [vmem:[#allocation2 + $0xb0] sm:$0xff] %v2445_v33 }
  0x2b   : > { %524 = vrot.lane.b32.xlu0 %v2552_v9, %s2444_s26  ;;  %526 = vrot.lane.b32.xlu1 %v2555_v10, %s2444_s26  ;;  %3734 = vst [vmem:[#allocation9_spill] sm:$0xff] %v2728_v45 }
  0x2c   : > { %528 = vrot.lane.b32.xlu2 %v2562_v11, %s2444_s26  ;;  %368 = vst [vmem:[#allocation2 + $0xb8] sm:$0xff] %v2445_v33 }
  0x2d   : > { %369 = vst [vmem:[#allocation2 + $0xc0] sm:$0xff] %v2445_v33 }
  0x2e   : > { %370 = vst [vmem:[#allocation2 + $0xc8] sm:$0xff] %v2445_v33 }
  0x2f   : > { %371 = vst [vmem:[#allocation2 + $0xd0] sm:$0xff] %v2445_v33 }
  0x30   : > { %3735 = vst [vmem:[#allocation10_spill] sm:$0xff] %v2737_v46 }
  0x31   : > { %372 = vst [vmem:[#allocation2 + $0xd8] sm:$0xff] %v2445_v33 }
  0x32   : > { %3736 = vst [vmem:[#allocation11_spill] sm:$0xff] %v2741_v47 }
  0x33   : > { %530 = vrot.lane.b32.xlu0 %v2567_v12, %s2444_s26  ;;  %532 = vrot.lane.b32.xlu1 %v2570_v13, %s2444_s26  ;;  %373 = vst [vmem:[#allocation2 + $0xe0] sm:$0xff] %v2445_v33 }
  0x34   : > { %534 = vrot.lane.b32.xlu2 %v2577_v14, %s2444_s26  ;;  %374 = vst [vmem:[#allocation2 + $0xe8] sm:$0xff] %v2445_v33 }
  0x35   : > { %375 = vst [vmem:[#allocation2 + $0xf0] sm:$0xff] %v2445_v33 }
  0x36   : > { %3737 = vst [vmem:[#allocation12_spill] sm:$0xff] %v2754_v50 }
  0x37   : > { %376 = vst [vmem:[#allocation2 + $0xf8] sm:$0xff] %v2445_v33  ;;  %v2814_v33 = vld [vmem:[%s2510_s25 + $0xca] sm:$0xff] }
  0x38   : > { %412 = vst.msk [vmem:[#allocation2 + $0x10] sm:$0xff] %vm409_vm0, %v2746_v49 }
  0x39   : > { %3738 = vst [vmem:[#allocation13_spill] sm:$0xff] %v2768_v55 }
  0x3a   : > { %414 = vst.msk [vmem:[#allocation2 + $0x20] sm:$0xff] %vm409_vm0, %v2760_v53 }
  0x3b   : > { %536 = vrot.lane.b32.xlu0 %v2582_v15, %s2444_s26  ;;  %538 = vrot.lane.b32.xlu1 %v2585_v16, %s2444_s26  ;;  %3739 = vst [vmem:[#allocation14_spill] sm:$0xff] %v2773_v56 }
  0x3c   : > { %540 = vrot.lane.b32.xlu2 %v2592_v17, %s2444_s26  ;;  %411 = vst.msk [vmem:[#allocation2 + $0x8] sm:$0xff] %vm409_vm0, %v378_v54  ;;  %v2849_v54 = vld [vmem:[%s2510_s25 + $0xe2] sm:$0xff] }
  0x3d   : > { %413 = vst.msk [vmem:[#allocation2 + $0x18] sm:$0xff] %vm409_vm0, %v2776_v57 }
  0x3e   : > { %3740 = vst [vmem:[#allocation15_spill] sm:$0xff] %v2790_v60 }
  0x3f   : > { %415 = vst.msk [vmem:[#allocation2 + $0x28] sm:$0xff] %vm409_vm0, %v2780_v59 }
  0x40   : > { %416 = vst.msk [vmem:[#allocation2 + $0x30] sm:$0xff] %vm409_vm0, %v2796_v63 }
  0x41   : > { %3742 = vst [vmem:[#allocation17_spill] sm:$0xff] %v2814_v33 }
  0x42   : > { %417 = vst.msk [vmem:[#allocation2 + $0x38] sm:$0xff] %vm409_vm0, %v2800_v0 }
  0x43   : > { %542 = vrot.lane.b32.xlu0 %v2597_v18, %s2444_s26  ;;  %544 = vrot.lane.b32.xlu1 %v2600_v19, %s2444_s26  ;;  %418 = vst.msk [vmem:[#allocation2 + $0x40] sm:$0xff] %vm409_vm0, %v2806_v3 }
  0x44   : > { %546 = vrot.lane.b32.xlu2 %v2607_v20, %s2444_s26  ;;  %3744 = vst [vmem:[#allocation19_spill] sm:$0xff] %v2849_v54 }
  0x4b   : > { %548 = vrot.lane.b32.xlu0 %v2612_v21, %s2444_s26  ;;  %550 = vrot.lane.b32.xlu1 %v2615_v22, %s2444_s26 }
  0x4c   : > { %552 = vrot.lane.b32.xlu2 %v2622_v23, %s2444_s26 }
  0x53   : > { %554 = vrot.lane.b32.xlu0 %v2627_v24, %s2444_s26  ;;  %556 = vrot.lane.b32.xlu1 %v2630_v25, %s2444_s26 }
  0x54   : > { %558 = vrot.lane.b32.xlu2 %v2637_v26, %s2444_s26 }
  0x5b   : > { %560 = vrot.lane.b32.xlu0 %v2642_v27, %s2444_s26  ;;  %562 = vrot.lane.b32.xlu1 %v2645_v28, %s2444_s26 }
  0x5c   : > { %564 = vrot.lane.b32.xlu2 %v2652_v29, %s2444_s26 }
  0x63   : > { %566 = vrot.lane.b32.xlu0 %v2657_v30, %s2444_s26  ;;  %568 = vrot.lane.b32.xlu1 %v2660_v31, %s2444_s26  ;;  %s343_s26 = scalar_lea.vmem %s3698_s5, %s2379_s23 }
  0x64   : > { %699 = vrot.lane.b32.xlu2 %v635_v32, %s2446_s27  ;;  %v2809_v32 = vld [vmem:[%s2510_s25 + $0xc2] sm:$0xff] }
  0x65   : > { %3741 = vst [vmem:[#allocation16_spill] sm:$0xff] %v2809_v32 }
  0x6b   : > { %701 = vrot.lane.b32.xlu0 %v636_v35, %s2446_s27  ;;  %703 = vrot.lane.b32.xlu1 %v2675_v36, %s2446_s27  ;;  %v2819_v35 = vld [vmem:[%s2510_s25 + $0x68] sm:$0xff]  ;;  %v3003_v36 = vld [vmem:[%s2510_s25 + $0x158] sm:$0xff] }
  0x6c   : > { %705 = vrot.lane.b32.xlu2 %v2685_v37, %s2446_s27  ;;  %419 = vst.msk [vmem:[#allocation2 + $0x48] sm:$0xff] %vm409_vm0, %v2819_v35 }
  0x6d   : > { %439 = vst.msk [vmem:[#allocation2 + $0xe8] sm:$0xff] %vm409_vm0, %v3003_v36 }
  0x6e   : > { %v515_v40 = vpop.permute.xlu2 %514 }
  0x6f   : > { %607 = vst.msk [vmem:[#allocation2 + $0x20] sm:$0xff] %vm602_vm1, %v515_v40  ;;  %v2824_v40 = vld [vmem:[%s2510_s25 + $0x78] sm:$0xff] }
  0x70   : > { %420 = vst.msk [vmem:[#allocation2 + $0x50] sm:$0xff] %vm409_vm0, %v2824_v40 }
  0x73   : > { %707 = vrot.lane.b32.xlu0 %v2694_v38, %s2446_s27  ;;  %709 = vrot.lane.b32.xlu1 %v2697_v39, %s2446_s27  ;;  %v2976_v39 = vld [vmem:[%s2510_s25 + $0x15a] sm:$0xff] }
  0x74   : > { %711 = vrot.lane.b32.xlu2 %v2708_v41, %s2446_s27  ;;  %v2973_v41 = vld [vmem:[%s2510_s25 + $0x152] sm:$0xff]  ;;  %3754 = vst [vmem:[#allocation29_spill] sm:$0xff] %v2976_v39 }
  0x75   : > { %3753 = vst [vmem:[#allocation28_spill] sm:$0xff] %v2973_v41 }
  0x76   : > { %v517_v44 = vpop.permute.xlu2 %516 }
  0x77   : > { %608 = vst.msk [vmem:[#allocation2 + $0x28] sm:$0xff] %vm602_vm1, %v517_v44 }
  0x7b   : > { %713 = vrot.lane.b32.xlu0 %v2717_v42, %s2446_s27  ;;  %715 = vrot.lane.b32.xlu1 %v643_v43, %s2446_s27  ;;  %v2832_v43 = vld [vmem:[%s2510_s25 + $0xda] sm:$0xff] }
  0x7c   : > { %717 = vrot.lane.b32.xlu2 %v2728_v45, %s2446_s27  ;;  %3743 = vst [vmem:[#allocation18_spill] sm:$0xff] %v2832_v43  ;;  %v2960_v42 = vld [vmem:[%s2510_s25 + $0x120] sm:$0xff] }
  0x7d   : > { %434 = vst.msk [vmem:[#allocation2 + $0xc0] sm:$0xff] %vm409_vm0, %v2960_v42 }
  0x7e   : > { %v523_v48 = vpop.permute.xlu2 %522 }
  0x7f   : > { %611 = vst.msk [vmem:[#allocation2 + $0x40] sm:$0xff] %vm602_vm1, %v523_v48  ;;  %v2846_v48 = vld [vmem:[%s2510_s25 + $0x90] sm:$0xff] }
  0x80   : > { %422 = vst.msk [vmem:[#allocation2 + $0x60] sm:$0xff] %vm409_vm0, %v2846_v48 }
  0x83   : > { %719 = vrot.lane.b32.xlu0 %v2737_v46, %s2446_s27  ;;  %721 = vrot.lane.b32.xlu1 %v2741_v47, %s2446_s27  ;;  %v2921_v47 = vld [vmem:[%s2510_s25 + $0xf0] sm:$0xff]  ;;  %v2939_v46 = vld [vmem:[%s2510_s25 + $0x108] sm:$0xff] }
  0x84   : > { %723 = vrot.lane.b32.xlu2 %v2754_v50, %s2446_s27  ;;  %430 = vst.msk [vmem:[#allocation2 + $0xa0] sm:$0xff] %vm409_vm0, %v2921_v47 }
  0x85   : > { %v507_v51 = vpop.permute.xlu0 %506  ;;  %v511_v52 = vpop.permute.xlu1 %510  ;;  %432 = vst.msk [vmem:[#allocation2 + $0xb0] sm:$0xff] %vm409_vm0, %v2939_v46 }
  0x86   : > { %603 = vst.msk [vmem:[#allocation2] sm:$0xff] %vm602_vm1, %v507_v51  ;;  %v529_v58 = vpop.permute.xlu2 %528 }
  0x87   : > { %605 = vst.msk [vmem:[#allocation2 + $0x10] sm:$0xff] %vm602_vm1, %v511_v52  ;;  %v2839_v52 = vld [vmem:[%s2510_s25 + $0x80] sm:$0xff] }
  0x88   : > { %421 = vst.msk [vmem:[#allocation2 + $0x58] sm:$0xff] %vm409_vm0, %v2839_v52 }
  0x89   : > { %614 = vst.msk [vmem:[#allocation2 + $0x58] sm:$0xff] %vm602_vm1, %v529_v58 }
  0x8b   : > { %725 = vrot.lane.b32.xlu0 %v2768_v55, %s2446_s27  ;;  %727 = vrot.lane.b32.xlu1 %v2773_v56, %s2446_s27  ;;  %v2894_v56 = vld [vmem:[%s2510_s25 + $0x112] sm:$0xff] }
  0x8c   : > { %729 = vrot.lane.b32.xlu2 %v2790_v60, %s2446_s27  ;;  %v2891_v60 = vld [vmem:[%s2510_s25 + $0x10a] sm:$0xff]  ;;  %3748 = vst [vmem:[#allocation23_spill] sm:$0xff] %v2894_v56 }
  0x8d   : > { %v509_v61 = vpop.permute.xlu0 %508  ;;  %v513_v62 = vpop.permute.xlu1 %512  ;;  %3747 = vst [vmem:[#allocation22_spill] sm:$0xff] %v2891_v60 }
  0x8e   : > { %604 = vst.msk [vmem:[#allocation2 + $0x8] sm:$0xff] %vm602_vm1, %v509_v61  ;;  %v535_v34 = vpop.permute.xlu2 %534  ;;  %v2852_v61 = vld [vmem:[%s2510_s25 + $0xf2] sm:$0xff] }
  0x8f   : > { %606 = vst.msk [vmem:[#allocation2 + $0x18] sm:$0xff] %vm602_vm1, %v513_v62  ;;  %v2857_v62 = vld [vmem:[%s2510_s25 + $0x98] sm:$0xff] }
  0x90   : > { %3745 = vst [vmem:[#allocation20_spill] sm:$0xff] %v2852_v61 }
  0x91   : > { %423 = vst.msk [vmem:[#allocation2 + $0x68] sm:$0xff] %vm409_vm0, %v2857_v62 }
  0x93   : > { %731 = vrot.lane.b32.xlu0 %v2809_v32, %s2446_s27  ;;  %733 = vrot.lane.b32.xlu1 %v2814_v33, %s2446_s27  ;;  %v2878_v32 = vld [vmem:[%s2510_s25 + $0xb0] sm:$0xff] }
  0x94   : > { %735 = vrot.lane.b32.xlu2 %v2832_v43, %s2446_s27  ;;  %425 = vst.msk [vmem:[#allocation2 + $0x78] sm:$0xff] %vm409_vm0, %v2878_v32 }
  0x95   : > { %v519_v44 = vpop.permute.xlu0 %518  ;;  %v521_v51 = vpop.permute.xlu1 %520 }
  0x96   : > { %609 = vst.msk [vmem:[#allocation2 + $0x30] sm:$0xff] %vm602_vm1, %v519_v44  ;;  %v541_v33 = vpop.permute.xlu2 %540  ;;  %v2861_v44 = vld [vmem:[%s2510_s25 + $0xa8] sm:$0xff] }
  0x97   : > { %610 = vst.msk [vmem:[#allocation2 + $0x38] sm:$0xff] %vm602_vm1, %v521_v51  ;;  %v2872_v51 = vld [vmem:[%s2510_s25 + $0xfa] sm:$0xff] }
  0x98   : > { %3746 = vst [vmem:[#allocation21_spill] sm:$0xff] %v2872_v51 }
  0x99   : > { %424 = vst.msk [vmem:[#allocation2 + $0x70] sm:$0xff] %vm409_vm0, %v2861_v44 }
  0x9a   : > { %617 = vst.msk [vmem:[#allocation2 + $0x70] sm:$0xff] %vm602_vm1, %v535_v34 }
  0x9b   : > { %737 = vrot.lane.b32.xlu0 %v2849_v54, %s2446_s27  ;;  %739 = vrot.lane.b32.xlu1 %v2852_v61, %s2446_s27  ;;  %v2882_v61 = vld [vmem:[%s2510_s25 + $0xc0] sm:$0xff]  ;;  %v2888_v54 = vld [vmem:[%s2510_s25 + $0xc8] sm:$0xff] }
  0x9c   : > { %741 = vrot.lane.b32.xlu2 %v2872_v51, %s2446_s27  ;;  %426 = vst.msk [vmem:[#allocation2 + $0x80] sm:$0xff] %vm409_vm0, %v2882_v61  ;;  %v2914_v51 = vld [vmem:[%s2510_s25 + $0x122] sm:$0xff] }
  0x9d   : > { %v525_v58 = vpop.permute.xlu0 %524  ;;  %v527_v43 = vpop.permute.xlu1 %526  ;;  %427 = vst.msk [vmem:[#allocation2 + $0x88] sm:$0xff] %vm409_vm0, %v2888_v54 }
  0x9e   : > { %612 = vst.msk [vmem:[#allocation2 + $0x48] sm:$0xff] %vm602_vm1, %v525_v58  ;;  %v547_v34 = vpop.permute.xlu2 %546  ;;  %v2901_v58 = vld [vmem:[%s2510_s25 + $0xd8] sm:$0xff] }
  0x9f   : > { %613 = vst.msk [vmem:[#allocation2 + $0x50] sm:$0xff] %vm602_vm1, %v527_v43  ;;  %v2906_v43 = vld [vmem:[%s2510_s25 + $0xe0] sm:$0xff] }
  0xa0   : > { %620 = vst.msk [vmem:[#allocation2 + $0x88] sm:$0xff] %vm602_vm1, %v541_v33  ;;  %v2928_v33 = vld [vmem:[%s2510_s25 + $0xf8] sm:$0xff] }
  0xa1   : > { %3749 = vst [vmem:[#allocation24_spill] sm:$0xff] %v2914_v51 }
  0xa2   : > { %428 = vst.msk [vmem:[#allocation2 + $0x90] sm:$0xff] %vm409_vm0, %v2901_v58 }
  0xa3   : > { %743 = vrot.lane.b32.xlu0 %v2891_v60, %s2446_s27  ;;  %745 = vrot.lane.b32.xlu1 %v2894_v56, %s2446_s27  ;;  %429 = vst.msk [vmem:[#allocation2 + $0x98] sm:$0xff] %vm409_vm0, %v2906_v43  ;;  %v2931_v56 = vld [vmem:[%s2510_s25 + $0x12a] sm:$0xff]  ;;  %v2934_v60 = vld [vmem:[%s2510_s25 + $0x13a] sm:$0xff] }
  0xa4   : > { %747 = vrot.lane.b32.xlu2 %v2914_v51, %s2446_s27  ;;  %3750 = vst [vmem:[#allocation25_spill] sm:$0xff] %v2931_v56 }
  0xa5   : > { %v531_v55 = vpop.permute.xlu0 %530  ;;  %v533_v50 = vpop.permute.xlu1 %532  ;;  %3751 = vst [vmem:[#allocation26_spill] sm:$0xff] %v2934_v60 }
  0xa6   : > { %615 = vst.msk [vmem:[#allocation2 + $0x60] sm:$0xff] %vm602_vm1, %v531_v55  ;;  %v553_v45 = vpop.permute.xlu2 %552  ;;  %v2943_v55 = vld [vmem:[%s2510_s25 + $0x110] sm:$0xff] }
  0xa7   : > { %616 = vst.msk [vmem:[#allocation2 + $0x68] sm:$0xff] %vm602_vm1, %v533_v50  ;;  %v2954_v50 = vld [vmem:[%s2510_s25 + $0x142] sm:$0xff] }
  0xa8   : > { %623 = vst.msk [vmem:[#allocation2 + $0xa0] sm:$0xff] %vm602_vm1, %v547_v34 }
  0xa9   : > { %431 = vst.msk [vmem:[#allocation2 + $0xa8] sm:$0xff] %vm409_vm0, %v2928_v33 }
  0xaa   : > { %3752 = vst [vmem:[#allocation27_spill] sm:$0xff] %v2954_v50 }
  0xab   : > { %749 = vrot.lane.b32.xlu0 %v2931_v56, %s2446_s27  ;;  %751 = vrot.lane.b32.xlu1 %v2934_v60, %s2446_s27  ;;  %433 = vst.msk [vmem:[#allocation2 + $0xb8] sm:$0xff] %vm409_vm0, %v2943_v55  ;;  %v2966_v60 = vld [vmem:[%s2510_s25 + $0x128] sm:$0xff]  ;;  %v2970_v56 = vld [vmem:[%s2510_s25 + $0x138] sm:$0xff] }
  0xac   : > { %626 = vst.msk [vmem:[#allocation2 + $0xb8] sm:$0xff] %vm602_vm1, %v553_v45  ;;  %753 = vrot.lane.b32.xlu2 %v2954_v50, %s2446_s27  ;;  %v2996_v50 = vld [vmem:[%s2510_s25 + $0x150] sm:$0xff] }
  0xad   : > { %v537_v34 = vpop.permute.xlu0 %536  ;;  %v539_v51 = vpop.permute.xlu1 %538  ;;  %435 = vst.msk [vmem:[#allocation2 + $0xc8] sm:$0xff] %vm409_vm0, %v2966_v60 }
  0xae   : > { %618 = vst.msk [vmem:[#allocation2 + $0x78] sm:$0xff] %vm602_vm1, %v537_v34  ;;  %v559_v45 = vpop.permute.xlu2 %558  ;;  %v2983_v34 = vld [vmem:[%s2510_s25 + $0x140] sm:$0xff] }
  0xaf   : > { %619 = vst.msk [vmem:[#allocation2 + $0x80] sm:$0xff] %vm602_vm1, %v539_v51  ;;  %v2993_v51 = vld [vmem:[%s2510_s25 + $0x16a] sm:$0xff] }
  0xb0   : > { %436 = vst.msk [vmem:[#allocation2 + $0xd0] sm:$0xff] %vm409_vm0, %v2970_v56 }
  0xb1   : > { %629 = vst.msk [vmem:[#allocation2 + $0xd0] sm:$0xff] %vm602_vm1, %v559_v45  ;;  %v3010_v45 = vld [vmem:[%s2510_s25 + $0x168] sm:$0xff] }
  0xb2   : > { %3755 = vst [vmem:[#allocation30_spill] sm:$0xff] %v2993_v51 }
  0xb3   : > { %755 = vrot.lane.b32.xlu0 %v2973_v41, %s2446_s27  ;;  %757 = vrot.lane.b32.xlu1 %v2976_v39, %s2446_s27  ;;  %437 = vst.msk [vmem:[#allocation2 + $0xd8] sm:$0xff] %vm409_vm0, %v2983_v34  ;;  %v3013_v39 = vld [vmem:[%s2510_s25 + $0x172] sm:$0xff] }
  0xb4   : > { %438 = vst.msk [vmem:[#allocation2 + $0xe0] sm:$0xff] %vm409_vm0, %v2996_v50  ;;  %759 = vrot.lane.b32.xlu2 %v2993_v51, %s2446_s27 }
  0xb5   : > { %v543_v38 = vpop.permute.xlu0 %542  ;;  %v545_v37 = vpop.permute.xlu1 %544  ;;  %3756 = vst [vmem:[#allocation31_spill] sm:$0xff] %v3013_v39 }
  0xb6   : > { %621 = vst.msk [vmem:[#allocation2 + $0x90] sm:$0xff] %vm602_vm1, %v543_v38  ;;  %v565_v41 = vpop.permute.xlu2 %564 }
  0xb7   : > { %622 = vst.msk [vmem:[#allocation2 + $0x98] sm:$0xff] %vm602_vm1, %v545_v37  ;;  %v3025_v37 = vld [vmem:[%s2510_s25 + $0x170] sm:$0xff] }
  0xb8   : > { %632 = vst.msk [vmem:[#allocation2 + $0xe8] sm:$0xff] %vm602_vm1, %v565_v41 }
  0xb9   : > { %440 = vst.msk [vmem:[#allocation2 + $0xf0] sm:$0xff] %vm409_vm0, %v3010_v45 }
  0xba   : > { %441 = vst.msk [vmem:[#allocation2 + $0xf8] sm:$0xff] %vm409_vm0, %v3025_v37 }
  0xbb   : > { %761 = vrot.lane.b32.xlu0 %v3013_v39, %s2446_s27  ;;  %889 = vrot.lane.b32.xlu1 %v2746_v49, %s2447_s28 }
  0xbc   : > { %891 = vrot.lane.b32.xlu2 %v2776_v57, %s2447_s28 }
  0xbd   : > { %v549_v38 = vpop.permute.xlu0 %548  ;;  %v551_v51 = vpop.permute.xlu1 %550 }
  0xbe   : > { %624 = vst.msk [vmem:[#allocation2 + $0xa8] sm:$0xff] %vm602_vm1, %v549_v38  ;;  %v700_v41 = vpop.permute.xlu2 %699 }
  0xbf   : > { %625 = vst.msk [vmem:[#allocation2 + $0xb0] sm:$0xff] %vm602_vm1, %v551_v51 }
  0xc0   : > { %796 = vst.msk [vmem:[#allocation2] sm:$0xff] %vm795_vm2, %v700_v41 }
  0xc3   : > { %893 = vrot.lane.b32.xlu0 %v2760_v53, %s2447_s28  ;;  %895 = vrot.lane.b32.xlu1 %v2780_v59, %s2447_s28 }
  0xc4   : > { %897 = vrot.lane.b32.xlu2 %v2796_v63, %s2447_s28 }
  0xc5   : > { %v555_v49 = vpop.permute.xlu0 %554  ;;  %v557_v39 = vpop.permute.xlu1 %556 }
  0xc6   : > { %627 = vst.msk [vmem:[#allocation2 + $0xc0] sm:$0xff] %vm602_vm1, %v555_v49  ;;  %v706_v57 = vpop.permute.xlu2 %705 }
  0xc7   : > { %628 = vst.msk [vmem:[#allocation2 + $0xc8] sm:$0xff] %vm602_vm1, %v557_v39 }
  0xc8   : > { %799 = vst.msk [vmem:[#allocation2 + $0x18] sm:$0xff] %vm795_vm2, %v706_v57 }
  0xcb   : > { %899 = vrot.lane.b32.xlu0 %v2800_v0, %s2447_s28  ;;  %901 = vrot.lane.b32.xlu1 %v2806_v3, %s2447_s28 }
  0xcc   : > { %903 = vrot.lane.b32.xlu2 %v2819_v35, %s2447_s28 }
  0xcd   : > { %v561_v53 = vpop.permute.xlu0 %560  ;;  %v563_v59 = vpop.permute.xlu1 %562 }
  0xce   : > { %630 = vst.msk [vmem:[#allocation2 + $0xd8] sm:$0xff] %vm602_vm1, %v561_v53  ;;  %v712_v51 = vpop.permute.xlu2 %711 }
  0xcf   : > { %631 = vst.msk [vmem:[#allocation2 + $0xe0] sm:$0xff] %vm602_vm1, %v563_v59 }
  0xd0   : > { %802 = vst.msk [vmem:[#allocation2 + $0x30] sm:$0xff] %vm795_vm2, %v712_v51 }
  0xd3   : > { %905 = vrot.lane.b32.xlu0 %v2824_v40, %s2447_s28  ;;  %907 = vrot.lane.b32.xlu1 %v2839_v52, %s2447_s28 }
  0xd4   : > { %909 = vrot.lane.b32.xlu2 %v2846_v48, %s2447_s28 }
  0xd5   : > { %v567_v39 = vpop.permute.xlu0 %566  ;;  %v569_v3 = vpop.permute.xlu1 %568 }
  0xd6   : > { %633 = vst.msk [vmem:[#allocation2 + $0xf0] sm:$0xff] %vm602_vm1, %v567_v39  ;;  %v718_v38 = vpop.permute.xlu2 %717 }
  0xd7   : > { %634 = vst.msk [vmem:[#allocation2 + $0xf8] sm:$0xff] %vm602_vm1, %v569_v3 }
  0xd8   : > { %805 = vst.msk [vmem:[#allocation2 + $0x48] sm:$0xff] %vm795_vm2, %v718_v38 }
  0xdb   : > { %911 = vrot.lane.b32.xlu0 %v2857_v62, %s2447_s28  ;;  %913 = vrot.lane.b32.xlu1 %v2861_v44, %s2447_s28 }
  0xdc   : > { %915 = vrot.lane.b32.xlu2 %v2878_v32, %s2447_s28 }
  0xdd   : > { %v702_v41 = vpop.permute.xlu0 %701  ;;  %v704_v52 = vpop.permute.xlu1 %703 }
  0xde   : > { %797 = vst.msk [vmem:[#allocation2 + $0x8] sm:$0xff] %vm795_vm2, %v702_v41  ;;  %v724_v49 = vpop.permute.xlu2 %723 }
  0xdf   : > { %798 = vst.msk [vmem:[#allocation2 + $0x10] sm:$0xff] %vm795_vm2, %v704_v52 }
  0xe0   : > { %808 = vst.msk [vmem:[#allocation2 + $0x60] sm:$0xff] %vm795_vm2, %v724_v49 }
  0xe3   : > { %917 = vrot.lane.b32.xlu0 %v2882_v61, %s2447_s28  ;;  %919 = vrot.lane.b32.xlu1 %v2888_v54, %s2447_s28 }
  0xe4   : > { %921 = vrot.lane.b32.xlu2 %v2901_v58, %s2447_s28 }
  0xe5   : > { %v708_v57 = vpop.permute.xlu0 %707  ;;  %v710_v44 = vpop.permute.xlu1 %709 }
  0xe6   : > { %800 = vst.msk [vmem:[#allocation2 + $0x20] sm:$0xff] %vm795_vm2, %v708_v57  ;;  %v730_v53 = vpop.permute.xlu2 %729 }
  0xe7   : > { %801 = vst.msk [vmem:[#allocation2 + $0x28] sm:$0xff] %vm795_vm2, %v710_v44 }
  0xe8   : > { %811 = vst.msk [vmem:[#allocation2 + $0x78] sm:$0xff] %vm795_vm2, %v730_v53  ;;  %v3230_v53 = vld [vmem:[%s3115_s7 + $0x9] sm:$0xff] }
  0xeb   : > { %923 = vrot.lane.b32.xlu0 %v2906_v43, %s2447_s28  ;;  %925 = vrot.lane.b32.xlu1 %v2921_v47, %s2447_s28 }
  0xec   : > { %927 = vrot.lane.b32.xlu2 %v2928_v33, %s2447_s28 }
  0xed   : > { %v714_v59 = vpop.permute.xlu0 %713  ;;  %v716_v54 = vpop.permute.xlu1 %715 }
  0xee   : > { %803 = vst.msk [vmem:[#allocation2 + $0x38] sm:$0xff] %vm795_vm2, %v714_v59  ;;  %v736_v51 = vpop.permute.xlu2 %735 }
  0xef   : > { %804 = vst.msk [vmem:[#allocation2 + $0x40] sm:$0xff] %vm795_vm2, %v716_v54 }
  0xf0   : > { %814 = vst.msk [vmem:[#allocation2 + $0x90] sm:$0xff] %vm795_vm2, %v736_v51  ;;  %v3758_v51 = vld [vmem:[#allocation4_spill] sm:$0xff] }
  0xf3   : > { %929 = vrot.lane.b32.xlu0 %v2939_v46, %s2447_s28  ;;  %931 = vrot.lane.b32.xlu1 %v2943_v55, %s2447_s28 }
  0xf4   : > { %933 = vrot.lane.b32.xlu2 %v2960_v42, %s2447_s28 }
  0xf5   : > { %v720_v39 = vpop.permute.xlu0 %719  ;;  %v722_v47 = vpop.permute.xlu1 %721 }
  0xf6   : > { %806 = vst.msk [vmem:[#allocation2 + $0x50] sm:$0xff] %vm795_vm2, %v720_v39  ;;  %v742_v3 = vpop.permute.xlu2 %741  ;;  %v3759_v39 = vld [vmem:[#allocation5_spill] sm:$0xff] }
  0xf7   : > { %807 = vst.msk [vmem:[#allocation2 + $0x58] sm:$0xff] %vm795_vm2, %v722_v47 }
  0xf8   : > { %817 = vst.msk [vmem:[#allocation2 + $0xa8] sm:$0xff] %vm795_vm2, %v742_v3 }
  0xfb   : > { %935 = vrot.lane.b32.xlu0 %v2966_v60, %s2447_s28  ;;  %937 = vrot.lane.b32.xlu1 %v2970_v56, %s2447_s28 }
  0xfc   : > { %939 = vrot.lane.b32.xlu2 %v2983_v34, %s2447_s28 }
  0xfd   : > { %v726_v55 = vpop.permute.xlu0 %725  ;;  %v728_v38 = vpop.permute.xlu1 %727 }
  0xfe   : > { %809 = vst.msk [vmem:[#allocation2 + $0x68] sm:$0xff] %vm795_vm2, %v726_v55  ;;  %v748_v42 = vpop.permute.xlu2 %747  ;;  %v3760_v55 = vld [vmem:[#allocation6_spill] sm:$0xff] }
  0xff   : > { %810 = vst.msk [vmem:[#allocation2 + $0x70] sm:$0xff] %vm795_vm2, %v728_v38 }
 0x100   : > { %820 = vst.msk [vmem:[#allocation2 + $0xc0] sm:$0xff] %vm795_vm2, %v748_v42  ;;  %v3761_v42 = vld [vmem:[#allocation7_spill] sm:$0xff] }
 0x103   : > { %941 = vrot.lane.b32.xlu0 %v2996_v50, %s2447_s28  ;;  %943 = vrot.lane.b32.xlu1 %v3003_v36, %s2447_s28  ;;  %v3122_v50 = vld [vmem:[%s3115_s7] sm:$0xff]  ;;  %v3130_v36 = vld [vmem:[%s3115_s7 + $0x8] sm:$0xff] }
 0x104   : > { %945 = vrot.lane.b32.xlu2 %v3010_v45, %s2447_s28 }
 0x105   : > { %v732_v56 = vpop.permute.xlu0 %731  ;;  %v734_v60 = vpop.permute.xlu1 %733 }
 0x106   : > { %812 = vst.msk [vmem:[#allocation2 + $0x80] sm:$0xff] %vm795_vm2, %v732_v56  ;;  %v754_v34 = vpop.permute.xlu2 %753  ;;  %v3762_v56 = vld [vmem:[#allocation8_spill] sm:$0xff] }
 0x107   : > { %813 = vst.msk [vmem:[#allocation2 + $0x88] sm:$0xff] %vm795_vm2, %v734_v60  ;;  %v3256_v60 = vld [vmem:[%s2510_s25 + $0x62] sm:$0xff] }
 0x108   : > { %823 = vst.msk [vmem:[#allocation2 + $0xd8] sm:$0xff] %vm795_vm2, %v754_v34 }
 0x10b   : > { %947 = vrot.lane.b32.xlu0 %v3025_v37, %s2447_s28  ;;  %1014 = vrot.lane.b32.xlu1 %v3122_v50, %s2447_s28 }
 0x10c   : > { %1016 = vrot.lane.b32.xlu2 %v3130_v36, %s2447_s28 }
 0x10d   : > { %v738_v41 = vpop.permute.xlu0 %737  ;;  %v740_v52 = vpop.permute.xlu1 %739 }
 0x10e   : > { %815 = vst.msk [vmem:[#allocation2 + $0x98] sm:$0xff] %vm795_vm2, %v738_v41  ;;  %v760_v45 = vpop.permute.xlu2 %759 }
 0x10f   : > { %816 = vst.msk [vmem:[#allocation2 + $0xa0] sm:$0xff] %vm795_vm2, %v740_v52 }
 0x110   : > { %826 = vst.msk [vmem:[#allocation2 + $0xf0] sm:$0xff] %vm795_vm2, %v760_v45  ;;  %v3763_v45 = vld [vmem:[#allocation9_spill] sm:$0xff] }
 0x113   : > { %1082 = vrot.lane.b32.xlu0 %v2514_v1, %s2448_s8  ;;  %1084 = vrot.lane.b32.xlu1 %v2526_v4, %s2448_s8 }
 0x114   : > { %1086 = vrot.lane.b32.xlu2 %v2520_v2, %s2448_s8 }
 0x115   : > { %v744_v49 = vpop.permute.xlu0 %743  ;;  %v746_v57 = vpop.permute.xlu1 %745 }
 0x116   : > { %818 = vst.msk [vmem:[#allocation2 + $0xb0] sm:$0xff] %vm795_vm2, %v744_v49  ;;  %v892_v44 = vpop.permute.xlu2 %891  ;;  %v3764_v49 = vld [vmem:[#allocation10_spill] sm:$0xff] }
 0x117   : > { %819 = vst.msk [vmem:[#allocation2 + $0xb8] sm:$0xff] %vm795_vm2, %v746_v57 }
 0x118   : > { %981 = vst.msk [vmem:[#allocation2 + $0x8] sm:$0xff] %vm979_vm3, %v892_v44 }
 0x11b   : > { %1088 = vrot.lane.b32.xlu0 %v2532_v5, %s2448_s8  ;;  %1090 = vrot.lane.b32.xlu1 %v2537_v6, %s2448_s8 }
 0x11c   : > { %1092 = vrot.lane.b32.xlu2 %v2540_v7, %s2448_s8 }
 0x11d   : > { %v750_v1 = vpop.permute.xlu0 %749  ;;  %v752_v4 = vpop.permute.xlu1 %751 }
 0x11e   : > { %821 = vst.msk [vmem:[#allocation2 + $0xc8] sm:$0xff] %vm795_vm2, %v750_v1  ;;  %v898_v2 = vpop.permute.xlu2 %897  ;;  %v3765_v1 = vld [vmem:[#allocation11_spill] sm:$0xff] }
 0x11f   : > { %822 = vst.msk [vmem:[#allocation2 + $0xd0] sm:$0xff] %vm795_vm2, %v752_v4 }
 0x120   : > { %984 = vst.msk [vmem:[#allocation2 + $0x20] sm:$0xff] %vm979_vm3, %v898_v2  ;;  %v3766_v2 = vld [vmem:[#allocation12_spill] sm:$0xff] }
 0x123   : > { %1094 = vrot.lane.b32.xlu0 %v2547_v8, %s2448_s8  ;;  %1096 = vrot.lane.b32.xlu1 %v2552_v9, %s2448_s8 }
 0x124   : > { %1098 = vrot.lane.b32.xlu2 %v2555_v10, %s2448_s8 }
 0x125   : > { %v756_v5 = vpop.permute.xlu0 %755  ;;  %v758_v6 = vpop.permute.xlu1 %757 }
 0x126   : > { %824 = vst.msk [vmem:[#allocation2 + $0xe0] sm:$0xff] %vm795_vm2, %v756_v5  ;;  %v904_v7 = vpop.permute.xlu2 %903  ;;  %v3767_v5 = vld [vmem:[#allocation13_spill] sm:$0xff] }
 0x127   : > { %825 = vst.msk [vmem:[#allocation2 + $0xe8] sm:$0xff] %vm795_vm2, %v758_v6 }
 0x128   : > { %987 = vst.msk [vmem:[#allocation2 + $0x38] sm:$0xff] %vm979_vm3, %v904_v7 }
 0x12b   : > { %1100 = vrot.lane.b32.xlu0 %v2562_v11, %s2448_s8  ;;  %1102 = vrot.lane.b32.xlu1 %v2567_v12, %s2448_s8 }
 0x12c   : > { %1104 = vrot.lane.b32.xlu2 %v2570_v13, %s2448_s8 }
 0x12d   : > { %v762_v8 = vpop.permute.xlu0 %761  ;;  %v890_v9 = vpop.permute.xlu1 %889 }
 0x12e   : > { %827 = vst.msk [vmem:[#allocation2 + $0xf8] sm:$0xff] %vm795_vm2, %v762_v8  ;;  %v910_v10 = vpop.permute.xlu2 %909  ;;  %v3768_v8 = vld [vmem:[#allocation14_spill] sm:$0xff] }
 0x12f   : > { %980 = vst.msk [vmem:[#allocation2] sm:$0xff] %vm979_vm3, %v890_v9 }
 0x130   : > { %990 = vst.msk [vmem:[#allocation2 + $0x50] sm:$0xff] %vm979_vm3, %v910_v10  ;;  %v3769_v10 = vld [vmem:[#allocation15_spill] sm:$0xff] }
 0x133   : > { %1106 = vrot.lane.b32.xlu0 %v2577_v14, %s2448_s8  ;;  %1108 = vrot.lane.b32.xlu1 %v2582_v15, %s2448_s8 }
 0x134   : > { %1110 = vrot.lane.b32.xlu2 %v2585_v16, %s2448_s8 }
 0x135   : > { %v894_v11 = vpop.permute.xlu0 %893  ;;  %v896_v12 = vpop.permute.xlu1 %895 }
 0x136   : > { %982 = vst.msk [vmem:[#allocation2 + $0x10] sm:$0xff] %vm979_vm3, %v894_v11  ;;  %v916_v13 = vpop.permute.xlu2 %915  ;;  %v3770_v11 = vld [vmem:[#allocation16_spill] sm:$0xff] }
 0x137   : > { %983 = vst.msk [vmem:[#allocation2 + $0x18] sm:$0xff] %vm979_vm3, %v896_v12 }
 0x138   : > { %993 = vst.msk [vmem:[#allocation2 + $0x68] sm:$0xff] %vm979_vm3, %v916_v13 }
 0x13b   : > { %1112 = vrot.lane.b32.xlu0 %v2592_v17, %s2448_s8  ;;  %1114 = vrot.lane.b32.xlu1 %v2597_v18, %s2448_s8 }
 0x13c   : > { %1116 = vrot.lane.b32.xlu2 %v2600_v19, %s2448_s8 }
 0x13d   : > { %v900_v14 = vpop.permute.xlu0 %899  ;;  %v902_v15 = vpop.permute.xlu1 %901 }
 0x13e   : > { %985 = vst.msk [vmem:[#allocation2 + $0x28] sm:$0xff] %vm979_vm3, %v900_v14  ;;  %v922_v16 = vpop.permute.xlu2 %921  ;;  %v3771_v14 = vld [vmem:[#allocation17_spill] sm:$0xff] }
 0x13f   : > { %986 = vst.msk [vmem:[#allocation2 + $0x30] sm:$0xff] %vm979_vm3, %v902_v15 }
 0x140   : > { %996 = vst.msk [vmem:[#allocation2 + $0x80] sm:$0xff] %vm979_vm3, %v922_v16  ;;  %v3772_v16 = vld [vmem:[#allocation18_spill] sm:$0xff] }
 0x143   : > { %1118 = vrot.lane.b32.xlu0 %v2607_v20, %s2448_s8  ;;  %1120 = vrot.lane.b32.xlu1 %v2612_v21, %s2448_s8 }
 0x144   : > { %1122 = vrot.lane.b32.xlu2 %v2615_v22, %s2448_s8 }
 0x145   : > { %v906_v17 = vpop.permute.xlu0 %905  ;;  %v908_v18 = vpop.permute.xlu1 %907 }
 0x146   : > { %988 = vst.msk [vmem:[#allocation2 + $0x40] sm:$0xff] %vm979_vm3, %v906_v17  ;;  %v928_v19 = vpop.permute.xlu2 %927  ;;  %v3773_v17 = vld [vmem:[#allocation19_spill] sm:$0xff] }
 0x147   : > { %989 = vst.msk [vmem:[#allocation2 + $0x48] sm:$0xff] %vm979_vm3, %v908_v18 }
 0x148   : > { %999 = vst.msk [vmem:[#allocation2 + $0x98] sm:$0xff] %vm979_vm3, %v928_v19 }
 0x14b   : > { %1124 = vrot.lane.b32.xlu0 %v2622_v23, %s2448_s8  ;;  %1126 = vrot.lane.b32.xlu1 %v2627_v24, %s2448_s8 }
 0x14c   : > { %1128 = vrot.lane.b32.xlu2 %v2630_v25, %s2448_s8 }
 0x14d   : > { %v912_v20 = vpop.permute.xlu0 %911  ;;  %v914_v21 = vpop.permute.xlu1 %913 }
 0x14e   : > { %991 = vst.msk [vmem:[#allocation2 + $0x58] sm:$0xff] %vm979_vm3, %v912_v20  ;;  %v934_v22 = vpop.permute.xlu2 %933  ;;  %v3774_v20 = vld [vmem:[#allocation20_spill] sm:$0xff] }
 0x14f   : > { %992 = vst.msk [vmem:[#allocation2 + $0x60] sm:$0xff] %vm979_vm3, %v914_v21 }
 0x150   : > { %1002 = vst.msk [vmem:[#allocation2 + $0xb0] sm:$0xff] %vm979_vm3, %v934_v22  ;;  %v3775_v22 = vld [vmem:[#allocation21_spill] sm:$0xff] }
 0x153   : > { %1130 = vrot.lane.b32.xlu0 %v2637_v26, %s2448_s8  ;;  %1132 = vrot.lane.b32.xlu1 %v2642_v27, %s2448_s8 }
 0x154   : > { %1134 = vrot.lane.b32.xlu2 %v2645_v28, %s2448_s8  ;;  %v3227_v28 = vld [vmem:[%s3115_s7 + $0x1] sm:$0xff] }
 0x155   : > { %v918_v23 = vpop.permute.xlu0 %917  ;;  %v920_v24 = vpop.permute.xlu1 %919 }
 0x156   : > { %994 = vst.msk [vmem:[#allocation2 + $0x70] sm:$0xff] %vm979_vm3, %v918_v23  ;;  %v940_v25 = vpop.permute.xlu2 %939  ;;  %v3776_v23 = vld [vmem:[#allocation22_spill] sm:$0xff] }
 0x157   : > { %995 = vst.msk [vmem:[#allocation2 + $0x78] sm:$0xff] %vm979_vm3, %v920_v24 }
 0x158   : > { %1005 = vst.msk [vmem:[#allocation2 + $0xc8] sm:$0xff] %vm979_vm3, %v940_v25 }
 0x15b   : > { %1136 = vrot.lane.b32.xlu0 %v2652_v29, %s2448_s8  ;;  %1138 = vrot.lane.b32.xlu1 %v2657_v30, %s2448_s8 }
 0x15c   : > { %1140 = vrot.lane.b32.xlu2 %v2660_v31, %s2448_s8  ;;  %v3757_v31 = vld [vmem:[#allocation3_spill] sm:$0xff] }
 0x15d   : > { %v924_v26 = vpop.permute.xlu0 %923  ;;  %v926_v27 = vpop.permute.xlu1 %925 }
 0x15e   : > { %997 = vst.msk [vmem:[#allocation2 + $0x88] sm:$0xff] %vm979_vm3, %v924_v26  ;;  %v946_v59 = vpop.permute.xlu2 %945  ;;  %v3777_v26 = vld [vmem:[#allocation23_spill] sm:$0xff] }
 0x15f   : > { %998 = vst.msk [vmem:[#allocation2 + $0x90] sm:$0xff] %vm979_vm3, %v926_v27 }
 0x160   : > { %1008 = vst.msk [vmem:[#allocation2 + $0xe0] sm:$0xff] %vm979_vm3, %v946_v59  ;;  %v3778_v59 = vld [vmem:[#allocation24_spill] sm:$0xff] }
 0x163   : > { %1207 = vrot.lane.b32.xlu0 %v3227_v28, %s2448_s8  ;;  %1209 = vrot.lane.b32.xlu1 %v3230_v53, %s2448_s8 }
 0x164   : > { %1275 = vrot.lane.b32.xlu2 %v3757_v31, %s2449_s9 }
 0x165   : > { %v930_v29 = vpop.permute.xlu0 %929  ;;  %v932_v30 = vpop.permute.xlu1 %931 }
 0x166   : > { %1000 = vst.msk [vmem:[#allocation2 + $0xa0] sm:$0xff] %vm979_vm3, %v930_v29  ;;  %v1017_v54 = vpop.permute.xlu2 %1016  ;;  %v3779_v29 = vld [vmem:[#allocation25_spill] sm:$0xff] }
 0x167   : > { %1001 = vst.msk [vmem:[#allocation2 + $0xa8] sm:$0xff] %vm979_vm3, %v932_v30 }
 0x168   : > { %1021 = vst.msk [vmem:[#allocation2 + $0xf8] sm:$0xff] %vm979_vm3, %v1017_v54  ;;  %v3780_v54 = vld [vmem:[#allocation26_spill] sm:$0xff] }
 0x16b   : > { %1277 = vrot.lane.b32.xlu0 %v3758_v51, %s2449_s9  ;;  %1279 = vrot.lane.b32.xlu1 %v3759_v39, %s2449_s9  ;;  %v3781_v39 = vld [vmem:[#allocation27_spill] sm:$0xff] }
 0x16c   : > { %1281 = vrot.lane.b32.xlu2 %v3760_v55, %s2449_s9 }
 0x16d   : > { %v936_v47 = vpop.permute.xlu0 %935  ;;  %v938_v3 = vpop.permute.xlu1 %937 }
 0x16e   : > { %1003 = vst.msk [vmem:[#allocation2 + $0xb8] sm:$0xff] %vm979_vm3, %v936_v47  ;;  %v1087_v38 = vpop.permute.xlu2 %1086  ;;  %v3782_v47 = vld [vmem:[#allocation28_spill] sm:$0xff] }
 0x16f   : > { %1004 = vst.msk [vmem:[#allocation2 + $0xc0] sm:$0xff] %vm979_vm3, %v938_v3 }
 0x170   : > { %1175 = vst.msk [vmem:[#allocation2 + $0x10] sm:$0xff] %vm1172_vm4, %v1087_v38  ;;  %v3783_v38 = vld [vmem:[#allocation29_spill] sm:$0xff] }
 0x173   : > { %1283 = vrot.lane.b32.xlu0 %v3761_v42, %s2449_s9  ;;  %1285 = vrot.lane.b32.xlu1 %v3762_v56, %s2449_s9  ;;  %v3784_v56 = vld [vmem:[#allocation30_spill] sm:$0xff] }
 0x174   : > { %1287 = vrot.lane.b32.xlu2 %v3256_v60, %s2449_s9 }
 0x175   : > { %v942_v34 = vpop.permute.xlu0 %941  ;;  %v944_v41 = vpop.permute.xlu1 %943 }
 0x176   : > { %1006 = vst.msk [vmem:[#allocation2 + $0xd0] sm:$0xff] %vm979_vm3, %v942_v34  ;;  %v1093_v52 = vpop.permute.xlu2 %1092  ;;  %v3785_v34 = vld [vmem:[#allocation31_spill] sm:$0xff] }
 0x177   : > { %1007 = vst.msk [vmem:[#allocation2 + $0xd8] sm:$0xff] %vm979_vm3, %v944_v41  ;;  %v3331_v41 = vld [vmem:[%s3115_s7 + $0x2] sm:$0xff] }
 0x178   : > { %1178 = vst.msk [vmem:[#allocation2 + $0x28] sm:$0xff] %vm1172_vm4, %v1093_v52 }
 0x17b   : > { %1289 = vrot.lane.b32.xlu0 %v3763_v45, %s2449_s9  ;;  %1291 = vrot.lane.b32.xlu1 %v3764_v49, %s2449_s9  ;;  %v3338_v49 = vld [vmem:[%s3115_s7 + $0xa] sm:$0xff] }
 0x17c   : > { %1293 = vrot.lane.b32.xlu2 %v3765_v1, %s2449_s9  ;;  %v2292_v1 = vld [vmem:[%s2510_s25 + $0x38] sm:$0xff] }
 0x17d   : > { %v948_v57 = vpop.permute.xlu0 %947  ;;  %v1015_v44 = vpop.permute.xlu1 %1014 }
 0x17e   : > { %1009 = vst.msk [vmem:[#allocation2 + $0xe8] sm:$0xff] %vm979_vm3, %v948_v57  ;;  %v1099_v4 = vpop.permute.xlu2 %1098  ;;  %v2291_v57 = vld [vmem:[%s2510_s25 + $0x30] sm:$0xff] }
 0x17f   : > { %1020 = vst.msk [vmem:[#allocation2 + $0xf0] sm:$0xff] %vm979_vm3, %v1015_v44 }
 0x180   : > { %1181 = vst.msk [vmem:[#allocation2 + $0x40] sm:$0xff] %vm1172_vm4, %v1099_v4 }
 0x183   : > { %1295 = vrot.lane.b32.xlu0 %v3766_v2, %s2449_s9  ;;  %1297 = vrot.lane.b32.xlu1 %v3767_v5, %s2449_s9 }
 0x184   : > { %1299 = vrot.lane.b32.xlu2 %v3768_v8, %s2449_s9 }
 0x185   : > { %v1083_v6 = vpop.permute.xlu0 %1082  ;;  %v1085_v7 = vpop.permute.xlu1 %1084 }
 0x186   : > { %1173 = vst.msk [vmem:[#allocation2] sm:$0xff] %vm1172_vm4, %v1083_v6  ;;  %v1105_v9 = vpop.permute.xlu2 %1104  ;;  %v2295_v6 = vld [vmem:[%s2510_s25 + $0x60] sm:$0xff] }
 0x187   : > { %1174 = vst.msk [vmem:[#allocation2 + $0x8] sm:$0xff] %vm1172_vm4, %v1085_v7 }
 0x188   : > { %1184 = vst.msk [vmem:[#allocation2 + $0x58] sm:$0xff] %vm1172_vm4, %v1105_v9 }
 0x18b   : > { %1301 = vrot.lane.b32.xlu0 %v3769_v10, %s2449_s9  ;;  %1303 = vrot.lane.b32.xlu1 %v3770_v11, %s2449_s9 }
 0x18c   : > { %1305 = vrot.lane.b32.xlu2 %v3771_v14, %s2449_s9 }
 0x18d   : > { %v1089_v12 = vpop.permute.xlu0 %1088  ;;  %v1091_v13 = vpop.permute.xlu1 %1090 }
 0x18e   : > { %1176 = vst.msk [vmem:[#allocation2 + $0x18] sm:$0xff] %vm1172_vm4, %v1089_v12  ;;  %v1111_v15 = vpop.permute.xlu2 %1110 }
 0x18f   : > { %1177 = vst.msk [vmem:[#allocation2 + $0x20] sm:$0xff] %vm1172_vm4, %v1091_v13 }
 0x190   : > { %1187 = vst.msk [vmem:[#allocation2 + $0x70] sm:$0xff] %vm1172_vm4, %v1111_v15 }
 0x193   : > { %1307 = vrot.lane.b32.xlu0 %v3772_v16, %s2449_s9  ;;  %1309 = vrot.lane.b32.xlu1 %v3773_v17, %s2449_s9 }
 0x194   : > { %1311 = vrot.lane.b32.xlu2 %v3774_v20, %s2449_s9  ;;  %v1774_v20 = vld [vmem:[%s3115_s7 + $0x21] sm:$0xff] }
 0x195   : > { %v1095_v18 = vpop.permute.xlu0 %1094  ;;  %v1097_v19 = vpop.permute.xlu1 %1096 }
 0x196   : > { %1179 = vst.msk [vmem:[#allocation2 + $0x30] sm:$0xff] %vm1172_vm4, %v1095_v18  ;;  %v1117_v21 = vpop.permute.xlu2 %1116 }
 0x197   : > { %1180 = vst.msk [vmem:[#allocation2 + $0x38] sm:$0xff] %vm1172_vm4, %v1097_v19  ;;  %v2334_v19 = vld [vmem:[%s2510_s25 + $0xe1] sm:$0xff] }
 0x198   : > { %1190 = vst.msk [vmem:[#allocation2 + $0x88] sm:$0xff] %vm1172_vm4, %v1117_v21 }
 0x19b   : > { %1313 = vrot.lane.b32.xlu0 %v3775_v22, %s2449_s9  ;;  %1315 = vrot.lane.b32.xlu1 %v3776_v23, %s2449_s9  ;;  %v1967_v23 = vld [vmem:[%s3115_s7 + $0x22] sm:$0xff] }
 0x19c   : > { %1317 = vrot.lane.b32.xlu2 %v3777_v26, %s2449_s9  ;;  %v2333_v26 = vld [vmem:[%s2510_s25 + $0xd9] sm:$0xff] }
 0x19d   : > { %v1101_v24 = vpop.permute.xlu0 %1100  ;;  %v1103_v25 = vpop.permute.xlu1 %1102 }
 0x19e   : > { %1182 = vst.msk [vmem:[#allocation2 + $0x48] sm:$0xff] %vm1172_vm4, %v1101_v24  ;;  %v1123_v27 = vpop.permute.xlu2 %1122  ;;  %v1580_v24 = vld [vmem:[%s3115_s7 + $0x18] sm:$0xff] }
 0x19f   : > { %1183 = vst.msk [vmem:[#allocation2 + $0x50] sm:$0xff] %vm1172_vm4, %v1103_v25 }
 0x1a0   : > { %1193 = vst.msk [vmem:[#allocation2 + $0xa0] sm:$0xff] %vm1172_vm4, %v1123_v27 }
 0x1a3   : > { %1319 = vrot.lane.b32.xlu0 %v3778_v59, %s2449_s9  ;;  %1321 = vrot.lane.b32.xlu1 %v3779_v29, %s2449_s9  ;;  %v1773_v29 = vld [vmem:[%s3115_s7 + $0x19] sm:$0xff] }
 0x1a4   : > { %1323 = vrot.lane.b32.xlu2 %v3780_v54, %s2449_s9  ;;  %v1966_v54 = vld [vmem:[%s3115_s7 + $0x1a] sm:$0xff] }
 0x1a5   : > { %v1107_v30 = vpop.permute.xlu0 %1106  ;;  %v1109_v31 = vpop.permute.xlu1 %1108 }
 0x1a6   : > { %1185 = vst.msk [vmem:[#allocation2 + $0x60] sm:$0xff] %vm1172_vm4, %v1107_v30  ;;  %v1129_v51 = vpop.permute.xlu2 %1128  ;;  %v2361_v30 = vld [vmem:[%s2510_s25 + $0xda] sm:$0xff] }
 0x1a7   : > { %1186 = vst.msk [vmem:[#allocation2 + $0x68] sm:$0xff] %vm1172_vm4, %v1109_v31 }
 0x1a8   : > { %1196 = vst.msk [vmem:[#allocation2 + $0xb8] sm:$0xff] %vm1172_vm4, %v1129_v51 }
 0x1ab   : > { %1325 = vrot.lane.b32.xlu0 %v3781_v39, %s2449_s9  ;;  %1327 = vrot.lane.b32.xlu1 %v3782_v47, %s2449_s9  ;;  %v2332_v47 = vld [vmem:[%s2510_s25 + $0xc9] sm:$0xff] }
 0x1ac   : > { %1329 = vrot.lane.b32.xlu2 %v3783_v38, %s2449_s9 }
 0x1ad   : > { %v1113_v3 = vpop.permute.xlu0 %1112  ;;  %v1115_v55 = vpop.permute.xlu1 %1114 }
 0x1ae   : > { %1188 = vst.msk [vmem:[#allocation2 + $0x78] sm:$0xff] %vm1172_vm4, %v1113_v3  ;;  %v1135_v42 = vpop.permute.xlu2 %1134 }
 0x1af   : > { %1189 = vst.msk [vmem:[#allocation2 + $0x80] sm:$0xff] %vm1172_vm4, %v1115_v55 }
 0x1b0   : > { %1199 = vst.msk [vmem:[#allocation2 + $0xd0] sm:$0xff] %vm1172_vm4, %v1135_v42  ;;  %v2360_v42 = vld [vmem:[%s2510_s25 + $0xca] sm:$0xff] }
 0x1b3   : > { %1331 = vrot.lane.b32.xlu0 %v3784_v56, %s2449_s9  ;;  %1333 = vrot.lane.b32.xlu1 %v3785_v34, %s2449_s9 }
 0x1b4   : > { %1400 = vrot.lane.b32.xlu2 %v3331_v41, %s2449_s9 }
 0x1b5   : > { %v1119_v52 = vpop.permute.xlu0 %1118  ;;  %v1121_v45 = vpop.permute.xlu1 %1120 }
 0x1b6   : > { %1191 = vst.msk [vmem:[#allocation2 + $0x90] sm:$0xff] %vm1172_vm4, %v1119_v52  ;;  %v1141_v44 = vpop.permute.xlu2 %1140 }
 0x1b7   : > { %1192 = vst.msk [vmem:[#allocation2 + $0x98] sm:$0xff] %vm1172_vm4, %v1121_v45  ;;  %v2359_v45 = vld [vmem:[%s2510_s25 + $0xc2] sm:$0xff] }
 0x1b8   : > { %1202 = vst.msk [vmem:[#allocation2 + $0xe8] sm:$0xff] %vm1172_vm4, %v1141_v44 }
 0x1bb   : > { %1402 = vrot.lane.b32.xlu0 %v3338_v49, %s2449_s9  ;;  %1465 = vrot.lane.b32.xlu1 %v2291_v57, %s2450_s10 }
 0x1bc   : > { %1467 = vrot.lane.b32.xlu2 %v2292_v1, %s2450_s10 }
 0x1bd   : > { %v1125_v4 = vpop.permute.xlu0 %1124  ;;  %v1127_v2 = vpop.permute.xlu1 %1126 }
 0x1be   : > { %1194 = vst.msk [vmem:[#allocation2 + $0xa8] sm:$0xff] %vm1172_vm4, %v1125_v4  ;;  %v1276_v5 = vpop.permute.xlu2 %1275  ;;  %v2346_v4 = vld [vmem:[%s2510_s25 + $0x171] sm:$0xff] }
 0x1bf   : > { %1195 = vst.msk [vmem:[#allocation2 + $0xb0] sm:$0xff] %vm1172_vm4, %v1127_v2  ;;  %v2358_v2 = vld [vmem:[%s2510_s25 + $0xb2] sm:$0xff] }
 0x1c0   : > { %1366 = vst.msk [vmem:[#allocation2] sm:$0xff] %vm1365_vm5, %v1276_v5 }
 0x1c3   : > { %1469 = vrot.lane.b32.xlu0 %v2796_v63, %s2450_s10  ;;  %1471 = vrot.lane.b32.xlu1 %v2800_v0, %s2450_s10  ;;  %v2298_v63 = vld [vmem:[%s2510_s25 + $0x80] sm:$0xff] }
 0x1c4   : > { %1473 = vrot.lane.b32.xlu2 %v2295_v6, %s2450_s10 }
 0x1c5   : > { %v1131_v7 = vpop.permute.xlu0 %1130  ;;  %v1133_v8 = vpop.permute.xlu1 %1132 }
 0x1c6   : > { %1197 = vst.msk [vmem:[#allocation2 + $0xc0] sm:$0xff] %vm1172_vm4, %v1131_v7  ;;  %v1282_v9 = vpop.permute.xlu2 %1281  ;;  %v2317_v7 = vld [vmem:[%s2510_s25 + $0x168] sm:$0xff] }
 0x1c7   : > { %1198 = vst.msk [vmem:[#allocation2 + $0xc8] sm:$0xff] %vm1172_vm4, %v1133_v8  ;;  %v2329_v8 = vld [vmem:[%s2510_s25 + $0xa9] sm:$0xff] }
 0x1c8   : > { %1369 = vst.msk [vmem:[#allocation2 + $0x18] sm:$0xff] %vm1365_vm5, %v1282_v9 }
 0x1cb   : > { %1475 = vrot.lane.b32.xlu0 %v2819_v35, %s2450_s10  ;;  %1477 = vrot.lane.b32.xlu1 %v2824_v40, %s2450_s10  ;;  %v2301_v35 = vld [vmem:[%s2510_s25 + $0xa8] sm:$0xff] }
 0x1cc   : > { %1479 = vrot.lane.b32.xlu2 %v2298_v63, %s2450_s10  ;;  %v2345_v63 = vld [vmem:[%s2510_s25 + $0x169] sm:$0xff] }
 0x1cd   : > { %v1137_v0 = vpop.permute.xlu0 %1136  ;;  %v1139_v10 = vpop.permute.xlu1 %1138 }
 0x1ce   : > { %1200 = vst.msk [vmem:[#allocation2 + $0xd8] sm:$0xff] %vm1172_vm4, %v1137_v0  ;;  %v1288_v11 = vpop.permute.xlu2 %1287 }
 0x1cf   : > { %1201 = vst.msk [vmem:[#allocation2 + $0xe0] sm:$0xff] %vm1172_vm4, %v1139_v10 }
 0x1d0   : > { %1372 = vst.msk [vmem:[#allocation2 + $0x30] sm:$0xff] %vm1365_vm5, %v1288_v11  ;;  %v2357_v11 = vld [vmem:[%s2510_s25 + $0xaa] sm:$0xff] }
 0x1d3   : > { %1481 = vrot.lane.b32.xlu0 %v2846_v48, %s2450_s10  ;;  %1483 = vrot.lane.b32.xlu1 %v2857_v62, %s2450_s10  ;;  %v2304_v48 = vld [vmem:[%s2510_s25 + $0xc8] sm:$0xff] }
 0x1d4   : > { %1485 = vrot.lane.b32.xlu2 %v2301_v35, %s2450_s10  ;;  %v2373_v35 = vld [vmem:[%s2510_s25 + $0x16a] sm:$0xff] }
 0x1d5   : > { %v1208_v40 = vpop.permute.xlu0 %1207  ;;  %v1210_v12 = vpop.permute.xlu1 %1209 }
 0x1d6   : > { %1213 = vst.msk [vmem:[#allocation2 + $0xf0] sm:$0xff] %vm1172_vm4, %v1208_v40  ;;  %v1294_v13 = vpop.permute.xlu2 %1293 }
 0x1d7   : > { %1214 = vst.msk [vmem:[#allocation2 + $0xf8] sm:$0xff] %vm1172_vm4, %v1210_v12  ;;  %v2316_v12 = vld [vmem:[%s2510_s25 + $0x158] sm:$0xff] }
 0x1d8   : > { %1375 = vst.msk [vmem:[#allocation2 + $0x48] sm:$0xff] %vm1365_vm5, %v1294_v13 }
 0x1db   : > { %1487 = vrot.lane.b32.xlu0 %v2878_v32, %s2450_s10  ;;  %1489 = vrot.lane.b32.xlu1 %v2882_v61, %s2450_s10  ;;  %v2307_v32 = vld [vmem:[%s2510_s25 + $0xf0] sm:$0xff] }
 0x1dc   : > { %1491 = vrot.lane.b32.xlu2 %v2304_v48, %s2450_s10 }
 0x1dd   : > { %v1278_v62 = vpop.permute.xlu0 %1277  ;;  %v1280_v14 = vpop.permute.xlu1 %1279 }
 0x1de   : > { %1367 = vst.msk [vmem:[#allocation2 + $0x8] sm:$0xff] %vm1365_vm5, %v1278_v62  ;;  %v1300_v15 = vpop.permute.xlu2 %1299  ;;  %v2328_v62 = vld [vmem:[%s2510_s25 + $0x99] sm:$0xff] }
 0x1df   : > { %1368 = vst.msk [vmem:[#allocation2 + $0x10] sm:$0xff] %vm1365_vm5, %v1280_v14  ;;  %v2344_v14 = vld [vmem:[%s2510_s25 + $0x159] sm:$0xff] }
 0x1e0   : > { %1378 = vst.msk [vmem:[#allocation2 + $0x60] sm:$0xff] %vm1365_vm5, %v1300_v15 }
 0x1e3   : > { %1493 = vrot.lane.b32.xlu0 %v2901_v58, %s2450_s10  ;;  %1495 = vrot.lane.b32.xlu1 %v2906_v43, %s2450_s10  ;;  %v1581_v58 = vld [vmem:[%s3115_s7 + $0x20] sm:$0xff] }
 0x1e4   : > { %1497 = vrot.lane.b32.xlu2 %v2307_v32, %s2450_s10  ;;  %v2356_v32 = vld [vmem:[%s2510_s25 + $0x9a] sm:$0xff] }
 0x1e5   : > { %v1284_v61 = vpop.permute.xlu0 %1283  ;;  %v1286_v16 = vpop.permute.xlu1 %1285 }
 0x1e6   : > { %1370 = vst.msk [vmem:[#allocation2 + $0x20] sm:$0xff] %vm1365_vm5, %v1284_v61  ;;  %v1306_v17 = vpop.permute.xlu2 %1305 }
 0x1e7   : > { %1371 = vst.msk [vmem:[#allocation2 + $0x28] sm:$0xff] %vm1365_vm5, %v1286_v16 }
 0x1e8   : > { %1381 = vst.msk [vmem:[#allocation2 + $0x78] sm:$0xff] %vm1365_vm5, %v1306_v17  ;;  %v2372_v17 = vld [vmem:[%s2510_s25 + $0x15a] sm:$0xff] }
 0x1eb   : > { %1499 = vrot.lane.b32.xlu0 %v2928_v33, %s2450_s10  ;;  %1501 = vrot.lane.b32.xlu1 %v2939_v46, %s2450_s10  ;;  %v2362_v46 = vld [vmem:[%s2510_s25 + $0xe2] sm:$0xff] }
 0x1ec   : > { %1592 = vrot.lane.b32.xlu2 %v1581_v58, %s2450_s10  ;;  %v2315_v58 = vld [vmem:[%s2510_s25 + $0x150] sm:$0xff] }
 0x1ed   : > { %v1290_v43 = vpop.permute.xlu0 %1289  ;;  %v1292_v18 = vpop.permute.xlu1 %1291 }
 0x1ee   : > { %1373 = vst.msk [vmem:[#allocation2 + $0x38] sm:$0xff] %vm1365_vm5, %v1290_v43  ;;  %v1312_v21 = vpop.permute.xlu2 %1311 }
 0x1ef   : > { %1374 = vst.msk [vmem:[#allocation2 + $0x40] sm:$0xff] %vm1365_vm5, %v1292_v18  ;;  %v2327_v18 = vld [vmem:[%s2510_s25 + $0x91] sm:$0xff] }
 0x1f0   : > { %1384 = vst.msk [vmem:[#allocation2 + $0x90] sm:$0xff] %vm1365_vm5, %v1312_v21  ;;  %v2343_v21 = vld [vmem:[%s2510_s25 + $0x151] sm:$0xff] }
 0x1f3   : > { %1688 = vrot.lane.b32.xlu0 %v2334_v19, %s2451_s11  ;;  %1785 = vrot.lane.b32.xlu1 %v1774_v20, %s2451_s11 }
 0x1f4   : > { %1881 = vrot.lane.b32.xlu2 %v2362_v46, %s2452_s12  ;;  %v2355_v46 = vld [vmem:[%s2510_s25 + $0x92] sm:$0xff] }
 0x1f5   : > { %v1296_v33 = vpop.permute.xlu0 %1295  ;;  %v1298_v22 = vpop.permute.xlu1 %1297 }
 0x1f6   : > { %1376 = vst.msk [vmem:[#allocation2 + $0x50] sm:$0xff] %vm1365_vm5, %v1296_v33  ;;  %v1318_v25 = vpop.permute.xlu2 %1317 }
 0x1f7   : > { %1377 = vst.msk [vmem:[#allocation2 + $0x58] sm:$0xff] %vm1365_vm5, %v1298_v22  ;;  %v2371_v22 = vld [vmem:[%s2510_s25 + $0x152] sm:$0xff] }
 0x1f8   : > { %1387 = vst.msk [vmem:[#allocation2 + $0xa8] sm:$0xff] %vm1365_vm5, %v1318_v25  ;;  %v2314_v25 = vld [vmem:[%s2510_s25 + $0x140] sm:$0xff] }
 0x1fb   : > { %1978 = vrot.lane.b32.xlu0 %v1967_v23, %s2452_s12  ;;  %1590 = vrot.lane.b32.xlu1 %v1580_v24, %s2450_s10 }
 0x1fc   : > { %1686 = vrot.lane.b32.xlu2 %v2333_v26, %s2451_s11  ;;  %v2326_v26 = vld [vmem:[%s2510_s25 + $0x81] sm:$0xff] }
 0x1fd   : > { %v1302_v27 = vpop.permute.xlu0 %1301  ;;  %v1304_v59 = vpop.permute.xlu1 %1303 }
 0x1fe   : > { %1379 = vst.msk [vmem:[#allocation2 + $0x68] sm:$0xff] %vm1365_vm5, %v1302_v27  ;;  %v1324_v31 = vpop.permute.xlu2 %1323 }
 0x1ff   : > { %1380 = vst.msk [vmem:[#allocation2 + $0x70] sm:$0xff] %vm1365_vm5, %v1304_v59  ;;  %v2342_v59 = vld [vmem:[%s2510_s25 + $0x141] sm:$0xff] }
 0x200   : > { %1390 = vst.msk [vmem:[#allocation2 + $0xc0] sm:$0xff] %vm1365_vm5, %v1324_v31  ;;  %v2354_v31 = vld [vmem:[%s2510_s25 + $0x82] sm:$0xff] }
 0x203   : > { %1783 = vrot.lane.b32.xlu0 %v1773_v29, %s2451_s11  ;;  %1879 = vrot.lane.b32.xlu1 %v2361_v30, %s2452_s12 }
 0x204   : > { %1976 = vrot.lane.b32.xlu2 %v1966_v54, %s2452_s12  ;;  %v2370_v54 = vld [vmem:[%s2510_s25 + $0x142] sm:$0xff] }
 0x205   : > { %v1308_v51 = vpop.permute.xlu0 %1307  ;;  %v1310_v39 = vpop.permute.xlu1 %1309 }
 0x206   : > { %1382 = vst.msk [vmem:[#allocation2 + $0x80] sm:$0xff] %vm1365_vm5, %v1308_v51  ;;  %v1330_v3 = vpop.permute.xlu2 %1329 }
 0x207   : > { %1383 = vst.msk [vmem:[#allocation2 + $0x88] sm:$0xff] %vm1365_vm5, %v1310_v39  ;;  %v2313_v39 = vld [vmem:[%s2510_s25 + $0x138] sm:$0xff] }
 0x208   : > { %1393 = vst.msk [vmem:[#allocation2 + $0xd8] sm:$0xff] %vm1365_vm5, %v1330_v3 }
 0x20b   : > { %1588 = vrot.lane.b32.xlu0 %v3130_v36, %s2450_s10  ;;  %1684 = vrot.lane.b32.xlu1 %v2332_v47, %s2451_s11 }
 0x20c   : > { %1781 = vrot.lane.b32.xlu2 %v3230_v53, %s2451_s11  ;;  %v2331_v53 = vld [vmem:[%s2510_s25 + $0xc1] sm:$0xff] }
 0x20d   : > { %v1314_v55 = vpop.permute.xlu0 %1313  ;;  %v1316_v38 = vpop.permute.xlu1 %1315 }
 0x20e   : > { %1385 = vst.msk [vmem:[#allocation2 + $0x98] sm:$0xff] %vm1365_vm5, %v1314_v55  ;;  %v1401_v56 = vpop.permute.xlu2 %1400  ;;  %v2325_v55 = vld [vmem:[%s2510_s25 + $0x79] sm:$0xff] }
 0x20f   : > { %1386 = vst.msk [vmem:[#allocation2 + $0xa0] sm:$0xff] %vm1365_vm5, %v1316_v38  ;;  %v2341_v38 = vld [vmem:[%s2510_s25 + $0x139] sm:$0xff] }
 0x210   : > { %1406 = vst.msk [vmem:[#allocation2 + $0xf0] sm:$0xff] %vm1365_vm5, %v1401_v56  ;;  %v2353_v56 = vld [vmem:[%s2510_s25 + $0x7a] sm:$0xff] }
 0x213   : > { %1877 = vrot.lane.b32.xlu0 %v2360_v42, %s2452_s12  ;;  %1974 = vrot.lane.b32.xlu1 %v3338_v49, %s2452_s12 }
 0x214   : > { %1586 = vrot.lane.b32.xlu2 %v3122_v50, %s2450_s10 }
 0x215   : > { %v1320_v36 = vpop.permute.xlu0 %1319  ;;  %v1322_v34 = vpop.permute.xlu1 %1321 }
 0x216   : > { %1388 = vst.msk [vmem:[#allocation2 + $0xb0] sm:$0xff] %vm1365_vm5, %v1320_v36  ;;  %v1468_v52 = vpop.permute.xlu2 %1467 }
 0x217   : > { %1389 = vst.msk [vmem:[#allocation2 + $0xb8] sm:$0xff] %vm1365_vm5, %v1322_v34 }
 0x218   : > { %1551 = vst.msk [vmem:[#allocation2 + $0x8] sm:$0xff] %vm1549_vm6, %v1468_v52  ;;  %v2369_v52 = vld [vmem:[%s2510_s25 + $0x13a] sm:$0xff] }
 0x21b   : > { %1682 = vrot.lane.b32.xlu0 %v2331_v53, %s2451_s11  ;;  %1779 = vrot.lane.b32.xlu1 %v3227_v28, %s2451_s11  ;;  %v2330_v28 = vld [vmem:[%s2510_s25 + $0xb1] sm:$0xff] }
 0x21c   : > { %1875 = vrot.lane.b32.xlu2 %v2359_v45, %s2452_s12  ;;  %v2312_v45 = vld [vmem:[%s2510_s25 + $0x128] sm:$0xff] }
 0x21d   : > { %v1326_v49 = vpop.permute.xlu0 %1325  ;;  %v1328_v57 = vpop.permute.xlu1 %1327 }
 0x21e   : > { %1391 = vst.msk [vmem:[#allocation2 + $0xc8] sm:$0xff] %vm1365_vm5, %v1326_v49  ;;  %v1474_v50 = vpop.permute.xlu2 %1473 }
 0x21f   : > { %1392 = vst.msk [vmem:[#allocation2 + $0xd0] sm:$0xff] %vm1365_vm5, %v1328_v57  ;;  %v2324_v57 = vld [vmem:[%s2510_s25 + $0x69] sm:$0xff] }
 0x220   : > { %1554 = vst.msk [vmem:[#allocation2 + $0x20] sm:$0xff] %vm1549_vm6, %v1474_v50 }
 0x223   : > { %1972 = vrot.lane.b32.xlu0 %v3331_v41, %s2452_s12  ;;  %1519 = vrot.lane.b32.xlu1 %v3025_v37, %s2450_s10  ;;  %v2374_v37 = vld [vmem:[%s2510_s25 + $0x172] sm:$0xff] }
 0x224   : > { %1680 = vrot.lane.b32.xlu2 %v2330_v28, %s2451_s11 }
 0x225   : > { %v1332_v44 = vpop.permute.xlu0 %1331  ;;  %v1334_v1 = vpop.permute.xlu1 %1333 }
 0x226   : > { %1394 = vst.msk [vmem:[#allocation2 + $0xe0] sm:$0xff] %vm1365_vm5, %v1332_v44  ;;  %v1480_v5 = vpop.permute.xlu2 %1479 }
 0x227   : > { %1395 = vst.msk [vmem:[#allocation2 + $0xe8] sm:$0xff] %vm1365_vm5, %v1334_v1  ;;  %v2340_v1 = vld [vmem:[%s2510_s25 + $0x129] sm:$0xff] }
 0x228   : > { %1557 = vst.msk [vmem:[#allocation2 + $0x38] sm:$0xff] %vm1549_vm6, %v1480_v5  ;;  %v2368_v5 = vld [vmem:[%s2510_s25 + $0x12a] sm:$0xff] }
 0x22b   : > { %1712 = vrot.lane.b32.xlu0 %v2346_v4, %s2451_s11  ;;  %1873 = vrot.lane.b32.xlu1 %v2358_v2, %s2452_s12  ;;  %v2352_v4 = vld [vmem:[%s2510_s25 + $0x6a] sm:$0xff] }
 0x22c   : > { %1905 = vrot.lane.b32.xlu2 %v2374_v37, %s2452_s12 }
 0x22d   : > { %v1403_v41 = vpop.permute.xlu0 %1402  ;;  %v1466_v6 = vpop.permute.xlu1 %1465 }
 0x22e   : > { %1407 = vst.msk [vmem:[#allocation2 + $0xf8] sm:$0xff] %vm1365_vm5, %v1403_v41  ;;  %v1486_v9 = vpop.permute.xlu2 %1485 }
 0x22f   : > { %1550 = vst.msk [vmem:[#allocation2] sm:$0xff] %vm1549_vm6, %v1466_v6 }
 0x230   : > { %1560 = vst.msk [vmem:[#allocation2 + $0x50] sm:$0xff] %vm1549_vm6, %v1486_v9  ;;  %v2323_v9 = vld [vmem:[%s2510_s25 + $0x61] sm:$0xff] }
 0x233   : > { %1517 = vrot.lane.b32.xlu0 %v2317_v7, %s2450_s10  ;;  %1678 = vrot.lane.b32.xlu1 %v2329_v8, %s2451_s11  ;;  %v2311_v8 = vld [vmem:[%s2510_s25 + $0x120] sm:$0xff] }
 0x234   : > { %1710 = vrot.lane.b32.xlu2 %v2345_v63, %s2451_s11 }
 0x235   : > { %v1470_v0 = vpop.permute.xlu0 %1469  ;;  %v1472_v10 = vpop.permute.xlu1 %1471 }
 0x236   : > { %1552 = vst.msk [vmem:[#allocation2 + $0x10] sm:$0xff] %vm1549_vm6, %v1470_v0  ;;  %v1492_v40 = vpop.permute.xlu2 %1491  ;;  %v2339_v0 = vld [vmem:[%s2510_s25 + $0x121] sm:$0xff] }
 0x237   : > { %1553 = vst.msk [vmem:[#allocation2 + $0x18] sm:$0xff] %vm1549_vm6, %v1472_v10 }
 0x238   : > { %1563 = vst.msk [vmem:[#allocation2 + $0x68] sm:$0xff] %vm1549_vm6, %v1492_v40 }
 0x23b   : > { %1871 = vrot.lane.b32.xlu0 %v2357_v11, %s2452_s12  ;;  %1903 = vrot.lane.b32.xlu1 %v2373_v35, %s2452_s12  ;;  %v2367_v35 = vld [vmem:[%s2510_s25 + $0x122] sm:$0xff] }
 0x23c   : > { %1515 = vrot.lane.b32.xlu2 %v2316_v12, %s2450_s10  ;;  %v2310_v12 = vld [vmem:[%s2510_s25 + $0x110] sm:$0xff] }
 0x23d   : > { %v1476_v13 = vpop.permute.xlu0 %1475  ;;  %v1478_v48 = vpop.permute.xlu1 %1477 }
 0x23e   : > { %1555 = vst.msk [vmem:[#allocation2 + $0x28] sm:$0xff] %vm1549_vm6, %v1476_v13  ;;  %v1498_v15 = vpop.permute.xlu2 %1497 }
 0x23f   : > { %1556 = vst.msk [vmem:[#allocation2 + $0x30] sm:$0xff] %vm1549_vm6, %v1478_v48 }
 0x240   : > { %1566 = vst.msk [vmem:[#allocation2 + $0x80] sm:$0xff] %vm1549_vm6, %v1498_v15  ;;  %v2322_v15 = vld [vmem:[%s2510_s25 + $0x51] sm:$0xff] }
 0x243   : > { %1676 = vrot.lane.b32.xlu0 %v2328_v62, %s2451_s11  ;;  %1708 = vrot.lane.b32.xlu1 %v2344_v14, %s2451_s11 }
 0x244   : > { %1869 = vrot.lane.b32.xlu2 %v2356_v32, %s2452_s12 }
 0x245   : > { %v1482_v61 = vpop.permute.xlu0 %1481  ;;  %v1484_v16 = vpop.permute.xlu1 %1483 }
 0x246   : > { %1558 = vst.msk [vmem:[#allocation2 + $0x40] sm:$0xff] %vm1549_vm6, %v1482_v61  ;;  %v1593_v43 = vpop.permute.xlu2 %1592  ;;  %v2350_v61 = vld [vmem:[%s2510_s25 + $0x52] sm:$0xff] }
 0x247   : > { %1559 = vst.msk [vmem:[#allocation2 + $0x48] sm:$0xff] %vm1549_vm6, %v1484_v16 }
 0x248   : > { %1601 = vst.msk [vmem:[#allocation2 + $0xf8] sm:$0xff] %vm1549_vm6, %v1593_v43  ;;  %v2366_v43 = vld [vmem:[%s2510_s25 + $0x112] sm:$0xff] }
 0x24b   : > { %1901 = vrot.lane.b32.xlu0 %v2372_v17, %s2452_s12  ;;  %1513 = vrot.lane.b32.xlu1 %v2315_v58, %s2450_s10 }
 0x24c   : > { %1674 = vrot.lane.b32.xlu2 %v2327_v18, %s2451_s11  ;;  %v2321_v18 = vld [vmem:[%s2510_s25 + $0x49] sm:$0xff] }
 0x24d   : > { %v1488_v19 = vpop.permute.xlu0 %1487  ;;  %v1490_v20 = vpop.permute.xlu1 %1489 }
 0x24e   : > { %1561 = vst.msk [vmem:[#allocation2 + $0x58] sm:$0xff] %vm1549_vm6, %v1488_v19  ;;  %v1882_v33 = vpop.permute.xlu2 %1881 }
 0x24f   : > { %1562 = vst.msk [vmem:[#allocation2 + $0x60] sm:$0xff] %vm1549_vm6, %v1490_v20  ;;  %v2337_v20 = vld [vmem:[%s2510_s25 + $0x109] sm:$0xff] }
 0x253   : > { %1706 = vrot.lane.b32.xlu0 %v2343_v21, %s2451_s11  ;;  %1867 = vrot.lane.b32.xlu1 %v2355_v46, %s2452_s12 }
 0x254   : > { %1899 = vrot.lane.b32.xlu2 %v2371_v22, %s2452_s12  ;;  %v2349_v22 = vld [vmem:[%s2510_s25 + $0x4a] sm:$0xff] }
 0x255   : > { %v1494_v23 = vpop.permute.xlu0 %1493  ;;  %v1496_v24 = vpop.permute.xlu1 %1495 }
 0x256   : > { %1564 = vst.msk [vmem:[#allocation2 + $0x70] sm:$0xff] %vm1549_vm6, %v1494_v23  ;;  %v1687_v27 = vpop.permute.xlu2 %1686  ;;  %v2365_v23 = vld [vmem:[%s2510_s25 + $0x10a] sm:$0xff] }
 0x257   : > { %1565 = vst.msk [vmem:[#allocation2 + $0x78] sm:$0xff] %vm1549_vm6, %v1496_v24 }
 0x258   : > { %1757 = vst.msk [vmem:[#allocation2 + $0x70] sm:$0xff] %vm1742_vm7, %v1687_v27 }
 0x25b   : > { %1511 = vrot.lane.b32.xlu0 %v2314_v25, %s2450_s10  ;;  %1672 = vrot.lane.b32.xlu1 %v2326_v26, %s2451_s11  ;;  %v2320_v25 = vld [vmem:[%s2510_s25 + $0x39] sm:$0xff] }
 0x25c   : > { %1704 = vrot.lane.b32.xlu2 %v2342_v59, %s2451_s11 }
 0x25d   : > { %v1500_v29 = vpop.permute.xlu0 %1499  ;;  %v1502_v30 = vpop.permute.xlu1 %1501 }
 0x25e   : > { %1567 = vst.msk [vmem:[#allocation2 + $0x88] sm:$0xff] %vm1549_vm6, %v1500_v29  ;;  %v1977_v51 = vpop.permute.xlu2 %1976 }
 0x25f   : > { %1568 = vst.msk [vmem:[#allocation2 + $0x90] sm:$0xff] %vm1549_vm6, %v1502_v30  ;;  %v2336_v30 = vld [vmem:[%s2510_s25 + $0xf9] sm:$0xff] }
 0x263   : > { %1865 = vrot.lane.b32.xlu0 %v2354_v31, %s2452_s12  ;;  %1897 = vrot.lane.b32.xlu1 %v2370_v54, %s2452_s12  ;;  %v2348_v31 = vld [vmem:[%s2510_s25 + $0x3a] sm:$0xff] }
 0x264   : > { %1509 = vrot.lane.b32.xlu2 %v2313_v39, %s2450_s10 }
 0x265   : > { %v1689_v47 = vpop.permute.xlu0 %1688  ;;  %v1786_v3 = vpop.permute.xlu1 %1785 }
 0x266   : > { %1758 = vst.msk [vmem:[#allocation2 + $0x78] sm:$0xff] %vm1742_vm7, %v1689_v47  ;;  %v1782_v42 = vpop.permute.xlu2 %1781 }
 0x267   : > { %1794 = vst.msk [vmem:[#allocation2 + $0xf8] sm:$0xff] %vm1742_vm7, %v1786_v3  ;;  %v2319_v3 = vld [vmem:[%s2510_s25 + $0x31] sm:$0xff] }
 0x268   : > { %1951 = vst.msk [vmem:[#allocation2 + $0x78] sm:$0xff] %vm1935_vm8, %v1882_v33 }
 0x26b   : > { %1670 = vrot.lane.b32.xlu0 %v2325_v55, %s2451_s11  ;;  %1702 = vrot.lane.b32.xlu1 %v2341_v38, %s2451_s11  ;;  %v2335_v55 = vld [vmem:[%s2510_s25 + $0xf1] sm:$0xff] }
 0x26c   : > { %1863 = vrot.lane.b32.xlu2 %v2353_v56, %s2452_s12 }
 0x26d   : > { %v1979_v36 = vpop.permute.xlu0 %1978  ;;  %v1591_v34 = vpop.permute.xlu1 %1590 }
 0x26e   : > { %1987 = vst.msk [vmem:[#allocation2 + $0xf8] sm:$0xff] %vm1935_vm8, %v1979_v36  ;;  %v1587_v49 = vpop.permute.xlu2 %1586 }
 0x26f   : > { %1600 = vst.msk [vmem:[#allocation2 + $0xf0] sm:$0xff] %vm1549_vm6, %v1591_v34  ;;  %v2004_v53 = vld [vmem:[#allocation2 + $0x78] sm:$0xff] }
 0x270   : > { %2021 = vmatpush.xpose.msra.mxu0 %v2004_v53  ;;  %1598 = vst.msk [vmem:[#allocation2 + $0xe0] sm:$0xff] %vm1549_vm6, %v1587_v49 }
 0x273   : > { %1895 = vrot.lane.b32.xlu0 %v2369_v52, %s2452_s12  ;;  %1507 = vrot.lane.b32.xlu1 %v2312_v45, %s2450_s10  ;;  %v2363_v52 = vld [vmem:[%s2510_s25 + $0xf2] sm:$0xff] }
 0x274   : > { %1668 = vrot.lane.b32.xlu2 %v2324_v57, %s2451_s11 }
 0x275   : > { %v1784_v50 = vpop.permute.xlu0 %1783  ;;  %v2020_v28 = vld [vmem:[#allocation2 + $0xf8] sm:$0xff]  ;;  %v1880_v44 = vpop.permute.xlu1 %1879 }
 0x276   : > { %1793 = vst.msk [vmem:[#allocation2 + $0xf0] sm:$0xff] %vm1742_vm7, %v1784_v50  ;;  %2041 = vmatpush.xpose.msra.mxu1 %v2020_v28  ;;  %v1876_v2 = vpop.permute.xlu2 %1875 }
 0x277   : > { %1950 = vst.msk [vmem:[#allocation2 + $0x70] sm:$0xff] %vm1935_vm8, %v1880_v44 }
 0x278   : > { %1986 = vst.msk [vmem:[#allocation2 + $0xf0] sm:$0xff] %vm1935_vm8, %v1977_v51  ;;  %v2364_v51 = vld [vmem:[%s2510_s25 + $0xfa] sm:$0xff] }
 0x27b   : > { %1700 = vrot.lane.b32.xlu0 %v2340_v1, %s2451_s11  ;;  %1861 = vrot.lane.b32.xlu1 %v2352_v4, %s2452_s12 }
 0x27c   : > { %1893 = vrot.lane.b32.xlu2 %v2368_v5, %s2452_s12 }
 0x27d   : > { %v1589_v37 = vpop.permute.xlu0 %1588  ;;  %v1685_v41 = vpop.permute.xlu1 %1684 }
 0x27e   : > { %1599 = vst.msk [vmem:[#allocation2 + $0xe8] sm:$0xff] %vm1549_vm6, %v1589_v37  ;;  %v2003_v6 = vld [vmem:[#allocation2 + $0x70] sm:$0xff]  ;;  %v1681_v63 = vpop.permute.xlu2 %1680 }
 0x27f   : > { %1756 = vst.msk [vmem:[#allocation2 + $0x68] sm:$0xff] %vm1742_vm7, %v1685_v41  ;;  %2022 = vmatpush.xpose.msra.mxu0 %v2003_v6  ;;  %v2019_v7 = vld [vmem:[#allocation2 + $0xf0] sm:$0xff] }
 0x280   : > { %1792 = vst.msk [vmem:[#allocation2 + $0xe8] sm:$0xff] %vm1742_vm7, %v1782_v42  ;;  %2042 = vmatpush.xpose.msra.mxu1 %v2019_v7  ;;  %v2347_v42 = vld [vmem:[%s2510_s25 + $0x32] sm:$0xff] }
 0x281   : > { %1754 = vst.msk [vmem:[#allocation2 + $0x58] sm:$0xff] %vm1742_vm7, %v1681_v63 }
 0x283   : > { %1505 = vrot.lane.b32.xlu0 %v2311_v8, %s2450_s10  ;;  %1666 = vrot.lane.b32.xlu1 %v2323_v9, %s2451_s11 }
 0x284   : > { %1698 = vrot.lane.b32.xlu2 %v2339_v0, %s2451_s11 }
 0x285   : > { %v1878_v10 = vpop.permute.xlu0 %1877  ;;  %v1975_v11 = vpop.permute.xlu1 %1974 }
 0x286   : > { %1949 = vst.msk [vmem:[#allocation2 + $0x68] sm:$0xff] %vm1935_vm8, %v1878_v10  ;;  %v1906_v40 = vpop.permute.xlu2 %1905 }
 0x287   : > { %1985 = vst.msk [vmem:[#allocation2 + $0xe8] sm:$0xff] %vm1935_vm8, %v1975_v11 }
 0x28b   : > { %1859 = vrot.lane.b32.xlu0 %v3256_v60, %s2452_s12  ;;  %1891 = vrot.lane.b32.xlu1 %v2367_v35, %s2452_s12  ;;  %v2338_v60 = vld [vmem:[%s2510_s25 + $0x111] sm:$0xff] }
 0x28c   : > { %1503 = vrot.lane.b32.xlu2 %v2310_v12, %s2450_s10 }
 0x28d   : > { %v1683_v13 = vpop.permute.xlu0 %1682  ;;  %v2002_v48 = vld [vmem:[#allocation2 + $0x68] sm:$0xff]  ;;  %v1780_v62 = vpop.permute.xlu1 %1779 }
 0x28e   : > { %1755 = vst.msk [vmem:[#allocation2 + $0x60] sm:$0xff] %vm1742_vm7, %v1683_v13  ;;  %2023 = vmatpush.xpose.msra.mxu0 %v2002_v48  ;;  %v2018_v14 = vld [vmem:[#allocation2 + $0xe8] sm:$0xff]  ;;  %v1711_v32 = vpop.permute.xlu2 %1710 }
 0x28f   : > { %1791 = vst.msk [vmem:[#allocation2 + $0xe0] sm:$0xff] %vm1742_vm7, %v1780_v62  ;;  %2043 = vmatpush.xpose.msra.mxu1 %v2018_v14 }
 0x290   : > { %1948 = vst.msk [vmem:[#allocation2 + $0x60] sm:$0xff] %vm1935_vm8, %v1876_v2 }
 0x293   : > { %1664 = vrot.lane.b32.xlu0 %v2322_v15, %s2451_s11  ;;  %1696 = vrot.lane.b32.xlu1 %v2338_v60, %s2451_s11 }
 0x294   : > { %1857 = vrot.lane.b32.xlu2 %v2350_v61, %s2452_s12 }
 0x295   : > { %v1973_v16 = vpop.permute.xlu0 %1972  ;;  %v1520_v17 = vpop.permute.xlu1 %1519 }
 0x296   : > { %1984 = vst.msk [vmem:[#allocation2 + $0xe0] sm:$0xff] %vm1935_vm8, %v1973_v16  ;;  %v1516_v19 = vpop.permute.xlu2 %1515 }
 0x297   : > { %1577 = vst.msk [vmem:[#allocation2 + $0xd8] sm:$0xff] %vm1549_vm6, %v1520_v17  ;;  %v2001_v58 = vld [vmem:[#allocation2 + $0x60] sm:$0xff] }
 0x298   : > { %2024 = vmatpush.xpose.msra.mxu0 %v2001_v58  ;;  %1575 = vst.msk [vmem:[#allocation2 + $0xc8] sm:$0xff] %vm1549_vm6, %v1516_v19 }
 0x29b   : > { %1889 = vrot.lane.b32.xlu0 %v2366_v43, %s2452_s12  ;;  %1662 = vrot.lane.b32.xlu1 %v2321_v18, %s2451_s11 }
 0x29c   : > { %1694 = vrot.lane.b32.xlu2 %v2337_v20, %s2451_s11 }
 0x29d   : > { %v1713_v21 = vpop.permute.xlu0 %1712  ;;  %v2017_v46 = vld [vmem:[#allocation2 + $0xe0] sm:$0xff]  ;;  %v1874_v33 = vpop.permute.xlu1 %1873 }
 0x29e   : > { %1770 = vst.msk [vmem:[#allocation2 + $0xd8] sm:$0xff] %vm1742_vm7, %v1713_v21  ;;  %2044 = vmatpush.xpose.msra.mxu1 %v2017_v46  ;;  %v1870_v24 = vpop.permute.xlu2 %1869 }
 0x29f   : > { %1947 = vst.msk [vmem:[#allocation2 + $0x58] sm:$0xff] %vm1935_vm8, %v1874_v33 }
 0x2a0   : > { %1963 = vst.msk [vmem:[#allocation2 + $0xd8] sm:$0xff] %vm1935_vm8, %v1906_v40 }
 0x2a3   : > { %1855 = vrot.lane.b32.xlu0 %v2349_v22, %s2452_s12  ;;  %1887 = vrot.lane.b32.xlu1 %v2365_v23, %s2452_s12 }
 0x2a4   : > { %1660 = vrot.lane.b32.xlu2 %v2320_v25, %s2451_s11 }
 0x2a5   : > { %v1518_v26 = vpop.permute.xlu0 %1517  ;;  %v1679_v27 = vpop.permute.xlu1 %1678 }
 0x2a6   : > { %1576 = vst.msk [vmem:[#allocation2 + $0xd0] sm:$0xff] %vm1549_vm6, %v1518_v26  ;;  %v2000_v59 = vld [vmem:[#allocation2 + $0x58] sm:$0xff]  ;;  %v1675_v54 = vpop.permute.xlu2 %1674 }
 0x2a7   : > { %1753 = vst.msk [vmem:[#allocation2 + $0x50] sm:$0xff] %vm1742_vm7, %v1679_v27  ;;  %2025 = vmatpush.xpose.msra.mxu0 %v2000_v59  ;;  %v2016_v29 = vld [vmem:[#allocation2 + $0xd8] sm:$0xff] }
 0x2a8   : > { %1769 = vst.msk [vmem:[#allocation2 + $0xd0] sm:$0xff] %vm1742_vm7, %v1711_v32  ;;  %2045 = vmatpush.xpose.msra.mxu1 %v2016_v29  ;;  %v2061_v29 = vld [vmem:[%s3696_s3] sm:$0xff] }
 0x2a9   : > { %1751 = vst.msk [vmem:[#allocation2 + $0x40] sm:$0xff] %vm1742_vm7, %v1675_v54  ;;  %v2453_v54 = vmov 0  }
 0x2aa   : > { %2417 = vset.pattern.permute.xlu1 %v2453_v54  ;;  %2418 = vset.pattern.permute.xlu2 %v2453_v54 }
 0x2ab   : > { %1692 = vrot.lane.b32.xlu0 %v2336_v30, %s2451_s11  ;;  %1853 = vrot.lane.b32.xlu1 %v2348_v31, %s2452_s12  ;;  %v2069_v30 = vld [vmem:[%s3697_s4] sm:$0xff] }
 0x2ac   : > { %1885 = vrot.lane.b32.xlu2 %v2364_v51, %s2452_s12  ;;  %2419 = vset.pattern.permute.xlu0 %v2453_v54 }
 0x2ad   : > { %v1872_v39 = vpop.permute.xlu0 %1871  ;;  %v1904_v47 = vpop.permute.xlu1 %1903 }
 0x2ae   : > { %1946 = vst.msk [vmem:[#allocation2 + $0x50] sm:$0xff] %vm1935_vm8, %v1872_v39  ;;  %v1900_v38 = vpop.permute.xlu2 %1899 }
 0x2af   : > { %1962 = vst.msk [vmem:[#allocation2 + $0xd0] sm:$0xff] %vm1935_vm8, %v1904_v47 }
 0x2b3   : > { %1658 = vrot.lane.b32.xlu0 %v2319_v3, %s2451_s11  ;;  %1690 = vrot.lane.b32.xlu1 %v2335_v55, %s2451_s11 }
 0x2b4   : > { %1851 = vrot.lane.b32.xlu2 %v2347_v42, %s2452_s12 }
 0x2b5   : > { %v1677_v56 = vpop.permute.xlu0 %1676  ;;  %v1999_v36 = vld [vmem:[#allocation2 + $0x50] sm:$0xff]  ;;  %v1709_v34 = vpop.permute.xlu1 %1708 }
 0x2b6   : > { %1752 = vst.msk [vmem:[#allocation2 + $0x48] sm:$0xff] %vm1742_vm7, %v1677_v56  ;;  %2026 = vmatpush.xpose.msra.mxu0 %v1999_v36  ;;  %v2015_v53 = vld [vmem:[#allocation2 + $0xd0] sm:$0xff]  ;;  %v1705_v45 = vpop.permute.xlu2 %1704 }
 0x2b7   : > { %1768 = vst.msk [vmem:[#allocation2 + $0xc8] sm:$0xff] %vm1742_vm7, %v1709_v34  ;;  %2046 = vmatpush.xpose.msra.mxu1 %v2015_v53 }
 0x2b8   : > { %1945 = vst.msk [vmem:[#allocation2 + $0x48] sm:$0xff] %vm1935_vm8, %v1870_v24 }
 0x2bb   : > { %1883 = vrot.lane.b32.xlu0 %v2363_v52, %s2452_s12  ;;  %2064 = vperm.xlu1 %2417, %v2061_v29   ;;  %v1988_v52 = vld [vmem:[%s3695_s2] sm:$0xff] }
 0x2bc   : > { %2072 = vperm.xlu2 %2418, %v2069_v30  }
 0x2bd   : > { %v1902_v49 = vpop.permute.xlu0 %1901  ;;  %v1514_v57 = vpop.permute.xlu1 %1513 }
 0x2be   : > { %1961 = vst.msk [vmem:[#allocation2 + $0xc8] sm:$0xff] %vm1935_vm8, %v1902_v49  ;;  %v1510_v28 = vpop.permute.xlu2 %1509 }
 0x2bf   : > { %1574 = vst.msk [vmem:[#allocation2 + $0xc0] sm:$0xff] %vm1549_vm6, %v1514_v57  ;;  %v1998_v50 = vld [vmem:[#allocation2 + $0x48] sm:$0xff] }
 0x2c0   : > { %2027 = vmatpush.xpose.msra.mxu0 %v1998_v50  ;;  %1572 = vst.msk [vmem:[#allocation2 + $0xb0] sm:$0xff] %vm1549_vm6, %v1510_v28 }
 0x2c5   : > { %v1707_v44 = vpop.permute.xlu0 %1706  ;;  %v2014_v1 = vld [vmem:[#allocation2 + $0xc8] sm:$0xff]  ;;  %v1868_v4 = vpop.permute.xlu1 %1867 }
 0x2c6   : > { %1767 = vst.msk [vmem:[#allocation2 + $0xc0] sm:$0xff] %vm1742_vm7, %v1707_v44  ;;  %2047 = vmatpush.xpose.msra.mxu1 %v2014_v1  ;;  %v1864_v2 = vpop.permute.xlu2 %1863 }
 0x2c7   : > { %1944 = vst.msk [vmem:[#allocation2 + $0x40] sm:$0xff] %vm1935_vm8, %v1868_v4 }
 0x2c8   : > { %1960 = vst.msk [vmem:[#allocation2 + $0xc0] sm:$0xff] %vm1935_vm8, %v1900_v38 }
 0x2cd   : > { %v1512_v5 = vpop.permute.xlu0 %1511  ;;  %v1673_v37 = vpop.permute.xlu1 %1672 }
 0x2ce   : > { %1573 = vst.msk [vmem:[#allocation2 + $0xb8] sm:$0xff] %vm1549_vm6, %v1512_v5  ;;  %v1997_v41 = vld [vmem:[#allocation2 + $0x40] sm:$0xff]  ;;  %v1669_v7 = vpop.permute.xlu2 %1668 }
 0x2cf   : > { %1750 = vst.msk [vmem:[#allocation2 + $0x38] sm:$0xff] %vm1742_vm7, %v1673_v37  ;;  %2028 = vmatpush.xpose.msra.mxu0 %v1997_v41  ;;  %v2013_v6 = vld [vmem:[#allocation2 + $0xc0] sm:$0xff] }
 0x2d0   : > { %1766 = vst.msk [vmem:[#allocation2 + $0xb8] sm:$0xff] %vm1742_vm7, %v1705_v45  ;;  %2048 = vmatpush.xpose.msra.mxu1 %v2013_v6 }
 0x2d1   : > { %1748 = vst.msk [vmem:[#allocation2 + $0x28] sm:$0xff] %vm1742_vm7, %v1669_v7 }
 0x2d5   : > { %v1866_v8 = vpop.permute.xlu0 %1865  ;;  %v1898_v9 = vpop.permute.xlu1 %1897 }
 0x2d6   : > { %1943 = vst.msk [vmem:[#allocation2 + $0x38] sm:$0xff] %vm1935_vm8, %v1866_v8  ;;  %v1894_v63 = vpop.permute.xlu2 %1893 }
 0x2d7   : > { %1959 = vst.msk [vmem:[#allocation2 + $0xb8] sm:$0xff] %vm1935_vm8, %v1898_v9 }
 0x2dd   : > { %v1671_v0 = vpop.permute.xlu0 %1670  ;;  %v1996_v10 = vld [vmem:[#allocation2 + $0x38] sm:$0xff]  ;;  %v1703_v11 = vpop.permute.xlu1 %1702 }
 0x2de   : > { %1749 = vst.msk [vmem:[#allocation2 + $0x30] sm:$0xff] %vm1742_vm7, %v1671_v0  ;;  %2029 = vmatpush.xpose.msra.mxu0 %v1996_v10  ;;  %v2012_v35 = vld [vmem:[#allocation2 + $0xb8] sm:$0xff]  ;;  %v1699_v40 = vpop.permute.xlu2 %1698 }
 0x2df   : > { %1765 = vst.msk [vmem:[#allocation2 + $0xb0] sm:$0xff] %vm1742_vm7, %v1703_v11  ;;  %2049 = vmatpush.xpose.msra.mxu1 %v2012_v35 }
 0x2e0   : > { %1942 = vst.msk [vmem:[#allocation2 + $0x30] sm:$0xff] %vm1935_vm8, %v1864_v2 }
 0x2e5   : > { %v1896_v12 = vpop.permute.xlu0 %1895  ;;  %v1508_v13 = vpop.permute.xlu1 %1507 }
 0x2e6   : > { %1958 = vst.msk [vmem:[#allocation2 + $0xb0] sm:$0xff] %vm1935_vm8, %v1896_v12  ;;  %v1504_v62 = vpop.permute.xlu2 %1503 }
 0x2e7   : > { %1571 = vst.msk [vmem:[#allocation2 + $0xa8] sm:$0xff] %vm1549_vm6, %v1508_v13  ;;  %v1995_v48 = vld [vmem:[#allocation2 + $0x30] sm:$0xff] }
 0x2e8   : > { %2030 = vmatpush.xpose.msra.mxu0 %v1995_v48  ;;  %1569 = vst.msk [vmem:[#allocation2 + $0x98] sm:$0xff] %vm1549_vm6, %v1504_v62 }
 0x2ed   : > { %v1701_v14 = vpop.permute.xlu0 %1700  ;;  %v2011_v15 = vld [vmem:[#allocation2 + $0xb0] sm:$0xff]  ;;  %v1862_v60 = vpop.permute.xlu1 %1861 }
 0x2ee   : > { %1764 = vst.msk [vmem:[#allocation2 + $0xa8] sm:$0xff] %vm1742_vm7, %v1701_v14  ;;  %2050 = vmatpush.xpose.msra.mxu1 %v2011_v15  ;;  %v1858_v32 = vpop.permute.xlu2 %1857 }
 0x2ef   : > { %1941 = vst.msk [vmem:[#allocation2 + $0x28] sm:$0xff] %vm1935_vm8, %v1862_v60 }
 0x2f0   : > { %1957 = vst.msk [vmem:[#allocation2 + $0xa8] sm:$0xff] %vm1935_vm8, %v1894_v63 }
 0x2f5   : > { %v1506_v61 = vpop.permute.xlu0 %1505  ;;  %v1667_v16 = vpop.permute.xlu1 %1666 }
 0x2f6   : > { %1570 = vst.msk [vmem:[#allocation2 + $0xa0] sm:$0xff] %vm1549_vm6, %v1506_v61  ;;  %v1994_v17 = vld [vmem:[#allocation2 + $0x28] sm:$0xff]  ;;  %v1695_v43 = vpop.permute.xlu2 %1694 }
 0x2f7   : > { %1747 = vst.msk [vmem:[#allocation2 + $0x20] sm:$0xff] %vm1742_vm7, %v1667_v16  ;;  %2031 = vmatpush.xpose.msra.mxu0 %v1994_v17  ;;  %v2010_v58 = vld [vmem:[#allocation2 + $0xa8] sm:$0xff] }
 0x2f8   : > { %1763 = vst.msk [vmem:[#allocation2 + $0xa0] sm:$0xff] %vm1742_vm7, %v1699_v40  ;;  %2051 = vmatpush.xpose.msra.mxu1 %v2010_v58 }
 0x2f9   : > { %1761 = vst.msk [vmem:[#allocation2 + $0x90] sm:$0xff] %vm1742_vm7, %v1695_v43 }
 0x2fd   : > { %v1860_v18 = vpop.permute.xlu0 %1859  ;;  %v1892_v19 = vpop.permute.xlu1 %1891 }
 0x2fe   : > { %1940 = vst.msk [vmem:[#allocation2 + $0x20] sm:$0xff] %vm1935_vm8, %v1860_v18  ;;  %v1661_v20 = vpop.permute.xlu2 %1660 }
 0x2ff   : > { %1956 = vst.msk [vmem:[#allocation2 + $0xa0] sm:$0xff] %vm1935_vm8, %v1892_v19 }
 0x300   : > { %1744 = vst.msk [vmem:[#allocation2 + $0x8] sm:$0xff] %vm1742_vm7, %v1661_v20 }
 0x305   : > { %v1665_v21 = vpop.permute.xlu0 %1664  ;;  %v1993_v46 = vld [vmem:[#allocation2 + $0x20] sm:$0xff]  ;;  %v1697_v33 = vpop.permute.xlu1 %1696 }
 0x306   : > { %1746 = vst.msk [vmem:[#allocation2 + $0x18] sm:$0xff] %vm1742_vm7, %v1665_v21  ;;  %2032 = vmatpush.xpose.msra.mxu0 %v1993_v46  ;;  %v2009_v22 = vld [vmem:[#allocation2 + $0xa0] sm:$0xff]  ;;  %v1886_v31 = vpop.permute.xlu2 %1885 }
 0x307   : > { %1762 = vst.msk [vmem:[#allocation2 + $0x98] sm:$0xff] %vm1742_vm7, %v1697_v33  ;;  %2052 = vmatpush.xpose.msra.mxu1 %v2009_v22 }
 0x308   : > { %1939 = vst.msk [vmem:[#allocation2 + $0x18] sm:$0xff] %vm1935_vm8, %v1858_v32 }
 0x30d   : > { %v1890_v23 = vpop.permute.xlu0 %1889  ;;  %v1663_v24 = vpop.permute.xlu1 %1662 }
 0x30e   : > { %1955 = vst.msk [vmem:[#allocation2 + $0x98] sm:$0xff] %vm1935_vm8, %v1890_v23  ;;  %v1852_v55 = vpop.permute.xlu2 %1851 }
 0x30f   : > { %1745 = vst.msk [vmem:[#allocation2 + $0x10] sm:$0xff] %vm1742_vm7, %v1663_v24  ;;  %v1992_v25 = vld [vmem:[#allocation2 + $0x18] sm:$0xff] }
 0x310   : > { %2033 = vmatpush.xpose.msra.mxu0 %v1992_v25 }
 0x315   : > { %v1856_v26 = vpop.permute.xlu0 %1855  ;;  %v2008_v27 = vld [vmem:[#allocation2 + $0x98] sm:$0xff]  ;;  %v1888_v59 = vpop.permute.xlu1 %1887 }
 0x316   : > { %1938 = vst.msk [vmem:[#allocation2 + $0x10] sm:$0xff] %vm1935_vm8, %v1856_v26  ;;  %2053 = vmatpush.xpose.msra.mxu1 %v2008_v27  ;;  %v2073_v50 = vpop.permute.xlu2 %2072 }
 0x317   : > { %1954 = vst.msk [vmem:[#allocation2 + $0x90] sm:$0xff] %vm1935_vm8, %v1888_v59 }
 0x31d   : > { %v1693_v51 = vpop.permute.xlu0 %1692  ;;  %v1991_v39 = vld [vmem:[#allocation2 + $0x10] sm:$0xff]  ;;  %v1854_v47 = vpop.permute.xlu1 %1853 }
 0x31e   : > { %1760 = vst.msk [vmem:[#allocation2 + $0x88] sm:$0xff] %vm1742_vm7, %v1693_v51  ;;  %2034 = vmatpush.xpose.msra.mxu0 %v1991_v39  ;;  %v2007_v3 = vld [vmem:[#allocation2 + $0x90] sm:$0xff] }
 0x31f   : > { %1937 = vst.msk [vmem:[#allocation2 + $0x8] sm:$0xff] %vm1935_vm8, %v1854_v47  ;;  %2054 = vmatpush.xpose.msra.mxu1 %v2007_v3 }
 0x320   : > { %1953 = vst.msk [vmem:[#allocation2 + $0x88] sm:$0xff] %vm1935_vm8, %v1886_v31 }
 0x325   : > { %v1659_v38 = vpop.permute.xlu0 %1658  ;;  %v1691_v42 = vpop.permute.xlu1 %1690 }
 0x326   : > { %1743 = vst.msk [vmem:[#allocation2] sm:$0xff] %vm1742_vm7, %v1659_v38  ;;  %v1990_v56 = vld [vmem:[#allocation2 + $0x8] sm:$0xff] }
 0x327   : > { %1759 = vst.msk [vmem:[#allocation2 + $0x80] sm:$0xff] %vm1742_vm7, %v1691_v42  ;;  %2035 = vmatpush.xpose.msra.mxu0 %v1990_v56  ;;  %v2006_v36 = vld [vmem:[#allocation2 + $0x88] sm:$0xff] }
 0x328   : > { %1936 = vst.msk [vmem:[#allocation2] sm:$0xff] %vm1935_vm8, %v1852_v55  ;;  %2055 = vmatpush.xpose.msra.mxu1 %v2006_v36 }
 0x32d   : > { %v1884_v34 = vpop.permute.xlu0 %1883  ;;  %v2065_v49 = vpop.permute.xlu1 %2064 }
 0x32e   : > { %1952 = vst.msk [vmem:[#allocation2 + $0x80] sm:$0xff] %vm1935_vm8, %v1884_v34 }
 0x32f   : > { %v1989_v53 = vld [vmem:[#allocation2] sm:$0xff] }
 0x330   : > { %2036 = vmatpush.xpose.msra.mxu0 %v1989_v53 }
 0x333   : > { %2037 = vmatmul.f32.vlgmr.msra.gmra.mxu0 %v1988_v52 }
 0x335   : > { %v2005_v45 = vld [vmem:[#allocation2 + $0x80] sm:$0xff] }
 0x336   : > { %2056 = vmatpush.xpose.msra.mxu1 %v2005_v45 }
 0x339   : > { %2057 = vmatmul.f32.vlgmr.msra.gmra.mxu1 %v1988_v52 }
 0x3b0   : > { %v2038_v57 = vpop.f32.mrf.mxu0 }
 0x3b1   : > { %v2067_v28 = vmul.f32 %v2065_v49, %v2038_v57 }
 0x3b3   : > { %v2075_v44 = vadd.f32 %v2073_v50, %v2067_v28 }
 0x3b5   : > { %v2077_v1 = vmax.f32 %v2075_v44, 0.0 }
 0x3b6   : > { %v2058_v4 = vpop.f32.mrf.mxu1 }
 0x3b7   : > { %v2068_v2 = vmul.f32 %v2065_v49, %v2058_v4  ;;  %2079 = vst [vmem:[%s343_s26] sm:$0xff] %v2077_v1 }
 0x3b9   : > { %v2076_v5 = vadd.f32 %v2073_v50, %v2068_v2 }
 0x3bb   : > { %v2078_v37 = vmax.f32 %v2076_v5, 0.0 }
 0x3bd   : > { %2080 = vst [vmem:[%s343_s26 + $0x8] sm:$0xff] %v2078_v37 }
 0x3be PF: > { %s15_s20 = sadd.s32 1, %s2442_s20   ;;  %s3786_s18 = smov %s2438_s19 }
 0x3bf   : > { %p12_p5 = scmp.ge.s32.totalorder %s15_s20, 4   ;;  %s3787_s19 = smov %s3789_s21 }
 0x3c1   :  { %14 = sbr.rel (!%p12_p5) target bundleno = 2 (0x2), region = 75 }

// kernel: simple_conv2d.2
= control target key start
LH: loop header
LB: loop body
LE: loop exit
PB: predicated region body
PF: predicated region fallthrough
CT: control target
= control target key end

     0   :  { %s2461_s15 = smov 0   ;;  %s2463_s16 = smov 0   ;;  %s3667_s0 = inlined_call_operand.vmem [shape: f32[2,18,18,4], index: 0, kind: input, shape index: {}, may-alias: {0,1}]   ;;  %s3668_s1 = inlined_call_operand.vmem [shape: f32[2,18,18,4], index: 1, kind: input, shape index: {}, may-alias: {0,1}]   ;;  %s3669_s2 = inlined_call_operand.vmem [shape: f32[8,128], index: 2, kind: input, shape index: {}]   ;;  %s3670_s3 = inlined_call_operand.vmem [shape: f32[2,8,1], index: 3, kind: output, shape index: {0}]   ;;  %s3671_s4 = inlined_call_operand.vmem [shape: f32[2,8,1], index: 4, kind: output, shape index: {1}]  }
   0x1   :  { %s2465_s17 = smov 0  }
   0x2 LB: > { %s27_s18 = sadd.s32 1, %s2421_s16  ;;  %p2184_p0 = scmp.ge.s32.totalorder %s2425_s17, 1  ;;  %s2425_s17 = sphi %s2465_s17, %s15_s17   ;;  %s2421_s16 = sphi %s2463_s16, %s3760_s16   ;;  %s2417_s15 = sphi %s2461_s15, %s3759_s15  }
   0x3   : > { %p29_p1 = scmp.ge.s32.totalorder %s27_s18, 2  ;;  %p221_p2 = scmp.lt.s32.totalorder %s2425_s17, 3 }
   0x5   : > { %s3762_s18 = smov (%p29_p1, %s27_s18), 0  ;;  %p222_p3 = pnand %p2184_p0, %p221_p2 }
   0x7   : > { %225 = sbr.rel (%p222_p3) target bundleno = 1072 (0x430), region = 32 }
   0xc   : > { %p278_p4 = scmp.lt.s32.totalorder %s2417_s15, 1  ;;  %s2427_s23 = smov 4   ;;  %vm380_vm0 = vcmask 31744   ;;  %v2428_v33 = vmov 0.0   ;;  %vm573_vm1 = vcmask 64544   ;;  %vm766_vm2 = vcmask 97344  }
   0xd   : > { %316 = vst [vmem:[#allocation2] sm:$0xff] %v2428_v33  ;;  %s2429_s24 = smov 8   ;;  %s2430_s25 = smov 12   ;;  %vm950_vm3 = vcmask 130144   ;;  %vm1143_vm4 = vcmask 162944   ;;  %vm1336_vm5 = vcmask 195744  }
   0xe   : > { %s3764_s15 = smov (!%p278_p4, %s2417_s15), 1  ;;  %317 = vst [vmem:[#allocation2 + $0x8] sm:$0xff] %v2428_v33  ;;  %s2431_s30 = smov 16   ;;  %vm1520_vm6 = vcmask 228544   ;;  %vm1713_vm7 = vcmask 261344   ;;  %vm1906_vm8 = vcmask 294144  }
   0xf   : > { %s2367_s19 = smul.u32 432, %s3764_s15  ;;  %318 = vst [vmem:[#allocation2 + $0x10] sm:$0xff] %v2428_v33  ;;  %s2432_s5 = smov 20   ;;  %vm2044_vm9 = vcmask 7168  }
  0x10   : > { %319 = vst [vmem:[#allocation2 + $0x18] sm:$0xff] %v2428_v33  ;;  %s2433_s6 = smov 24   ;;  %s2434_s7 = smov 28  }
  0x11   : > { %s2487_s22 = scalar_lea.vmem %s3667_s0, %s2367_s19  ;;  %320 = vst [vmem:[#allocation2 + $0x20] sm:$0xff] %v2428_v33  ;;  %s2366_s26 = sadd.s32 384, %s2367_s19 }
  0x12   : > { %v413_v0 = vld [vmem:[%s2487_s22 + $0x1] sm:$0xff]  ;;  %v2491_v1 = vld [vmem:[%s2487_s22 + $0x19] sm:$0xff]  ;;  %v2497_v2 = vld [vmem:[%s2487_s22 + $0x31] sm:$0xff]  ;;  %321 = vst [vmem:[#allocation2 + $0x28] sm:$0xff] %v2428_v33  ;;  %s3092_s29 = scalar_lea.vmem %s3668_s1, %s2366_s26  ;;  %s2435_s8 = smov 32  }
  0x13   : > { %477 = vrot.lane.b32.xlu0 %v413_v0, %s2427_s23  ;;  %481 = vrot.lane.b32.xlu1 %v2491_v1, %s2427_s23  ;;  %v414_v3 = vld [vmem:[%s2487_s22 + $0x9] sm:$0xff]  ;;  %v2503_v4 = vld [vmem:[%s2487_s22 + $0x21] sm:$0xff]  ;;  %322 = vst [vmem:[#allocation2 + $0x30] sm:$0xff] %v2428_v33  ;;  %s2187_s11 = sshll.u32 %s3764_s15, 3 }
  0x14   : > { %485 = vrot.lane.b32.xlu2 %v2497_v2, %s2427_s23  ;;  %v2509_v5 = vld [vmem:[%s2487_s22 + $0x39] sm:$0xff]  ;;  %v2514_v6 = vld [vmem:[%s2487_s22 + $0x49] sm:$0xff]  ;;  %v2517_v7 = vld [vmem:[%s2487_s22 + $0x51] sm:$0xff]  ;;  %323 = vst [vmem:[#allocation2 + $0x38] sm:$0xff] %v2428_v33  ;;  %s311_s14 = scalar_lea.vmem %s3670_s3, %s2187_s11  ;;  %s315_s21 = scalar_lea.vmem %s3671_s4, %s2187_s11 }
  0x15   : > { %v2524_v8 = vld [vmem:[%s2487_s22 + $0x61] sm:$0xff]  ;;  %v2529_v9 = vld [vmem:[%s2487_s22 + $0x69] sm:$0xff]  ;;  %v2532_v10 = vld [vmem:[%s2487_s22 + $0x79] sm:$0xff]  ;;  %324 = vst [vmem:[#allocation2 + $0x40] sm:$0xff] %v2428_v33 }
  0x16   : > { %v2539_v11 = vld [vmem:[%s2487_s22 + $0x81] sm:$0xff]  ;;  %v2544_v12 = vld [vmem:[%s2487_s22 + $0x91] sm:$0xff]  ;;  %v2547_v13 = vld [vmem:[%s2487_s22 + $0x99] sm:$0xff]  ;;  %325 = vst [vmem:[#allocation2 + $0x48] sm:$0xff] %v2428_v33 }
  0x17   : > { %v2554_v14 = vld [vmem:[%s2487_s22 + $0xa9] sm:$0xff]  ;;  %v2559_v15 = vld [vmem:[%s2487_s22 + $0xb1] sm:$0xff]  ;;  %v2562_v16 = vld [vmem:[%s2487_s22 + $0xc1] sm:$0xff]  ;;  %326 = vst [vmem:[#allocation2 + $0x50] sm:$0xff] %v2428_v33 }
  0x18   : > { %v2569_v17 = vld [vmem:[%s2487_s22 + $0xc9] sm:$0xff]  ;;  %v2574_v18 = vld [vmem:[%s2487_s22 + $0xd9] sm:$0xff]  ;;  %v2577_v19 = vld [vmem:[%s2487_s22 + $0xe1] sm:$0xff]  ;;  %327 = vst [vmem:[#allocation2 + $0x58] sm:$0xff] %v2428_v33 }
  0x19   : > { %v2584_v20 = vld [vmem:[%s2487_s22 + $0xf1] sm:$0xff]  ;;  %v2589_v21 = vld [vmem:[%s2487_s22 + $0xf9] sm:$0xff]  ;;  %v2592_v22 = vld [vmem:[%s2487_s22 + $0x109] sm:$0xff]  ;;  %328 = vst [vmem:[#allocation2 + $0x60] sm:$0xff] %v2428_v33 }
  0x1a   : > { %v2599_v23 = vld [vmem:[%s2487_s22 + $0x111] sm:$0xff]  ;;  %v2604_v24 = vld [vmem:[%s2487_s22 + $0x121] sm:$0xff]  ;;  %v2607_v25 = vld [vmem:[%s2487_s22 + $0x129] sm:$0xff]  ;;  %329 = vst [vmem:[#allocation2 + $0x68] sm:$0xff] %v2428_v33 }
  0x1b   : > { %479 = vrot.lane.b32.xlu0 %v414_v3, %s2427_s23  ;;  %483 = vrot.lane.b32.xlu1 %v2503_v4, %s2427_s23  ;;  %v2614_v26 = vld [vmem:[%s2487_s22 + $0x139] sm:$0xff]  ;;  %v2619_v27 = vld [vmem:[%s2487_s22 + $0x141] sm:$0xff]  ;;  %330 = vst [vmem:[#allocation2 + $0x70] sm:$0xff] %v2428_v33 }
  0x1c   : > { %487 = vrot.lane.b32.xlu2 %v2509_v5, %s2427_s23  ;;  %v2622_v28 = vld [vmem:[%s2487_s22 + $0x151] sm:$0xff]  ;;  %v2629_v29 = vld [vmem:[%s2487_s22 + $0x159] sm:$0xff]  ;;  %v2634_v30 = vld [vmem:[%s2487_s22 + $0x169] sm:$0xff]  ;;  %331 = vst [vmem:[#allocation2 + $0x78] sm:$0xff] %v2428_v33 }
  0x1d   : > { %v2637_v31 = vld [vmem:[%s2487_s22 + $0x171] sm:$0xff]  ;;  %v606_v32 = vld [vmem:[%s2487_s22 + $0x2] sm:$0xff]  ;;  %v2652_v36 = vld [vmem:[%s2487_s22 + $0x1a] sm:$0xff]  ;;  %332 = vst [vmem:[#allocation2 + $0x80] sm:$0xff] %v2428_v33 }
  0x1e   : > { %v348_v34 = vld [vmem:[%s2487_s22] sm:$0xff]  ;;  %v607_v35 = vld [vmem:[%s2487_s22 + $0xa] sm:$0xff]  ;;  %3701 = vst [vmem:[#allocation3_spill] sm:$0xff] %v2652_v36  ;;  %v2671_v38 = vld [vmem:[%s2487_s22 + $0x32] sm:$0xff] }
  0x1f   : > { %381 = vst.msk [vmem:[#allocation2] sm:$0xff] %vm380_vm0, %v348_v34  ;;  %v2662_v37 = vld [vmem:[%s2487_s22 + $0x22] sm:$0xff]  ;;  %v2674_v39 = vld [vmem:[%s2487_s22 + $0x3a] sm:$0xff]  ;;  %v2685_v41 = vld [vmem:[%s2487_s22 + $0x4a] sm:$0xff] }
  0x20   : > { %3702 = vst [vmem:[#allocation4_spill] sm:$0xff] %v2662_v37  ;;  %v2694_v42 = vld [vmem:[%s2487_s22 + $0x52] sm:$0xff]  ;;  %v614_v43 = vld [vmem:[%s2487_s22 + $0x62] sm:$0xff]  ;;  %v2705_v45 = vld [vmem:[%s2487_s22 + $0x6a] sm:$0xff] }
  0x21   : > { %3703 = vst [vmem:[#allocation5_spill] sm:$0xff] %v2671_v38  ;;  %v2714_v46 = vld [vmem:[%s2487_s22 + $0x7a] sm:$0xff]  ;;  %v2718_v47 = vld [vmem:[%s2487_s22 + $0x82] sm:$0xff]  ;;  %v2731_v50 = vld [vmem:[%s2487_s22 + $0x92] sm:$0xff] }
  0x22   : > { %3704 = vst [vmem:[#allocation6_spill] sm:$0xff] %v2674_v39  ;;  %v2723_v49 = vld [vmem:[%s2487_s22 + $0x18] sm:$0xff]  ;;  %v2737_v53 = vld [vmem:[%s2487_s22 + $0x30] sm:$0xff]  ;;  %v349_v54 = vld [vmem:[%s2487_s22 + $0x8] sm:$0xff] }
  0x23   : > { %489 = vrot.lane.b32.xlu0 %v2514_v6, %s2427_s23  ;;  %491 = vrot.lane.b32.xlu1 %v2517_v7, %s2427_s23  ;;  %3705 = vst [vmem:[#allocation7_spill] sm:$0xff] %v2685_v41  ;;  %v2745_v55 = vld [vmem:[%s2487_s22 + $0x9a] sm:$0xff]  ;;  %v2750_v56 = vld [vmem:[%s2487_s22 + $0xaa] sm:$0xff] }
  0x24   : > { %493 = vrot.lane.b32.xlu2 %v2524_v8, %s2427_s23  ;;  %333 = vst [vmem:[#allocation2 + $0x88] sm:$0xff] %v2428_v33  ;;  %v2753_v57 = vld [vmem:[%s2487_s22 + $0x20] sm:$0xff]  ;;  %v2757_v59 = vld [vmem:[%s2487_s22 + $0x38] sm:$0xff]  ;;  %v2773_v63 = vld [vmem:[%s2487_s22 + $0x48] sm:$0xff] }
  0x25   : > { %334 = vst [vmem:[#allocation2 + $0x90] sm:$0xff] %v2428_v33  ;;  %v2767_v60 = vld [vmem:[%s2487_s22 + $0xb2] sm:$0xff]  ;;  %v2783_v3 = vld [vmem:[%s2487_s22 + $0x60] sm:$0xff] }
  0x26   : > { %3706 = vst [vmem:[#allocation8_spill] sm:$0xff] %v2694_v42  ;;  %v2777_v0 = vld [vmem:[%s2487_s22 + $0x50] sm:$0xff] }
  0x27   : > { %335 = vst [vmem:[#allocation2 + $0x98] sm:$0xff] %v2428_v33 }
  0x28   : > { %336 = vst [vmem:[#allocation2 + $0xa0] sm:$0xff] %v2428_v33 }
  0x29   : > { %337 = vst [vmem:[#allocation2 + $0xa8] sm:$0xff] %v2428_v33 }
  0x2a   : > { %338 = vst [vmem:[#allocation2 + $0xb0] sm:$0xff] %v2428_v33 }
  0x2b   : > { %495 = vrot.lane.b32.xlu0 %v2529_v9, %s2427_s23  ;;  %497 = vrot.lane.b32.xlu1 %v2532_v10, %s2427_s23  ;;  %3707 = vst [vmem:[#allocation9_spill] sm:$0xff] %v2705_v45 }
  0x2c   : > { %499 = vrot.lane.b32.xlu2 %v2539_v11, %s2427_s23  ;;  %339 = vst [vmem:[#allocation2 + $0xb8] sm:$0xff] %v2428_v33 }
  0x2d   : > { %340 = vst [vmem:[#allocation2 + $0xc0] sm:$0xff] %v2428_v33 }
  0x2e   : > { %341 = vst [vmem:[#allocation2 + $0xc8] sm:$0xff] %v2428_v33 }
  0x2f   : > { %342 = vst [vmem:[#allocation2 + $0xd0] sm:$0xff] %v2428_v33 }
  0x30   : > { %3708 = vst [vmem:[#allocation10_spill] sm:$0xff] %v2714_v46 }
  0x31   : > { %343 = vst [vmem:[#allocation2 + $0xd8] sm:$0xff] %v2428_v33 }
  0x32   : > { %3709 = vst [vmem:[#allocation11_spill] sm:$0xff] %v2718_v47 }
  0x33   : > { %501 = vrot.lane.b32.xlu0 %v2544_v12, %s2427_s23  ;;  %503 = vrot.lane.b32.xlu1 %v2547_v13, %s2427_s23  ;;  %344 = vst [vmem:[#allocation2 + $0xe0] sm:$0xff] %v2428_v33 }
  0x34   : > { %505 = vrot.lane.b32.xlu2 %v2554_v14, %s2427_s23  ;;  %345 = vst [vmem:[#allocation2 + $0xe8] sm:$0xff] %v2428_v33 }
  0x35   : > { %346 = vst [vmem:[#allocation2 + $0xf0] sm:$0xff] %v2428_v33 }
  0x36   : > { %3710 = vst [vmem:[#allocation12_spill] sm:$0xff] %v2731_v50 }
  0x37   : > { %347 = vst [vmem:[#allocation2 + $0xf8] sm:$0xff] %v2428_v33  ;;  %v2791_v33 = vld [vmem:[%s2487_s22 + $0xca] sm:$0xff] }
  0x38   : > { %383 = vst.msk [vmem:[#allocation2 + $0x10] sm:$0xff] %vm380_vm0, %v2723_v49 }
  0x39   : > { %3711 = vst [vmem:[#allocation13_spill] sm:$0xff] %v2745_v55 }
  0x3a   : > { %385 = vst.msk [vmem:[#allocation2 + $0x20] sm:$0xff] %vm380_vm0, %v2737_v53 }
  0x3b   : > { %507 = vrot.lane.b32.xlu0 %v2559_v15, %s2427_s23  ;;  %509 = vrot.lane.b32.xlu1 %v2562_v16, %s2427_s23  ;;  %3712 = vst [vmem:[#allocation14_spill] sm:$0xff] %v2750_v56 }
  0x3c   : > { %511 = vrot.lane.b32.xlu2 %v2569_v17, %s2427_s23  ;;  %382 = vst.msk [vmem:[#allocation2 + $0x8] sm:$0xff] %vm380_vm0, %v349_v54  ;;  %v2826_v54 = vld [vmem:[%s2487_s22 + $0xe2] sm:$0xff] }
  0x3d   : > { %384 = vst.msk [vmem:[#allocation2 + $0x18] sm:$0xff] %vm380_vm0, %v2753_v57 }
  0x3e   : > { %3713 = vst [vmem:[#allocation15_spill] sm:$0xff] %v2767_v60 }
  0x3f   : > { %386 = vst.msk [vmem:[#allocation2 + $0x28] sm:$0xff] %vm380_vm0, %v2757_v59 }
  0x40   : > { %387 = vst.msk [vmem:[#allocation2 + $0x30] sm:$0xff] %vm380_vm0, %v2773_v63 }
  0x41   : > { %3715 = vst [vmem:[#allocation17_spill] sm:$0xff] %v2791_v33 }
  0x42   : > { %388 = vst.msk [vmem:[#allocation2 + $0x38] sm:$0xff] %vm380_vm0, %v2777_v0 }
  0x43   : > { %513 = vrot.lane.b32.xlu0 %v2574_v18, %s2427_s23  ;;  %515 = vrot.lane.b32.xlu1 %v2577_v19, %s2427_s23  ;;  %389 = vst.msk [vmem:[#allocation2 + $0x40] sm:$0xff] %vm380_vm0, %v2783_v3 }
  0x44   : > { %517 = vrot.lane.b32.xlu2 %v2584_v20, %s2427_s23  ;;  %3717 = vst [vmem:[#allocation19_spill] sm:$0xff] %v2826_v54 }
  0x4b   : > { %519 = vrot.lane.b32.xlu0 %v2589_v21, %s2427_s23  ;;  %521 = vrot.lane.b32.xlu1 %v2592_v22, %s2427_s23 }
  0x4c   : > { %523 = vrot.lane.b32.xlu2 %v2599_v23, %s2427_s23 }
  0x53   : > { %525 = vrot.lane.b32.xlu0 %v2604_v24, %s2427_s23  ;;  %527 = vrot.lane.b32.xlu1 %v2607_v25, %s2427_s23 }
  0x54   : > { %529 = vrot.lane.b32.xlu2 %v2614_v26, %s2427_s23 }
  0x5b   : > { %531 = vrot.lane.b32.xlu0 %v2619_v27, %s2427_s23  ;;  %533 = vrot.lane.b32.xlu1 %v2622_v28, %s2427_s23 }
  0x5c   : > { %535 = vrot.lane.b32.xlu2 %v2629_v29, %s2427_s23 }
  0x63   : > { %537 = vrot.lane.b32.xlu0 %v2634_v30, %s2427_s23  ;;  %539 = vrot.lane.b32.xlu1 %v2637_v31, %s2427_s23 }
  0x64   : > { %670 = vrot.lane.b32.xlu2 %v606_v32, %s2429_s24  ;;  %v2786_v32 = vld [vmem:[%s2487_s22 + $0xc2] sm:$0xff] }
  0x65   : > { %3714 = vst [vmem:[#allocation16_spill] sm:$0xff] %v2786_v32 }
  0x6b   : > { %672 = vrot.lane.b32.xlu0 %v607_v35, %s2429_s24  ;;  %674 = vrot.lane.b32.xlu1 %v2652_v36, %s2429_s24  ;;  %v2796_v35 = vld [vmem:[%s2487_s22 + $0x68] sm:$0xff]  ;;  %v2980_v36 = vld [vmem:[%s2487_s22 + $0x158] sm:$0xff] }
  0x6c   : > { %676 = vrot.lane.b32.xlu2 %v2662_v37, %s2429_s24  ;;  %390 = vst.msk [vmem:[#allocation2 + $0x48] sm:$0xff] %vm380_vm0, %v2796_v35 }
  0x6d   : > { %410 = vst.msk [vmem:[#allocation2 + $0xe8] sm:$0xff] %vm380_vm0, %v2980_v36 }
  0x6e   : > { %v486_v40 = vpop.permute.xlu2 %485 }
  0x6f   : > { %578 = vst.msk [vmem:[#allocation2 + $0x20] sm:$0xff] %vm573_vm1, %v486_v40  ;;  %v2801_v40 = vld [vmem:[%s2487_s22 + $0x78] sm:$0xff] }
  0x70   : > { %391 = vst.msk [vmem:[#allocation2 + $0x50] sm:$0xff] %vm380_vm0, %v2801_v40 }
  0x73   : > { %678 = vrot.lane.b32.xlu0 %v2671_v38, %s2429_s24  ;;  %680 = vrot.lane.b32.xlu1 %v2674_v39, %s2429_s24  ;;  %v2953_v39 = vld [vmem:[%s2487_s22 + $0x15a] sm:$0xff] }
  0x74   : > { %682 = vrot.lane.b32.xlu2 %v2685_v41, %s2429_s24  ;;  %v2950_v41 = vld [vmem:[%s2487_s22 + $0x152] sm:$0xff]  ;;  %3727 = vst [vmem:[#allocation29_spill] sm:$0xff] %v2953_v39 }
  0x75   : > { %3726 = vst [vmem:[#allocation28_spill] sm:$0xff] %v2950_v41 }
  0x76   : > { %v488_v44 = vpop.permute.xlu2 %487 }
  0x77   : > { %579 = vst.msk [vmem:[#allocation2 + $0x28] sm:$0xff] %vm573_vm1, %v488_v44 }
  0x7b   : > { %684 = vrot.lane.b32.xlu0 %v2694_v42, %s2429_s24  ;;  %686 = vrot.lane.b32.xlu1 %v614_v43, %s2429_s24  ;;  %v2809_v43 = vld [vmem:[%s2487_s22 + $0xda] sm:$0xff] }
  0x7c   : > { %688 = vrot.lane.b32.xlu2 %v2705_v45, %s2429_s24  ;;  %3716 = vst [vmem:[#allocation18_spill] sm:$0xff] %v2809_v43  ;;  %v2937_v42 = vld [vmem:[%s2487_s22 + $0x120] sm:$0xff] }
  0x7d   : > { %405 = vst.msk [vmem:[#allocation2 + $0xc0] sm:$0xff] %vm380_vm0, %v2937_v42 }
  0x7e   : > { %v494_v48 = vpop.permute.xlu2 %493 }
  0x7f   : > { %582 = vst.msk [vmem:[#allocation2 + $0x40] sm:$0xff] %vm573_vm1, %v494_v48  ;;  %v2823_v48 = vld [vmem:[%s2487_s22 + $0x90] sm:$0xff] }
  0x80   : > { %393 = vst.msk [vmem:[#allocation2 + $0x60] sm:$0xff] %vm380_vm0, %v2823_v48 }
  0x83   : > { %690 = vrot.lane.b32.xlu0 %v2714_v46, %s2429_s24  ;;  %692 = vrot.lane.b32.xlu1 %v2718_v47, %s2429_s24  ;;  %v2898_v47 = vld [vmem:[%s2487_s22 + $0xf0] sm:$0xff]  ;;  %v2916_v46 = vld [vmem:[%s2487_s22 + $0x108] sm:$0xff] }
  0x84   : > { %694 = vrot.lane.b32.xlu2 %v2731_v50, %s2429_s24  ;;  %401 = vst.msk [vmem:[#allocation2 + $0xa0] sm:$0xff] %vm380_vm0, %v2898_v47 }
  0x85   : > { %v478_v51 = vpop.permute.xlu0 %477  ;;  %v482_v52 = vpop.permute.xlu1 %481  ;;  %403 = vst.msk [vmem:[#allocation2 + $0xb0] sm:$0xff] %vm380_vm0, %v2916_v46 }
  0x86   : > { %574 = vst.msk [vmem:[#allocation2] sm:$0xff] %vm573_vm1, %v478_v51  ;;  %v500_v58 = vpop.permute.xlu2 %499 }
  0x87   : > { %576 = vst.msk [vmem:[#allocation2 + $0x10] sm:$0xff] %vm573_vm1, %v482_v52  ;;  %v2816_v52 = vld [vmem:[%s2487_s22 + $0x80] sm:$0xff] }
  0x88   : > { %392 = vst.msk [vmem:[#allocation2 + $0x58] sm:$0xff] %vm380_vm0, %v2816_v52 }
  0x89   : > { %585 = vst.msk [vmem:[#allocation2 + $0x58] sm:$0xff] %vm573_vm1, %v500_v58 }
  0x8b   : > { %696 = vrot.lane.b32.xlu0 %v2745_v55, %s2429_s24  ;;  %698 = vrot.lane.b32.xlu1 %v2750_v56, %s2429_s24  ;;  %v2871_v56 = vld [vmem:[%s2487_s22 + $0x112] sm:$0xff] }
  0x8c   : > { %700 = vrot.lane.b32.xlu2 %v2767_v60, %s2429_s24  ;;  %v2868_v60 = vld [vmem:[%s2487_s22 + $0x10a] sm:$0xff]  ;;  %3721 = vst [vmem:[#allocation23_spill] sm:$0xff] %v2871_v56 }
  0x8d   : > { %v480_v61 = vpop.permute.xlu0 %479  ;;  %v484_v62 = vpop.permute.xlu1 %483  ;;  %3720 = vst [vmem:[#allocation22_spill] sm:$0xff] %v2868_v60 }
  0x8e   : > { %575 = vst.msk [vmem:[#allocation2 + $0x8] sm:$0xff] %vm573_vm1, %v480_v61  ;;  %v506_v34 = vpop.permute.xlu2 %505  ;;  %v2829_v61 = vld [vmem:[%s2487_s22 + $0xf2] sm:$0xff] }
  0x8f   : > { %577 = vst.msk [vmem:[#allocation2 + $0x18] sm:$0xff] %vm573_vm1, %v484_v62  ;;  %v2834_v62 = vld [vmem:[%s2487_s22 + $0x98] sm:$0xff] }
  0x90   : > { %3718 = vst [vmem:[#allocation20_spill] sm:$0xff] %v2829_v61 }
  0x91   : > { %394 = vst.msk [vmem:[#allocation2 + $0x68] sm:$0xff] %vm380_vm0, %v2834_v62 }
  0x93   : > { %702 = vrot.lane.b32.xlu0 %v2786_v32, %s2429_s24  ;;  %704 = vrot.lane.b32.xlu1 %v2791_v33, %s2429_s24  ;;  %v2855_v32 = vld [vmem:[%s2487_s22 + $0xb0] sm:$0xff] }
  0x94   : > { %706 = vrot.lane.b32.xlu2 %v2809_v43, %s2429_s24  ;;  %396 = vst.msk [vmem:[#allocation2 + $0x78] sm:$0xff] %vm380_vm0, %v2855_v32 }
  0x95   : > { %v490_v44 = vpop.permute.xlu0 %489  ;;  %v492_v51 = vpop.permute.xlu1 %491 }
  0x96   : > { %580 = vst.msk [vmem:[#allocation2 + $0x30] sm:$0xff] %vm573_vm1, %v490_v44  ;;  %v512_v33 = vpop.permute.xlu2 %511  ;;  %v2838_v44 = vld [vmem:[%s2487_s22 + $0xa8] sm:$0xff] }
  0x97   : > { %581 = vst.msk [vmem:[#allocation2 + $0x38] sm:$0xff] %vm573_vm1, %v492_v51  ;;  %v2849_v51 = vld [vmem:[%s2487_s22 + $0xfa] sm:$0xff] }
  0x98   : > { %3719 = vst [vmem:[#allocation21_spill] sm:$0xff] %v2849_v51 }
  0x99   : > { %395 = vst.msk [vmem:[#allocation2 + $0x70] sm:$0xff] %vm380_vm0, %v2838_v44 }
  0x9a   : > { %588 = vst.msk [vmem:[#allocation2 + $0x70] sm:$0xff] %vm573_vm1, %v506_v34 }
  0x9b   : > { %708 = vrot.lane.b32.xlu0 %v2826_v54, %s2429_s24  ;;  %710 = vrot.lane.b32.xlu1 %v2829_v61, %s2429_s24  ;;  %v2859_v61 = vld [vmem:[%s2487_s22 + $0xc0] sm:$0xff]  ;;  %v2865_v54 = vld [vmem:[%s2487_s22 + $0xc8] sm:$0xff] }
  0x9c   : > { %712 = vrot.lane.b32.xlu2 %v2849_v51, %s2429_s24  ;;  %397 = vst.msk [vmem:[#allocation2 + $0x80] sm:$0xff] %vm380_vm0, %v2859_v61  ;;  %v2891_v51 = vld [vmem:[%s2487_s22 + $0x122] sm:$0xff] }
  0x9d   : > { %v496_v58 = vpop.permute.xlu0 %495  ;;  %v498_v43 = vpop.permute.xlu1 %497  ;;  %398 = vst.msk [vmem:[#allocation2 + $0x88] sm:$0xff] %vm380_vm0, %v2865_v54 }
  0x9e   : > { %583 = vst.msk [vmem:[#allocation2 + $0x48] sm:$0xff] %vm573_vm1, %v496_v58  ;;  %v518_v34 = vpop.permute.xlu2 %517  ;;  %v2878_v58 = vld [vmem:[%s2487_s22 + $0xd8] sm:$0xff] }
  0x9f   : > { %584 = vst.msk [vmem:[#allocation2 + $0x50] sm:$0xff] %vm573_vm1, %v498_v43  ;;  %v2883_v43 = vld [vmem:[%s2487_s22 + $0xe0] sm:$0xff] }
  0xa0   : > { %591 = vst.msk [vmem:[#allocation2 + $0x88] sm:$0xff] %vm573_vm1, %v512_v33  ;;  %v2905_v33 = vld [vmem:[%s2487_s22 + $0xf8] sm:$0xff] }
  0xa1   : > { %3722 = vst [vmem:[#allocation24_spill] sm:$0xff] %v2891_v51 }
  0xa2   : > { %399 = vst.msk [vmem:[#allocation2 + $0x90] sm:$0xff] %vm380_vm0, %v2878_v58 }
  0xa3   : > { %714 = vrot.lane.b32.xlu0 %v2868_v60, %s2429_s24  ;;  %716 = vrot.lane.b32.xlu1 %v2871_v56, %s2429_s24  ;;  %400 = vst.msk [vmem:[#allocation2 + $0x98] sm:$0xff] %vm380_vm0, %v2883_v43  ;;  %v2908_v56 = vld [vmem:[%s2487_s22 + $0x12a] sm:$0xff]  ;;  %v2911_v60 = vld [vmem:[%s2487_s22 + $0x13a] sm:$0xff] }
  0xa4   : > { %718 = vrot.lane.b32.xlu2 %v2891_v51, %s2429_s24  ;;  %3723 = vst [vmem:[#allocation25_spill] sm:$0xff] %v2908_v56 }
  0xa5   : > { %v502_v55 = vpop.permute.xlu0 %501  ;;  %v504_v50 = vpop.permute.xlu1 %503  ;;  %3724 = vst [vmem:[#allocation26_spill] sm:$0xff] %v2911_v60 }
  0xa6   : > { %586 = vst.msk [vmem:[#allocation2 + $0x60] sm:$0xff] %vm573_vm1, %v502_v55  ;;  %v524_v45 = vpop.permute.xlu2 %523  ;;  %v2920_v55 = vld [vmem:[%s2487_s22 + $0x110] sm:$0xff] }
  0xa7   : > { %587 = vst.msk [vmem:[#allocation2 + $0x68] sm:$0xff] %vm573_vm1, %v504_v50  ;;  %v2931_v50 = vld [vmem:[%s2487_s22 + $0x142] sm:$0xff] }
  0xa8   : > { %594 = vst.msk [vmem:[#allocation2 + $0xa0] sm:$0xff] %vm573_vm1, %v518_v34 }
  0xa9   : > { %402 = vst.msk [vmem:[#allocation2 + $0xa8] sm:$0xff] %vm380_vm0, %v2905_v33 }
  0xaa   : > { %3725 = vst [vmem:[#allocation27_spill] sm:$0xff] %v2931_v50 }
  0xab   : > { %720 = vrot.lane.b32.xlu0 %v2908_v56, %s2429_s24  ;;  %722 = vrot.lane.b32.xlu1 %v2911_v60, %s2429_s24  ;;  %404 = vst.msk [vmem:[#allocation2 + $0xb8] sm:$0xff] %vm380_vm0, %v2920_v55  ;;  %v2943_v60 = vld [vmem:[%s2487_s22 + $0x128] sm:$0xff]  ;;  %v2947_v56 = vld [vmem:[%s2487_s22 + $0x138] sm:$0xff] }
  0xac   : > { %597 = vst.msk [vmem:[#allocation2 + $0xb8] sm:$0xff] %vm573_vm1, %v524_v45  ;;  %724 = vrot.lane.b32.xlu2 %v2931_v50, %s2429_s24  ;;  %v2973_v50 = vld [vmem:[%s2487_s22 + $0x150] sm:$0xff] }
  0xad   : > { %v508_v34 = vpop.permute.xlu0 %507  ;;  %v510_v51 = vpop.permute.xlu1 %509  ;;  %406 = vst.msk [vmem:[#allocation2 + $0xc8] sm:$0xff] %vm380_vm0, %v2943_v60 }
  0xae   : > { %589 = vst.msk [vmem:[#allocation2 + $0x78] sm:$0xff] %vm573_vm1, %v508_v34  ;;  %v530_v45 = vpop.permute.xlu2 %529  ;;  %v2960_v34 = vld [vmem:[%s2487_s22 + $0x140] sm:$0xff] }
  0xaf   : > { %590 = vst.msk [vmem:[#allocation2 + $0x80] sm:$0xff] %vm573_vm1, %v510_v51  ;;  %v2970_v51 = vld [vmem:[%s2487_s22 + $0x16a] sm:$0xff] }
  0xb0   : > { %407 = vst.msk [vmem:[#allocation2 + $0xd0] sm:$0xff] %vm380_vm0, %v2947_v56 }
  0xb1   : > { %600 = vst.msk [vmem:[#allocation2 + $0xd0] sm:$0xff] %vm573_vm1, %v530_v45  ;;  %v2987_v45 = vld [vmem:[%s2487_s22 + $0x168] sm:$0xff] }
  0xb2   : > { %3728 = vst [vmem:[#allocation30_spill] sm:$0xff] %v2970_v51 }
  0xb3   : > { %726 = vrot.lane.b32.xlu0 %v2950_v41, %s2429_s24  ;;  %728 = vrot.lane.b32.xlu1 %v2953_v39, %s2429_s24  ;;  %408 = vst.msk [vmem:[#allocation2 + $0xd8] sm:$0xff] %vm380_vm0, %v2960_v34  ;;  %v2990_v39 = vld [vmem:[%s2487_s22 + $0x172] sm:$0xff] }
  0xb4   : > { %409 = vst.msk [vmem:[#allocation2 + $0xe0] sm:$0xff] %vm380_vm0, %v2973_v50  ;;  %730 = vrot.lane.b32.xlu2 %v2970_v51, %s2429_s24 }
  0xb5   : > { %v514_v38 = vpop.permute.xlu0 %513  ;;  %v516_v37 = vpop.permute.xlu1 %515  ;;  %3729 = vst [vmem:[#allocation31_spill] sm:$0xff] %v2990_v39 }
  0xb6   : > { %592 = vst.msk [vmem:[#allocation2 + $0x90] sm:$0xff] %vm573_vm1, %v514_v38  ;;  %v536_v41 = vpop.permute.xlu2 %535 }
  0xb7   : > { %593 = vst.msk [vmem:[#allocation2 + $0x98] sm:$0xff] %vm573_vm1, %v516_v37  ;;  %v3002_v37 = vld [vmem:[%s2487_s22 + $0x170] sm:$0xff] }
  0xb8   : > { %603 = vst.msk [vmem:[#allocation2 + $0xe8] sm:$0xff] %vm573_vm1, %v536_v41 }
  0xb9   : > { %411 = vst.msk [vmem:[#allocation2 + $0xf0] sm:$0xff] %vm380_vm0, %v2987_v45 }
  0xba   : > { %412 = vst.msk [vmem:[#allocation2 + $0xf8] sm:$0xff] %vm380_vm0, %v3002_v37 }
  0xbb   : > { %732 = vrot.lane.b32.xlu0 %v2990_v39, %s2429_s24  ;;  %860 = vrot.lane.b32.xlu1 %v2723_v49, %s2430_s25 }
  0xbc   : > { %862 = vrot.lane.b32.xlu2 %v2753_v57, %s2430_s25 }
  0xbd   : > { %v520_v38 = vpop.permute.xlu0 %519  ;;  %v522_v51 = vpop.permute.xlu1 %521 }
  0xbe   : > { %595 = vst.msk [vmem:[#allocation2 + $0xa8] sm:$0xff] %vm573_vm1, %v520_v38  ;;  %v671_v41 = vpop.permute.xlu2 %670 }
  0xbf   : > { %596 = vst.msk [vmem:[#allocation2 + $0xb0] sm:$0xff] %vm573_vm1, %v522_v51 }
  0xc0   : > { %767 = vst.msk [vmem:[#allocation2] sm:$0xff] %vm766_vm2, %v671_v41 }
  0xc3   : > { %864 = vrot.lane.b32.xlu0 %v2737_v53, %s2430_s25  ;;  %866 = vrot.lane.b32.xlu1 %v2757_v59, %s2430_s25 }
  0xc4   : > { %868 = vrot.lane.b32.xlu2 %v2773_v63, %s2430_s25 }
  0xc5   : > { %v526_v49 = vpop.permute.xlu0 %525  ;;  %v528_v39 = vpop.permute.xlu1 %527 }
  0xc6   : > { %598 = vst.msk [vmem:[#allocation2 + $0xc0] sm:$0xff] %vm573_vm1, %v526_v49  ;;  %v677_v57 = vpop.permute.xlu2 %676 }
  0xc7   : > { %599 = vst.msk [vmem:[#allocation2 + $0xc8] sm:$0xff] %vm573_vm1, %v528_v39 }
  0xc8   : > { %770 = vst.msk [vmem:[#allocation2 + $0x18] sm:$0xff] %vm766_vm2, %v677_v57 }
  0xcb   : > { %870 = vrot.lane.b32.xlu0 %v2777_v0, %s2430_s25  ;;  %872 = vrot.lane.b32.xlu1 %v2783_v3, %s2430_s25 }
  0xcc   : > { %874 = vrot.lane.b32.xlu2 %v2796_v35, %s2430_s25 }
  0xcd   : > { %v532_v53 = vpop.permute.xlu0 %531  ;;  %v534_v59 = vpop.permute.xlu1 %533 }
  0xce   : > { %601 = vst.msk [vmem:[#allocation2 + $0xd8] sm:$0xff] %vm573_vm1, %v532_v53  ;;  %v683_v51 = vpop.permute.xlu2 %682 }
  0xcf   : > { %602 = vst.msk [vmem:[#allocation2 + $0xe0] sm:$0xff] %vm573_vm1, %v534_v59 }
  0xd0   : > { %773 = vst.msk [vmem:[#allocation2 + $0x30] sm:$0xff] %vm766_vm2, %v683_v51 }
  0xd3   : > { %876 = vrot.lane.b32.xlu0 %v2801_v40, %s2430_s25  ;;  %878 = vrot.lane.b32.xlu1 %v2816_v52, %s2430_s25 }
  0xd4   : > { %880 = vrot.lane.b32.xlu2 %v2823_v48, %s2430_s25 }
  0xd5   : > { %v538_v39 = vpop.permute.xlu0 %537  ;;  %v540_v3 = vpop.permute.xlu1 %539 }
  0xd6   : > { %604 = vst.msk [vmem:[#allocation2 + $0xf0] sm:$0xff] %vm573_vm1, %v538_v39  ;;  %v689_v38 = vpop.permute.xlu2 %688 }
  0xd7   : > { %605 = vst.msk [vmem:[#allocation2 + $0xf8] sm:$0xff] %vm573_vm1, %v540_v3 }
  0xd8   : > { %776 = vst.msk [vmem:[#allocation2 + $0x48] sm:$0xff] %vm766_vm2, %v689_v38  ;;  %v3207_v38 = vld [vmem:[%s3092_s29 + $0x9] sm:$0xff] }
  0xdb   : > { %882 = vrot.lane.b32.xlu0 %v2834_v62, %s2430_s25  ;;  %884 = vrot.lane.b32.xlu1 %v2838_v44, %s2430_s25 }
  0xdc   : > { %886 = vrot.lane.b32.xlu2 %v2855_v32, %s2430_s25 }
  0xdd   : > { %v673_v41 = vpop.permute.xlu0 %672  ;;  %v675_v52 = vpop.permute.xlu1 %674 }
  0xde   : > { %768 = vst.msk [vmem:[#allocation2 + $0x8] sm:$0xff] %vm766_vm2, %v673_v41  ;;  %v695_v48 = vpop.permute.xlu2 %694 }
  0xdf   : > { %769 = vst.msk [vmem:[#allocation2 + $0x10] sm:$0xff] %vm766_vm2, %v675_v52 }
  0xe0   : > { %779 = vst.msk [vmem:[#allocation2 + $0x60] sm:$0xff] %vm766_vm2, %v695_v48  ;;  %v3731_v48 = vld [vmem:[#allocation4_spill] sm:$0xff] }
  0xe3   : > { %888 = vrot.lane.b32.xlu0 %v2859_v61, %s2430_s25  ;;  %890 = vrot.lane.b32.xlu1 %v2865_v54, %s2430_s25 }
  0xe4   : > { %892 = vrot.lane.b32.xlu2 %v2878_v58, %s2430_s25 }
  0xe5   : > { %v679_v62 = vpop.permute.xlu0 %678  ;;  %v681_v44 = vpop.permute.xlu1 %680 }
  0xe6   : > { %771 = vst.msk [vmem:[#allocation2 + $0x20] sm:$0xff] %vm766_vm2, %v679_v62  ;;  %v701_v32 = vpop.permute.xlu2 %700  ;;  %v3732_v62 = vld [vmem:[#allocation5_spill] sm:$0xff] }
  0xe7   : > { %772 = vst.msk [vmem:[#allocation2 + $0x28] sm:$0xff] %vm766_vm2, %v681_v44 }
  0xe8   : > { %782 = vst.msk [vmem:[#allocation2 + $0x78] sm:$0xff] %vm766_vm2, %v701_v32 }
  0xeb   : > { %894 = vrot.lane.b32.xlu0 %v2883_v43, %s2430_s25  ;;  %896 = vrot.lane.b32.xlu1 %v2898_v47, %s2430_s25 }
  0xec   : > { %898 = vrot.lane.b32.xlu2 %v2905_v33, %s2430_s25 }
  0xed   : > { %v685_v61 = vpop.permute.xlu0 %684  ;;  %v687_v54 = vpop.permute.xlu1 %686 }
  0xee   : > { %774 = vst.msk [vmem:[#allocation2 + $0x38] sm:$0xff] %vm766_vm2, %v685_v61  ;;  %v707_v49 = vpop.permute.xlu2 %706  ;;  %v3733_v61 = vld [vmem:[#allocation6_spill] sm:$0xff] }
  0xef   : > { %775 = vst.msk [vmem:[#allocation2 + $0x40] sm:$0xff] %vm766_vm2, %v687_v54 }
  0xf0   : > { %785 = vst.msk [vmem:[#allocation2 + $0x90] sm:$0xff] %vm766_vm2, %v707_v49  ;;  %v3734_v49 = vld [vmem:[#allocation7_spill] sm:$0xff] }
  0xf3   : > { %900 = vrot.lane.b32.xlu0 %v2916_v46, %s2430_s25  ;;  %902 = vrot.lane.b32.xlu1 %v2920_v55, %s2430_s25 }
  0xf4   : > { %904 = vrot.lane.b32.xlu2 %v2937_v42, %s2430_s25 }
  0xf5   : > { %v691_v57 = vpop.permute.xlu0 %690  ;;  %v693_v47 = vpop.permute.xlu1 %692 }
  0xf6   : > { %777 = vst.msk [vmem:[#allocation2 + $0x50] sm:$0xff] %vm766_vm2, %v691_v57  ;;  %v713_v33 = vpop.permute.xlu2 %712  ;;  %v3735_v57 = vld [vmem:[#allocation8_spill] sm:$0xff] }
  0xf7   : > { %778 = vst.msk [vmem:[#allocation2 + $0x58] sm:$0xff] %vm766_vm2, %v693_v47  ;;  %v3233_v47 = vld [vmem:[%s2487_s22 + $0x62] sm:$0xff] }
  0xf8   : > { %788 = vst.msk [vmem:[#allocation2 + $0xa8] sm:$0xff] %vm766_vm2, %v713_v33 }
  0xfb   : > { %906 = vrot.lane.b32.xlu0 %v2943_v60, %s2430_s25  ;;  %908 = vrot.lane.b32.xlu1 %v2947_v56, %s2430_s25 }
  0xfc   : > { %910 = vrot.lane.b32.xlu2 %v2960_v34, %s2430_s25 }
  0xfd   : > { %v697_v46 = vpop.permute.xlu0 %696  ;;  %v699_v55 = vpop.permute.xlu1 %698 }
  0xfe   : > { %780 = vst.msk [vmem:[#allocation2 + $0x68] sm:$0xff] %vm766_vm2, %v697_v46  ;;  %v719_v42 = vpop.permute.xlu2 %718 }
  0xff   : > { %781 = vst.msk [vmem:[#allocation2 + $0x70] sm:$0xff] %vm766_vm2, %v699_v55 }
 0x100   : > { %791 = vst.msk [vmem:[#allocation2 + $0xc0] sm:$0xff] %vm766_vm2, %v719_v42  ;;  %v3736_v42 = vld [vmem:[#allocation9_spill] sm:$0xff] }
 0x103   : > { %912 = vrot.lane.b32.xlu0 %v2973_v50, %s2430_s25  ;;  %914 = vrot.lane.b32.xlu1 %v2980_v36, %s2430_s25  ;;  %v3099_v50 = vld [vmem:[%s3092_s29] sm:$0xff]  ;;  %v3107_v36 = vld [vmem:[%s3092_s29 + $0x8] sm:$0xff] }
 0x104   : > { %916 = vrot.lane.b32.xlu2 %v2987_v45, %s2430_s25 }
 0x105   : > { %v703_v56 = vpop.permute.xlu0 %702  ;;  %v705_v60 = vpop.permute.xlu1 %704 }
 0x106   : > { %783 = vst.msk [vmem:[#allocation2 + $0x80] sm:$0xff] %vm766_vm2, %v703_v56  ;;  %v725_v34 = vpop.permute.xlu2 %724  ;;  %v3737_v56 = vld [vmem:[#allocation10_spill] sm:$0xff] }
 0x107   : > { %784 = vst.msk [vmem:[#allocation2 + $0x88] sm:$0xff] %vm766_vm2, %v705_v60 }
 0x108   : > { %794 = vst.msk [vmem:[#allocation2 + $0xd8] sm:$0xff] %vm766_vm2, %v725_v34 }
 0x10b   : > { %918 = vrot.lane.b32.xlu0 %v3002_v37, %s2430_s25  ;;  %985 = vrot.lane.b32.xlu1 %v3099_v50, %s2430_s25 }
 0x10c   : > { %987 = vrot.lane.b32.xlu2 %v3107_v36, %s2430_s25 }
 0x10d   : > { %v709_v53 = vpop.permute.xlu0 %708  ;;  %v711_v59 = vpop.permute.xlu1 %710 }
 0x10e   : > { %786 = vst.msk [vmem:[#allocation2 + $0x98] sm:$0xff] %vm766_vm2, %v709_v53  ;;  %v731_v45 = vpop.permute.xlu2 %730  ;;  %v3738_v53 = vld [vmem:[#allocation11_spill] sm:$0xff] }
 0x10f   : > { %787 = vst.msk [vmem:[#allocation2 + $0xa0] sm:$0xff] %vm766_vm2, %v711_v59 }
 0x110   : > { %797 = vst.msk [vmem:[#allocation2 + $0xf0] sm:$0xff] %vm766_vm2, %v731_v45  ;;  %v3739_v45 = vld [vmem:[#allocation12_spill] sm:$0xff] }
 0x113   : > { %1053 = vrot.lane.b32.xlu0 %v2491_v1, %s2431_s30  ;;  %1055 = vrot.lane.b32.xlu1 %v2503_v4, %s2431_s30 }
 0x114   : > { %1057 = vrot.lane.b32.xlu2 %v2497_v2, %s2431_s30 }
 0x115   : > { %v715_v51 = vpop.permute.xlu0 %714  ;;  %v717_v39 = vpop.permute.xlu1 %716 }
 0x116   : > { %789 = vst.msk [vmem:[#allocation2 + $0xb0] sm:$0xff] %vm766_vm2, %v715_v51  ;;  %v863_v3 = vpop.permute.xlu2 %862  ;;  %v3740_v51 = vld [vmem:[#allocation13_spill] sm:$0xff] }
 0x117   : > { %790 = vst.msk [vmem:[#allocation2 + $0xb8] sm:$0xff] %vm766_vm2, %v717_v39 }
 0x118   : > { %952 = vst.msk [vmem:[#allocation2 + $0x8] sm:$0xff] %vm950_vm3, %v863_v3 }
 0x11b   : > { %1059 = vrot.lane.b32.xlu0 %v2509_v5, %s2431_s30  ;;  %1061 = vrot.lane.b32.xlu1 %v2514_v6, %s2431_s30 }
 0x11c   : > { %1063 = vrot.lane.b32.xlu2 %v2517_v7, %s2431_s30 }
 0x11d   : > { %v721_v1 = vpop.permute.xlu0 %720  ;;  %v723_v4 = vpop.permute.xlu1 %722 }
 0x11e   : > { %792 = vst.msk [vmem:[#allocation2 + $0xc8] sm:$0xff] %vm766_vm2, %v721_v1  ;;  %v869_v2 = vpop.permute.xlu2 %868  ;;  %v3741_v1 = vld [vmem:[#allocation14_spill] sm:$0xff] }
 0x11f   : > { %793 = vst.msk [vmem:[#allocation2 + $0xd0] sm:$0xff] %vm766_vm2, %v723_v4 }
 0x120   : > { %955 = vst.msk [vmem:[#allocation2 + $0x20] sm:$0xff] %vm950_vm3, %v869_v2  ;;  %v3742_v2 = vld [vmem:[#allocation15_spill] sm:$0xff] }
 0x123   : > { %1065 = vrot.lane.b32.xlu0 %v2524_v8, %s2431_s30  ;;  %1067 = vrot.lane.b32.xlu1 %v2529_v9, %s2431_s30 }
 0x124   : > { %1069 = vrot.lane.b32.xlu2 %v2532_v10, %s2431_s30 }
 0x125   : > { %v727_v5 = vpop.permute.xlu0 %726  ;;  %v729_v6 = vpop.permute.xlu1 %728 }
 0x126   : > { %795 = vst.msk [vmem:[#allocation2 + $0xe0] sm:$0xff] %vm766_vm2, %v727_v5  ;;  %v875_v7 = vpop.permute.xlu2 %874  ;;  %v3743_v5 = vld [vmem:[#allocation16_spill] sm:$0xff] }
 0x127   : > { %796 = vst.msk [vmem:[#allocation2 + $0xe8] sm:$0xff] %vm766_vm2, %v729_v6 }
 0x128   : > { %958 = vst.msk [vmem:[#allocation2 + $0x38] sm:$0xff] %vm950_vm3, %v875_v7 }
 0x12b   : > { %1071 = vrot.lane.b32.xlu0 %v2539_v11, %s2431_s30  ;;  %1073 = vrot.lane.b32.xlu1 %v2544_v12, %s2431_s30 }
 0x12c   : > { %1075 = vrot.lane.b32.xlu2 %v2547_v13, %s2431_s30 }
 0x12d   : > { %v733_v8 = vpop.permute.xlu0 %732  ;;  %v861_v9 = vpop.permute.xlu1 %860 }
 0x12e   : > { %798 = vst.msk [vmem:[#allocation2 + $0xf8] sm:$0xff] %vm766_vm2, %v733_v8  ;;  %v881_v10 = vpop.permute.xlu2 %880  ;;  %v3744_v8 = vld [vmem:[#allocation17_spill] sm:$0xff] }
 0x12f   : > { %951 = vst.msk [vmem:[#allocation2] sm:$0xff] %vm950_vm3, %v861_v9 }
 0x130   : > { %961 = vst.msk [vmem:[#allocation2 + $0x50] sm:$0xff] %vm950_vm3, %v881_v10  ;;  %v3745_v10 = vld [vmem:[#allocation18_spill] sm:$0xff] }
 0x133   : > { %1077 = vrot.lane.b32.xlu0 %v2554_v14, %s2431_s30  ;;  %1079 = vrot.lane.b32.xlu1 %v2559_v15, %s2431_s30 }
 0x134   : > { %1081 = vrot.lane.b32.xlu2 %v2562_v16, %s2431_s30 }
 0x135   : > { %v865_v11 = vpop.permute.xlu0 %864  ;;  %v867_v12 = vpop.permute.xlu1 %866 }
 0x136   : > { %953 = vst.msk [vmem:[#allocation2 + $0x10] sm:$0xff] %vm950_vm3, %v865_v11  ;;  %v887_v13 = vpop.permute.xlu2 %886  ;;  %v3746_v11 = vld [vmem:[#allocation19_spill] sm:$0xff] }
 0x137   : > { %954 = vst.msk [vmem:[#allocation2 + $0x18] sm:$0xff] %vm950_vm3, %v867_v12 }
 0x138   : > { %964 = vst.msk [vmem:[#allocation2 + $0x68] sm:$0xff] %vm950_vm3, %v887_v13 }
 0x13b   : > { %1083 = vrot.lane.b32.xlu0 %v2569_v17, %s2431_s30  ;;  %1085 = vrot.lane.b32.xlu1 %v2574_v18, %s2431_s30 }
 0x13c   : > { %1087 = vrot.lane.b32.xlu2 %v2577_v19, %s2431_s30 }
 0x13d   : > { %v871_v14 = vpop.permute.xlu0 %870  ;;  %v873_v15 = vpop.permute.xlu1 %872 }
 0x13e   : > { %956 = vst.msk [vmem:[#allocation2 + $0x28] sm:$0xff] %vm950_vm3, %v871_v14  ;;  %v893_v16 = vpop.permute.xlu2 %892  ;;  %v3747_v14 = vld [vmem:[#allocation20_spill] sm:$0xff] }
 0x13f   : > { %957 = vst.msk [vmem:[#allocation2 + $0x30] sm:$0xff] %vm950_vm3, %v873_v15 }
 0x140   : > { %967 = vst.msk [vmem:[#allocation2 + $0x80] sm:$0xff] %vm950_vm3, %v893_v16  ;;  %v3748_v16 = vld [vmem:[#allocation21_spill] sm:$0xff] }
 0x143   : > { %1089 = vrot.lane.b32.xlu0 %v2584_v20, %s2431_s30  ;;  %1091 = vrot.lane.b32.xlu1 %v2589_v21, %s2431_s30 }
 0x144   : > { %1093 = vrot.lane.b32.xlu2 %v2592_v22, %s2431_s30 }
 0x145   : > { %v877_v17 = vpop.permute.xlu0 %876  ;;  %v879_v18 = vpop.permute.xlu1 %878 }
 0x146   : > { %959 = vst.msk [vmem:[#allocation2 + $0x40] sm:$0xff] %vm950_vm3, %v877_v17  ;;  %v899_v19 = vpop.permute.xlu2 %898  ;;  %v3749_v17 = vld [vmem:[#allocation22_spill] sm:$0xff] }
 0x147   : > { %960 = vst.msk [vmem:[#allocation2 + $0x48] sm:$0xff] %vm950_vm3, %v879_v18 }
 0x148   : > { %970 = vst.msk [vmem:[#allocation2 + $0x98] sm:$0xff] %vm950_vm3, %v899_v19 }
 0x14b   : > { %1095 = vrot.lane.b32.xlu0 %v2599_v23, %s2431_s30  ;;  %1097 = vrot.lane.b32.xlu1 %v2604_v24, %s2431_s30 }
 0x14c   : > { %1099 = vrot.lane.b32.xlu2 %v2607_v25, %s2431_s30 }
 0x14d   : > { %v883_v20 = vpop.permute.xlu0 %882  ;;  %v885_v21 = vpop.permute.xlu1 %884 }
 0x14e   : > { %962 = vst.msk [vmem:[#allocation2 + $0x58] sm:$0xff] %vm950_vm3, %v883_v20  ;;  %v905_v22 = vpop.permute.xlu2 %904  ;;  %v3750_v20 = vld [vmem:[#allocation23_spill] sm:$0xff] }
 0x14f   : > { %963 = vst.msk [vmem:[#allocation2 + $0x60] sm:$0xff] %vm950_vm3, %v885_v21 }
 0x150   : > { %973 = vst.msk [vmem:[#allocation2 + $0xb0] sm:$0xff] %vm950_vm3, %v905_v22  ;;  %v3751_v22 = vld [vmem:[#allocation24_spill] sm:$0xff] }
 0x153   : > { %1101 = vrot.lane.b32.xlu0 %v2614_v26, %s2431_s30  ;;  %1103 = vrot.lane.b32.xlu1 %v2619_v27, %s2431_s30 }
 0x154   : > { %1105 = vrot.lane.b32.xlu2 %v2622_v28, %s2431_s30  ;;  %v3204_v28 = vld [vmem:[%s3092_s29 + $0x1] sm:$0xff] }
 0x155   : > { %v889_v23 = vpop.permute.xlu0 %888  ;;  %v891_v24 = vpop.permute.xlu1 %890 }
 0x156   : > { %965 = vst.msk [vmem:[#allocation2 + $0x70] sm:$0xff] %vm950_vm3, %v889_v23  ;;  %v911_v25 = vpop.permute.xlu2 %910  ;;  %v3752_v23 = vld [vmem:[#allocation25_spill] sm:$0xff] }
 0x157   : > { %966 = vst.msk [vmem:[#allocation2 + $0x78] sm:$0xff] %vm950_vm3, %v891_v24 }
 0x158   : > { %976 = vst.msk [vmem:[#allocation2 + $0xc8] sm:$0xff] %vm950_vm3, %v911_v25 }
 0x15b   : > { %1107 = vrot.lane.b32.xlu0 %v2629_v29, %s2431_s30  ;;  %1109 = vrot.lane.b32.xlu1 %v2634_v30, %s2431_s30 }
 0x15c   : > { %1111 = vrot.lane.b32.xlu2 %v2637_v31, %s2431_s30  ;;  %v3730_v31 = vld [vmem:[#allocation3_spill] sm:$0xff] }
 0x15d   : > { %v895_v26 = vpop.permute.xlu0 %894  ;;  %v897_v27 = vpop.permute.xlu1 %896 }
 0x15e   : > { %968 = vst.msk [vmem:[#allocation2 + $0x88] sm:$0xff] %vm950_vm3, %v895_v26  ;;  %v917_v41 = vpop.permute.xlu2 %916  ;;  %v3753_v26 = vld [vmem:[#allocation26_spill] sm:$0xff] }
 0x15f   : > { %969 = vst.msk [vmem:[#allocation2 + $0x90] sm:$0xff] %vm950_vm3, %v897_v27 }
 0x160   : > { %979 = vst.msk [vmem:[#allocation2 + $0xe0] sm:$0xff] %vm950_vm3, %v917_v41  ;;  %v3754_v41 = vld [vmem:[#allocation27_spill] sm:$0xff] }
 0x163   : > { %1178 = vrot.lane.b32.xlu0 %v3204_v28, %s2431_s30  ;;  %1180 = vrot.lane.b32.xlu1 %v3207_v38, %s2431_s30 }
 0x164   : > { %1246 = vrot.lane.b32.xlu2 %v3730_v31, %s2432_s5 }
 0x165   : > { %v901_v29 = vpop.permute.xlu0 %900  ;;  %v903_v30 = vpop.permute.xlu1 %902 }
 0x166   : > { %971 = vst.msk [vmem:[#allocation2 + $0xa0] sm:$0xff] %vm950_vm3, %v901_v29  ;;  %v988_v52 = vpop.permute.xlu2 %987  ;;  %v3755_v29 = vld [vmem:[#allocation28_spill] sm:$0xff] }
 0x167   : > { %972 = vst.msk [vmem:[#allocation2 + $0xa8] sm:$0xff] %vm950_vm3, %v903_v30 }
 0x168   : > { %992 = vst.msk [vmem:[#allocation2 + $0xf8] sm:$0xff] %vm950_vm3, %v988_v52  ;;  %v3756_v52 = vld [vmem:[#allocation29_spill] sm:$0xff] }
 0x16b   : > { %1248 = vrot.lane.b32.xlu0 %v3731_v48, %s2432_s5  ;;  %1250 = vrot.lane.b32.xlu1 %v3732_v62, %s2432_s5  ;;  %v3757_v62 = vld [vmem:[#allocation30_spill] sm:$0xff] }
 0x16c   : > { %1252 = vrot.lane.b32.xlu2 %v3733_v61, %s2432_s5 }
 0x16d   : > { %v907_v44 = vpop.permute.xlu0 %906  ;;  %v909_v32 = vpop.permute.xlu1 %908 }
 0x16e   : > { %974 = vst.msk [vmem:[#allocation2 + $0xb8] sm:$0xff] %vm950_vm3, %v907_v44  ;;  %v1058_v54 = vpop.permute.xlu2 %1057  ;;  %v3758_v44 = vld [vmem:[#allocation31_spill] sm:$0xff] }
 0x16f   : > { %975 = vst.msk [vmem:[#allocation2 + $0xc0] sm:$0xff] %vm950_vm3, %v909_v32  ;;  %v3308_v32 = vld [vmem:[%s3092_s29 + $0x2] sm:$0xff] }
 0x170   : > { %1146 = vst.msk [vmem:[#allocation2 + $0x10] sm:$0xff] %vm1143_vm4, %v1058_v54 }
 0x173   : > { %1254 = vrot.lane.b32.xlu0 %v3734_v49, %s2432_s5  ;;  %1256 = vrot.lane.b32.xlu1 %v3735_v57, %s2432_s5  ;;  %v3315_v49 = vld [vmem:[%s3092_s29 + $0xa] sm:$0xff] }
 0x174   : > { %1258 = vrot.lane.b32.xlu2 %v3233_v47, %s2432_s5  ;;  %v2279_v57 = vld [vmem:[%s2487_s22 + $0x30] sm:$0xff] }
 0x175   : > { %v913_v33 = vpop.permute.xlu0 %912  ;;  %v915_v46 = vpop.permute.xlu1 %914 }
 0x176   : > { %977 = vst.msk [vmem:[#allocation2 + $0xd0] sm:$0xff] %vm950_vm3, %v913_v33  ;;  %v1064_v55 = vpop.permute.xlu2 %1063 }
 0x177   : > { %978 = vst.msk [vmem:[#allocation2 + $0xd8] sm:$0xff] %vm950_vm3, %v915_v46  ;;  %v2280_v46 = vld [vmem:[%s2487_s22 + $0x38] sm:$0xff] }
 0x178   : > { %1149 = vst.msk [vmem:[#allocation2 + $0x28] sm:$0xff] %vm1143_vm4, %v1064_v55 }
 0x17b   : > { %1260 = vrot.lane.b32.xlu0 %v3736_v42, %s2432_s5  ;;  %1262 = vrot.lane.b32.xlu1 %v3737_v56, %s2432_s5 }
 0x17c   : > { %1264 = vrot.lane.b32.xlu2 %v3738_v53, %s2432_s5 }
 0x17d   : > { %v919_v60 = vpop.permute.xlu0 %918  ;;  %v986_v34 = vpop.permute.xlu1 %985 }
 0x17e   : > { %980 = vst.msk [vmem:[#allocation2 + $0xe8] sm:$0xff] %vm950_vm3, %v919_v60  ;;  %v1070_v59 = vpop.permute.xlu2 %1069  ;;  %v2283_v60 = vld [vmem:[%s2487_s22 + $0x60] sm:$0xff] }
 0x17f   : > { %991 = vst.msk [vmem:[#allocation2 + $0xf0] sm:$0xff] %vm950_vm3, %v986_v34 }
 0x180   : > { %1152 = vst.msk [vmem:[#allocation2 + $0x40] sm:$0xff] %vm1143_vm4, %v1070_v59 }
 0x183   : > { %1266 = vrot.lane.b32.xlu0 %v3739_v45, %s2432_s5  ;;  %1268 = vrot.lane.b32.xlu1 %v3740_v51, %s2432_s5  ;;  %v1552_v51 = vld [vmem:[%s3092_s29 + $0x20] sm:$0xff] }
 0x184   : > { %1270 = vrot.lane.b32.xlu2 %v3741_v1, %s2432_s5  ;;  %v1745_v1 = vld [vmem:[%s3092_s29 + $0x21] sm:$0xff] }
 0x185   : > { %v1054_v39 = vpop.permute.xlu0 %1053  ;;  %v1056_v3 = vpop.permute.xlu1 %1055 }
 0x186   : > { %1144 = vst.msk [vmem:[#allocation2] sm:$0xff] %vm1143_vm4, %v1054_v39  ;;  %v1076_v4 = vpop.permute.xlu2 %1075 }
 0x187   : > { %1145 = vst.msk [vmem:[#allocation2 + $0x8] sm:$0xff] %vm1143_vm4, %v1056_v3 }
 0x188   : > { %1155 = vst.msk [vmem:[#allocation2 + $0x58] sm:$0xff] %vm1143_vm4, %v1076_v4  ;;  %v2350_v4 = vld [vmem:[%s2487_s22 + $0xe2] sm:$0xff] }
 0x18b   : > { %1272 = vrot.lane.b32.xlu0 %v3742_v2, %s2432_s5  ;;  %1274 = vrot.lane.b32.xlu1 %v3743_v5, %s2432_s5 }
 0x18c   : > { %1276 = vrot.lane.b32.xlu2 %v3744_v8, %s2432_s5 }
 0x18d   : > { %v1060_v6 = vpop.permute.xlu0 %1059  ;;  %v1062_v7 = vpop.permute.xlu1 %1061 }
 0x18e   : > { %1147 = vst.msk [vmem:[#allocation2 + $0x18] sm:$0xff] %vm1143_vm4, %v1060_v6  ;;  %v1082_v9 = vpop.permute.xlu2 %1081 }
 0x18f   : > { %1148 = vst.msk [vmem:[#allocation2 + $0x20] sm:$0xff] %vm1143_vm4, %v1062_v7  ;;  %v1551_v7 = vld [vmem:[%s3092_s29 + $0x18] sm:$0xff] }
 0x190   : > { %1158 = vst.msk [vmem:[#allocation2 + $0x70] sm:$0xff] %vm1143_vm4, %v1082_v9  ;;  %v2321_v9 = vld [vmem:[%s2487_s22 + $0xd9] sm:$0xff] }
 0x193   : > { %1278 = vrot.lane.b32.xlu0 %v3745_v10, %s2432_s5  ;;  %1280 = vrot.lane.b32.xlu1 %v3746_v11, %s2432_s5 }
 0x194   : > { %1282 = vrot.lane.b32.xlu2 %v3747_v14, %s2432_s5 }
 0x195   : > { %v1066_v12 = vpop.permute.xlu0 %1065  ;;  %v1068_v13 = vpop.permute.xlu1 %1067 }
 0x196   : > { %1150 = vst.msk [vmem:[#allocation2 + $0x30] sm:$0xff] %vm1143_vm4, %v1066_v12  ;;  %v1088_v15 = vpop.permute.xlu2 %1087  ;;  %v1744_v12 = vld [vmem:[%s3092_s29 + $0x19] sm:$0xff] }
 0x197   : > { %1151 = vst.msk [vmem:[#allocation2 + $0x38] sm:$0xff] %vm1143_vm4, %v1068_v13  ;;  %v2349_v13 = vld [vmem:[%s2487_s22 + $0xda] sm:$0xff] }
 0x198   : > { %1161 = vst.msk [vmem:[#allocation2 + $0x88] sm:$0xff] %vm1143_vm4, %v1088_v15 }
 0x19b   : > { %1284 = vrot.lane.b32.xlu0 %v3748_v16, %s2432_s5  ;;  %1286 = vrot.lane.b32.xlu1 %v3749_v17, %s2432_s5  ;;  %v2292_v17 = vld [vmem:[%s2487_s22 + $0xc8] sm:$0xff] }
 0x19c   : > { %1288 = vrot.lane.b32.xlu2 %v3750_v20, %s2432_s5 }
 0x19d   : > { %v1072_v18 = vpop.permute.xlu0 %1071  ;;  %v1074_v19 = vpop.permute.xlu1 %1073 }
 0x19e   : > { %1153 = vst.msk [vmem:[#allocation2 + $0x48] sm:$0xff] %vm1143_vm4, %v1072_v18  ;;  %v1094_v21 = vpop.permute.xlu2 %1093 }
 0x19f   : > { %1154 = vst.msk [vmem:[#allocation2 + $0x50] sm:$0xff] %vm1143_vm4, %v1074_v19  ;;  %v2320_v19 = vld [vmem:[%s2487_s22 + $0xc9] sm:$0xff] }
 0x1a0   : > { %1164 = vst.msk [vmem:[#allocation2 + $0xa0] sm:$0xff] %vm1143_vm4, %v1094_v21 }
 0x1a3   : > { %1290 = vrot.lane.b32.xlu0 %v3751_v22, %s2432_s5  ;;  %1292 = vrot.lane.b32.xlu1 %v3752_v23, %s2432_s5  ;;  %v2348_v22 = vld [vmem:[%s2487_s22 + $0xca] sm:$0xff] }
 0x1a4   : > { %1294 = vrot.lane.b32.xlu2 %v3753_v26, %s2432_s5 }
 0x1a5   : > { %v1078_v24 = vpop.permute.xlu0 %1077  ;;  %v1080_v25 = vpop.permute.xlu1 %1079 }
 0x1a6   : > { %1156 = vst.msk [vmem:[#allocation2 + $0x60] sm:$0xff] %vm1143_vm4, %v1078_v24  ;;  %v1100_v27 = vpop.permute.xlu2 %1099 }
 0x1a7   : > { %1157 = vst.msk [vmem:[#allocation2 + $0x68] sm:$0xff] %vm1143_vm4, %v1080_v25  ;;  %v2291_v25 = vld [vmem:[%s2487_s22 + $0xc0] sm:$0xff] }
 0x1a8   : > { %1167 = vst.msk [vmem:[#allocation2 + $0xb8] sm:$0xff] %vm1143_vm4, %v1100_v27 }
 0x1ab   : > { %1296 = vrot.lane.b32.xlu0 %v3754_v41, %s2432_s5  ;;  %1298 = vrot.lane.b32.xlu1 %v3755_v29, %s2432_s5  ;;  %v2347_v29 = vld [vmem:[%s2487_s22 + $0xc2] sm:$0xff] }
 0x1ac   : > { %1300 = vrot.lane.b32.xlu2 %v3756_v52, %s2432_s5  ;;  %v2290_v52 = vld [vmem:[%s2487_s22 + $0xb0] sm:$0xff] }
 0x1ad   : > { %v1084_v30 = vpop.permute.xlu0 %1083  ;;  %v1086_v31 = vpop.permute.xlu1 %1085 }
 0x1ae   : > { %1159 = vst.msk [vmem:[#allocation2 + $0x78] sm:$0xff] %vm1143_vm4, %v1084_v30  ;;  %v1106_v48 = vpop.permute.xlu2 %1105 }
 0x1af   : > { %1160 = vst.msk [vmem:[#allocation2 + $0x80] sm:$0xff] %vm1143_vm4, %v1086_v31 }
 0x1b0   : > { %1170 = vst.msk [vmem:[#allocation2 + $0xd0] sm:$0xff] %vm1143_vm4, %v1106_v48 }
 0x1b3   : > { %1302 = vrot.lane.b32.xlu0 %v3757_v62, %s2432_s5  ;;  %1304 = vrot.lane.b32.xlu1 %v3758_v44, %s2432_s5 }
 0x1b4   : > { %1371 = vrot.lane.b32.xlu2 %v3308_v32, %s2432_s5 }
 0x1b5   : > { %v1090_v61 = vpop.permute.xlu0 %1089  ;;  %v1092_v54 = vpop.permute.xlu1 %1091 }
 0x1b6   : > { %1162 = vst.msk [vmem:[#allocation2 + $0x90] sm:$0xff] %vm1143_vm4, %v1090_v61  ;;  %v1112_v33 = vpop.permute.xlu2 %1111  ;;  %v2346_v61 = vld [vmem:[%s2487_s22 + $0xb2] sm:$0xff] }
 0x1b7   : > { %1163 = vst.msk [vmem:[#allocation2 + $0x98] sm:$0xff] %vm1143_vm4, %v1092_v54 }
 0x1b8   : > { %1173 = vst.msk [vmem:[#allocation2 + $0xe8] sm:$0xff] %vm1143_vm4, %v1112_v33  ;;  %v2289_v33 = vld [vmem:[%s2487_s22 + $0xa8] sm:$0xff] }
 0x1bb   : > { %1373 = vrot.lane.b32.xlu0 %v3315_v49, %s2432_s5  ;;  %1436 = vrot.lane.b32.xlu1 %v2279_v57, %s2433_s6 }
 0x1bc   : > { %1438 = vrot.lane.b32.xlu2 %v2280_v46, %s2433_s6  ;;  %v2305_v46 = vld [vmem:[%s2487_s22 + $0x168] sm:$0xff] }
 0x1bd   : > { %v1096_v55 = vpop.permute.xlu0 %1095  ;;  %v1098_v42 = vpop.permute.xlu1 %1097 }
 0x1be   : > { %1165 = vst.msk [vmem:[#allocation2 + $0xa8] sm:$0xff] %vm1143_vm4, %v1096_v55  ;;  %v1247_v56 = vpop.permute.xlu2 %1246 }
 0x1bf   : > { %1166 = vst.msk [vmem:[#allocation2 + $0xb0] sm:$0xff] %vm1143_vm4, %v1098_v42  ;;  %v2317_v42 = vld [vmem:[%s2487_s22 + $0xa9] sm:$0xff] }
 0x1c0   : > { %1337 = vst.msk [vmem:[#allocation2] sm:$0xff] %vm1336_vm5, %v1247_v56 }
 0x1c3   : > { %1440 = vrot.lane.b32.xlu0 %v2773_v63, %s2433_s6  ;;  %1442 = vrot.lane.b32.xlu1 %v2777_v0, %s2433_s6  ;;  %v2286_v63 = vld [vmem:[%s2487_s22 + $0x80] sm:$0xff] }
 0x1c4   : > { %1444 = vrot.lane.b32.xlu2 %v2283_v60, %s2433_s6 }
 0x1c5   : > { %v1102_v34 = vpop.permute.xlu0 %1101  ;;  %v1104_v53 = vpop.permute.xlu1 %1103 }
 0x1c6   : > { %1168 = vst.msk [vmem:[#allocation2 + $0xc0] sm:$0xff] %vm1143_vm4, %v1102_v34  ;;  %v1253_v59 = vpop.permute.xlu2 %1252  ;;  %v2333_v34 = vld [vmem:[%s2487_s22 + $0x169] sm:$0xff] }
 0x1c7   : > { %1169 = vst.msk [vmem:[#allocation2 + $0xc8] sm:$0xff] %vm1143_vm4, %v1104_v53  ;;  %v2345_v53 = vld [vmem:[%s2487_s22 + $0xaa] sm:$0xff] }
 0x1c8   : > { %1340 = vst.msk [vmem:[#allocation2 + $0x18] sm:$0xff] %vm1336_vm5, %v1253_v59 }
 0x1cb   : > { %1446 = vrot.lane.b32.xlu0 %v2796_v35, %s2433_s6  ;;  %1448 = vrot.lane.b32.xlu1 %v2801_v40, %s2433_s6  ;;  %v2322_v35 = vld [vmem:[%s2487_s22 + $0xe1] sm:$0xff] }
 0x1cc   : > { %1450 = vrot.lane.b32.xlu2 %v2286_v63, %s2433_s6  ;;  %v2361_v63 = vld [vmem:[%s2487_s22 + $0x16a] sm:$0xff] }
 0x1cd   : > { %v1108_v0 = vpop.permute.xlu0 %1107  ;;  %v1110_v45 = vpop.permute.xlu1 %1109 }
 0x1ce   : > { %1171 = vst.msk [vmem:[#allocation2 + $0xd8] sm:$0xff] %vm1143_vm4, %v1108_v0  ;;  %v1259_v39 = vpop.permute.xlu2 %1258 }
 0x1cf   : > { %1172 = vst.msk [vmem:[#allocation2 + $0xe0] sm:$0xff] %vm1143_vm4, %v1110_v45 }
 0x1d0   : > { %1343 = vst.msk [vmem:[#allocation2 + $0x30] sm:$0xff] %vm1336_vm5, %v1259_v39  ;;  %v2304_v39 = vld [vmem:[%s2487_s22 + $0x158] sm:$0xff] }
 0x1d3   : > { %1466 = vrot.lane.b32.xlu0 %v2883_v43, %s2433_s6  ;;  %1563 = vrot.lane.b32.xlu1 %v1552_v51, %s2433_s6  ;;  %v1938_v43 = vld [vmem:[%s3092_s29 + $0x22] sm:$0xff]  ;;  %v2288_v51 = vld [vmem:[%s2487_s22 + $0x98] sm:$0xff] }
 0x1d4   : > { %1659 = vrot.lane.b32.xlu2 %v2322_v35, %s2434_s7 }
 0x1d5   : > { %v1179_v40 = vpop.permute.xlu0 %1178  ;;  %v1181_v3 = vpop.permute.xlu1 %1180 }
 0x1d6   : > { %1184 = vst.msk [vmem:[#allocation2 + $0xf0] sm:$0xff] %vm1143_vm4, %v1179_v40  ;;  %v1265_v2 = vpop.permute.xlu2 %1264  ;;  %v2316_v40 = vld [vmem:[%s2487_s22 + $0x99] sm:$0xff] }
 0x1d7   : > { %1185 = vst.msk [vmem:[#allocation2 + $0xf8] sm:$0xff] %vm1143_vm4, %v1181_v3 }
 0x1d8   : > { %1346 = vst.msk [vmem:[#allocation2 + $0x48] sm:$0xff] %vm1336_vm5, %v1265_v2  ;;  %v2344_v2 = vld [vmem:[%s2487_s22 + $0x9a] sm:$0xff] }
 0x1db   : > { %1756 = vrot.lane.b32.xlu0 %v1745_v1, %s2434_s7  ;;  %1852 = vrot.lane.b32.xlu1 %v2350_v4, %s2435_s8  ;;  %v2332_v4 = vld [vmem:[%s2487_s22 + $0x159] sm:$0xff] }
 0x1dc   : > { %1949 = vrot.lane.b32.xlu2 %v1938_v43, %s2435_s8 }
 0x1dd   : > { %v1249_v5 = vpop.permute.xlu0 %1248  ;;  %v1251_v6 = vpop.permute.xlu1 %1250 }
 0x1de   : > { %1338 = vst.msk [vmem:[#allocation2 + $0x8] sm:$0xff] %vm1336_vm5, %v1249_v5  ;;  %v1271_v8 = vpop.permute.xlu2 %1270  ;;  %v2360_v5 = vld [vmem:[%s2487_s22 + $0x15a] sm:$0xff] }
 0x1df   : > { %1339 = vst.msk [vmem:[#allocation2 + $0x10] sm:$0xff] %vm1336_vm5, %v1251_v6 }
 0x1e0   : > { %1349 = vst.msk [vmem:[#allocation2 + $0x60] sm:$0xff] %vm1336_vm5, %v1271_v8  ;;  %v2287_v8 = vld [vmem:[%s2487_s22 + $0x90] sm:$0xff] }
 0x1e3   : > { %1464 = vrot.lane.b32.xlu0 %v2878_v58, %s2433_s6  ;;  %1561 = vrot.lane.b32.xlu1 %v1551_v7, %s2433_s6  ;;  %v1937_v58 = vld [vmem:[%s3092_s29 + $0x1a] sm:$0xff] }
 0x1e4   : > { %1657 = vrot.lane.b32.xlu2 %v2321_v9, %s2434_s7  ;;  %v2303_v9 = vld [vmem:[%s2487_s22 + $0x150] sm:$0xff] }
 0x1e5   : > { %v1255_v10 = vpop.permute.xlu0 %1254  ;;  %v1257_v11 = vpop.permute.xlu1 %1256 }
 0x1e6   : > { %1341 = vst.msk [vmem:[#allocation2 + $0x20] sm:$0xff] %vm1336_vm5, %v1255_v10  ;;  %v1277_v14 = vpop.permute.xlu2 %1276 }
 0x1e7   : > { %1342 = vst.msk [vmem:[#allocation2 + $0x28] sm:$0xff] %vm1336_vm5, %v1257_v11  ;;  %v2315_v11 = vld [vmem:[%s2487_s22 + $0x91] sm:$0xff] }
 0x1e8   : > { %1352 = vst.msk [vmem:[#allocation2 + $0x78] sm:$0xff] %vm1336_vm5, %v1277_v14  ;;  %v2331_v14 = vld [vmem:[%s2487_s22 + $0x151] sm:$0xff] }
 0x1eb   : > { %1754 = vrot.lane.b32.xlu0 %v1744_v12, %s2434_s7  ;;  %1850 = vrot.lane.b32.xlu1 %v2349_v13, %s2435_s8 }
 0x1ec   : > { %1947 = vrot.lane.b32.xlu2 %v1937_v58, %s2435_s8  ;;  %v2343_v58 = vld [vmem:[%s2487_s22 + $0x92] sm:$0xff] }
 0x1ed   : > { %v1261_v15 = vpop.permute.xlu0 %1260  ;;  %v1263_v16 = vpop.permute.xlu1 %1262 }
 0x1ee   : > { %1344 = vst.msk [vmem:[#allocation2 + $0x38] sm:$0xff] %vm1336_vm5, %v1261_v15  ;;  %v1283_v18 = vpop.permute.xlu2 %1282 }
 0x1ef   : > { %1345 = vst.msk [vmem:[#allocation2 + $0x40] sm:$0xff] %vm1336_vm5, %v1263_v16  ;;  %v2359_v16 = vld [vmem:[%s2487_s22 + $0x152] sm:$0xff] }
 0x1f0   : > { %1355 = vst.msk [vmem:[#allocation2 + $0x90] sm:$0xff] %vm1336_vm5, %v1283_v18 }
 0x1f3   : > { %1462 = vrot.lane.b32.xlu0 %v2292_v17, %s2433_s6  ;;  %1559 = vrot.lane.b32.xlu1 %v3107_v36, %s2433_s6 }
 0x1f4   : > { %1655 = vrot.lane.b32.xlu2 %v2320_v19, %s2434_s7  ;;  %v2302_v19 = vld [vmem:[%s2487_s22 + $0x140] sm:$0xff] }
 0x1f5   : > { %v1267_v20 = vpop.permute.xlu0 %1266  ;;  %v1269_v21 = vpop.permute.xlu1 %1268 }
 0x1f6   : > { %1347 = vst.msk [vmem:[#allocation2 + $0x50] sm:$0xff] %vm1336_vm5, %v1267_v20  ;;  %v1289_v23 = vpop.permute.xlu2 %1288  ;;  %v2314_v20 = vld [vmem:[%s2487_s22 + $0x81] sm:$0xff] }
 0x1f7   : > { %1348 = vst.msk [vmem:[#allocation2 + $0x58] sm:$0xff] %vm1336_vm5, %v1269_v21 }
 0x1f8   : > { %1358 = vst.msk [vmem:[#allocation2 + $0xa8] sm:$0xff] %vm1336_vm5, %v1289_v23 }
 0x1fb   : > { %1752 = vrot.lane.b32.xlu0 %v3207_v38, %s2434_s7  ;;  %1848 = vrot.lane.b32.xlu1 %v2348_v22, %s2435_s8  ;;  %v2319_v38 = vld [vmem:[%s2487_s22 + $0xc1] sm:$0xff] }
 0x1fc   : > { %1945 = vrot.lane.b32.xlu2 %v3315_v49, %s2435_s8  ;;  %v2330_v22 = vld [vmem:[%s2487_s22 + $0x141] sm:$0xff] }
 0x1fd   : > { %v1273_v36 = vpop.permute.xlu0 %1272  ;;  %v1275_v24 = vpop.permute.xlu1 %1274 }
 0x1fe   : > { %1350 = vst.msk [vmem:[#allocation2 + $0x68] sm:$0xff] %vm1336_vm5, %v1273_v36  ;;  %v1295_v26 = vpop.permute.xlu2 %1294 }
 0x1ff   : > { %1351 = vst.msk [vmem:[#allocation2 + $0x70] sm:$0xff] %vm1336_vm5, %v1275_v24 }
 0x200   : > { %1361 = vst.msk [vmem:[#allocation2 + $0xc0] sm:$0xff] %vm1336_vm5, %v1295_v26  ;;  %v2342_v26 = vld [vmem:[%s2487_s22 + $0x82] sm:$0xff] }
 0x203   : > { %1460 = vrot.lane.b32.xlu0 %v2291_v25, %s2433_s6  ;;  %1557 = vrot.lane.b32.xlu1 %v3099_v50, %s2433_s6 }
 0x204   : > { %1653 = vrot.lane.b32.xlu2 %v2319_v38, %s2434_s7  ;;  %v2358_v38 = vld [vmem:[%s2487_s22 + $0x142] sm:$0xff] }
 0x205   : > { %v1279_v27 = vpop.permute.xlu0 %1278  ;;  %v1281_v41 = vpop.permute.xlu1 %1280 }
 0x206   : > { %1353 = vst.msk [vmem:[#allocation2 + $0x80] sm:$0xff] %vm1336_vm5, %v1279_v27  ;;  %v1301_v30 = vpop.permute.xlu2 %1300 }
 0x207   : > { %1354 = vst.msk [vmem:[#allocation2 + $0x88] sm:$0xff] %vm1336_vm5, %v1281_v41  ;;  %v2301_v41 = vld [vmem:[%s2487_s22 + $0x138] sm:$0xff] }
 0x208   : > { %1364 = vst.msk [vmem:[#allocation2 + $0xd8] sm:$0xff] %vm1336_vm5, %v1301_v30 }
 0x20b   : > { %1750 = vrot.lane.b32.xlu0 %v3204_v28, %s2434_s7  ;;  %1846 = vrot.lane.b32.xlu1 %v2347_v29, %s2435_s8  ;;  %v2318_v28 = vld [vmem:[%s2487_s22 + $0xb1] sm:$0xff] }
 0x20c   : > { %1943 = vrot.lane.b32.xlu2 %v3308_v32, %s2435_s8  ;;  %v2334_v32 = vld [vmem:[%s2487_s22 + $0x171] sm:$0xff] }
 0x20d   : > { %v1285_v50 = vpop.permute.xlu0 %1284  ;;  %v1287_v31 = vpop.permute.xlu1 %1286 }
 0x20e   : > { %1356 = vst.msk [vmem:[#allocation2 + $0x98] sm:$0xff] %vm1336_vm5, %v1285_v50  ;;  %v1372_v48 = vpop.permute.xlu2 %1371  ;;  %v2313_v50 = vld [vmem:[%s2487_s22 + $0x79] sm:$0xff] }
 0x20f   : > { %1357 = vst.msk [vmem:[#allocation2 + $0xa0] sm:$0xff] %vm1336_vm5, %v1287_v31  ;;  %v2329_v31 = vld [vmem:[%s2487_s22 + $0x139] sm:$0xff] }
 0x210   : > { %1377 = vst.msk [vmem:[#allocation2 + $0xf0] sm:$0xff] %vm1336_vm5, %v1372_v48  ;;  %v2341_v48 = vld [vmem:[%s2487_s22 + $0x7a] sm:$0xff] }
 0x213   : > { %1458 = vrot.lane.b32.xlu0 %v2290_v52, %s2433_s6  ;;  %1490 = vrot.lane.b32.xlu1 %v3002_v37, %s2433_s6  ;;  %v2362_v37 = vld [vmem:[%s2487_s22 + $0x172] sm:$0xff] }
 0x214   : > { %1651 = vrot.lane.b32.xlu2 %v2318_v28, %s2434_s7 }
 0x215   : > { %v1291_v62 = vpop.permute.xlu0 %1290  ;;  %v1293_v44 = vpop.permute.xlu1 %1292 }
 0x216   : > { %1359 = vst.msk [vmem:[#allocation2 + $0xb0] sm:$0xff] %vm1336_vm5, %v1291_v62  ;;  %v1439_v54 = vpop.permute.xlu2 %1438 }
 0x217   : > { %1360 = vst.msk [vmem:[#allocation2 + $0xb8] sm:$0xff] %vm1336_vm5, %v1293_v44 }
 0x218   : > { %1522 = vst.msk [vmem:[#allocation2 + $0x8] sm:$0xff] %vm1520_vm6, %v1439_v54  ;;  %v2300_v54 = vld [vmem:[%s2487_s22 + $0x128] sm:$0xff] }
 0x21b   : > { %1683 = vrot.lane.b32.xlu0 %v2334_v32, %s2434_s7  ;;  %1844 = vrot.lane.b32.xlu1 %v2346_v61, %s2435_s8  ;;  %v2357_v61 = vld [vmem:[%s2487_s22 + $0x13a] sm:$0xff] }
 0x21c   : > { %1876 = vrot.lane.b32.xlu2 %v2362_v37, %s2435_s8 }
 0x21d   : > { %v1297_v49 = vpop.permute.xlu0 %1296  ;;  %v1299_v57 = vpop.permute.xlu1 %1298 }
 0x21e   : > { %1362 = vst.msk [vmem:[#allocation2 + $0xc8] sm:$0xff] %vm1336_vm5, %v1297_v49  ;;  %v1445_v55 = vpop.permute.xlu2 %1444  ;;  %v2312_v49 = vld [vmem:[%s2487_s22 + $0x69] sm:$0xff] }
 0x21f   : > { %1363 = vst.msk [vmem:[#allocation2 + $0xd0] sm:$0xff] %vm1336_vm5, %v1299_v57 }
 0x220   : > { %1525 = vst.msk [vmem:[#allocation2 + $0x20] sm:$0xff] %vm1520_vm6, %v1445_v55  ;;  %v2340_v55 = vld [vmem:[%s2487_s22 + $0x6a] sm:$0xff] }
 0x223   : > { %1456 = vrot.lane.b32.xlu0 %v2289_v33, %s2433_s6  ;;  %1488 = vrot.lane.b32.xlu1 %v2305_v46, %s2433_s6  ;;  %v2328_v46 = vld [vmem:[%s2487_s22 + $0x129] sm:$0xff] }
 0x224   : > { %1649 = vrot.lane.b32.xlu2 %v2317_v42, %s2434_s7 }
 0x225   : > { %v1303_v56 = vpop.permute.xlu0 %1302  ;;  %v1305_v60 = vpop.permute.xlu1 %1304 }
 0x226   : > { %1365 = vst.msk [vmem:[#allocation2 + $0xe0] sm:$0xff] %vm1336_vm5, %v1303_v56  ;;  %v1451_v59 = vpop.permute.xlu2 %1450  ;;  %v2356_v56 = vld [vmem:[%s2487_s22 + $0x12a] sm:$0xff] }
 0x227   : > { %1366 = vst.msk [vmem:[#allocation2 + $0xe8] sm:$0xff] %vm1336_vm5, %v1305_v60 }
 0x228   : > { %1528 = vst.msk [vmem:[#allocation2 + $0x38] sm:$0xff] %vm1520_vm6, %v1451_v59 }
 0x22b   : > { %1681 = vrot.lane.b32.xlu0 %v2333_v34, %s2434_s7  ;;  %1842 = vrot.lane.b32.xlu1 %v2345_v53, %s2435_s8 }
 0x22c   : > { %1874 = vrot.lane.b32.xlu2 %v2361_v63, %s2435_s8  ;;  %v2299_v63 = vld [vmem:[%s2487_s22 + $0x120] sm:$0xff] }
 0x22d   : > { %v1374_v0 = vpop.permute.xlu0 %1373  ;;  %v1437_v45 = vpop.permute.xlu1 %1436 }
 0x22e   : > { %1378 = vst.msk [vmem:[#allocation2 + $0xf8] sm:$0xff] %vm1336_vm5, %v1374_v0  ;;  %v1660_v35 = vpop.permute.xlu2 %1659  ;;  %v2311_v0 = vld [vmem:[%s2487_s22 + $0x61] sm:$0xff] }
 0x22f   : > { %1521 = vst.msk [vmem:[#allocation2] sm:$0xff] %vm1520_vm6, %v1437_v45 }
 0x233   : > { %1454 = vrot.lane.b32.xlu0 %v2288_v51, %s2433_s6  ;;  %1486 = vrot.lane.b32.xlu1 %v2304_v39, %s2433_s6  ;;  %v2327_v51 = vld [vmem:[%s2487_s22 + $0x121] sm:$0xff] }
 0x234   : > { %1647 = vrot.lane.b32.xlu2 %v2316_v40, %s2434_s7  ;;  %v2355_v40 = vld [vmem:[%s2487_s22 + $0x122] sm:$0xff] }
 0x235   : > { %v1441_v3 = vpop.permute.xlu0 %1440  ;;  %v1443_v1 = vpop.permute.xlu1 %1442 }
 0x236   : > { %1523 = vst.msk [vmem:[#allocation2 + $0x10] sm:$0xff] %vm1520_vm6, %v1441_v3  ;;  %v1950_v43 = vpop.permute.xlu2 %1949 }
 0x237   : > { %1524 = vst.msk [vmem:[#allocation2 + $0x18] sm:$0xff] %vm1520_vm6, %v1443_v1  ;;  %v2298_v1 = vld [vmem:[%s2487_s22 + $0x110] sm:$0xff] }
 0x23b   : > { %1679 = vrot.lane.b32.xlu0 %v2332_v4, %s2434_s7  ;;  %1840 = vrot.lane.b32.xlu1 %v2344_v2, %s2435_s8 }
 0x23c   : > { %1872 = vrot.lane.b32.xlu2 %v2360_v5, %s2435_s8 }
 0x23d   : > { %v1447_v6 = vpop.permute.xlu0 %1446  ;;  %v1449_v7 = vpop.permute.xlu1 %1448 }
 0x23e   : > { %1526 = vst.msk [vmem:[#allocation2 + $0x28] sm:$0xff] %vm1520_vm6, %v1447_v6  ;;  %v1658_v10 = vpop.permute.xlu2 %1657  ;;  %v2310_v6 = vld [vmem:[%s2487_s22 + $0x51] sm:$0xff] }
 0x23f   : > { %1527 = vst.msk [vmem:[#allocation2 + $0x30] sm:$0xff] %vm1520_vm6, %v1449_v7 }
 0x243   : > { %1452 = vrot.lane.b32.xlu0 %v2287_v8, %s2433_s6  ;;  %1484 = vrot.lane.b32.xlu1 %v2303_v9, %s2433_s6  ;;  %v2338_v8 = vld [vmem:[%s2487_s22 + $0x52] sm:$0xff] }
 0x244   : > { %1645 = vrot.lane.b32.xlu2 %v2315_v11, %s2434_s7  ;;  %v2354_v11 = vld [vmem:[%s2487_s22 + $0x112] sm:$0xff] }
 0x245   : > { %v1467_v12 = vpop.permute.xlu0 %1466  ;;  %v1564_v13 = vpop.permute.xlu1 %1563 }
 0x246   : > { %1536 = vst.msk [vmem:[#allocation2 + $0x78] sm:$0xff] %vm1520_vm6, %v1467_v12  ;;  %v1948_v15 = vpop.permute.xlu2 %1947  ;;  %v2297_v12 = vld [vmem:[%s2487_s22 + $0x108] sm:$0xff] }
 0x247   : > { %1572 = vst.msk [vmem:[#allocation2 + $0xf8] sm:$0xff] %vm1520_vm6, %v1564_v13 }
 0x248   : > { %1729 = vst.msk [vmem:[#allocation2 + $0x78] sm:$0xff] %vm1713_vm7, %v1660_v35 }
 0x24b   : > { %1677 = vrot.lane.b32.xlu0 %v2331_v14, %s2434_s7  ;;  %1838 = vrot.lane.b32.xlu1 %v2343_v58, %s2435_s8  ;;  %v2309_v14 = vld [vmem:[%s2487_s22 + $0x49] sm:$0xff] }
 0x24c   : > { %1870 = vrot.lane.b32.xlu2 %v2359_v16, %s2435_s8 }
 0x24d   : > { %v1757_v17 = vpop.permute.xlu0 %1756  ;;  %v1853_v18 = vpop.permute.xlu1 %1852 }
 0x24e   : > { %1765 = vst.msk [vmem:[#allocation2 + $0xf8] sm:$0xff] %vm1713_vm7, %v1757_v17  ;;  %v1656_v21 = vpop.permute.xlu2 %1655 }
 0x24f   : > { %1922 = vst.msk [vmem:[#allocation2 + $0x78] sm:$0xff] %vm1906_vm8, %v1853_v18  ;;  %v2325_v18 = vld [vmem:[%s2487_s22 + $0x109] sm:$0xff] }
 0x250   : > { %1958 = vst.msk [vmem:[#allocation2 + $0xf8] sm:$0xff] %vm1906_vm8, %v1950_v43 }
 0x253   : > { %1482 = vrot.lane.b32.xlu0 %v2302_v19, %s2433_s6  ;;  %1643 = vrot.lane.b32.xlu1 %v2314_v20, %s2434_s7  ;;  %v2337_v19 = vld [vmem:[%s2487_s22 + $0x4a] sm:$0xff] }
 0x254   : > { %1675 = vrot.lane.b32.xlu2 %v2330_v22, %s2434_s7 }
 0x255   : > { %v1465_v23 = vpop.permute.xlu0 %1464  ;;  %v1562_v36 = vpop.permute.xlu1 %1561 }
 0x256   : > { %1535 = vst.msk [vmem:[#allocation2 + $0x70] sm:$0xff] %vm1520_vm6, %v1465_v23  ;;  %v1975_v24 = vld [vmem:[#allocation2 + $0x78] sm:$0xff]  ;;  %v1946_v27 = vpop.permute.xlu2 %1945 }
 0x257   : > { %1571 = vst.msk [vmem:[#allocation2 + $0xf0] sm:$0xff] %vm1520_vm6, %v1562_v36  ;;  %1992 = vmatpush.xpose.msra.mxu0 %v1975_v24  ;;  %v1991_v25 = vld [vmem:[#allocation2 + $0xf8] sm:$0xff] }
 0x258   : > { %1728 = vst.msk [vmem:[#allocation2 + $0x70] sm:$0xff] %vm1713_vm7, %v1658_v10  ;;  %2012 = vmatpush.xpose.msra.mxu1 %v1991_v25  ;;  %v2296_v36 = vld [vmem:[%s2487_s22 + $0xf8] sm:$0xff] }
 0x259   : > { %v2308_v24 = vld [vmem:[%s2487_s22 + $0x39] sm:$0xff] }
 0x25b   : > { %1836 = vrot.lane.b32.xlu0 %v2342_v26, %s2435_s8  ;;  %1868 = vrot.lane.b32.xlu1 %v2358_v38, %s2435_s8  ;;  %v2324_v26 = vld [vmem:[%s2487_s22 + $0xf9] sm:$0xff] }
 0x25c   : > { %1480 = vrot.lane.b32.xlu2 %v2301_v41, %s2433_s6 }
 0x25d   : > { %v1755_v29 = vpop.permute.xlu0 %1754  ;;  %v1851_v30 = vpop.permute.xlu1 %1850 }
 0x25e   : > { %1764 = vst.msk [vmem:[#allocation2 + $0xf0] sm:$0xff] %vm1713_vm7, %v1755_v29  ;;  %v1654_v52 = vpop.permute.xlu2 %1653 }
 0x25f   : > { %1921 = vst.msk [vmem:[#allocation2 + $0x70] sm:$0xff] %vm1906_vm8, %v1851_v30  ;;  %v2336_v30 = vld [vmem:[%s2487_s22 + $0x3a] sm:$0xff] }
 0x260   : > { %1957 = vst.msk [vmem:[#allocation2 + $0xf0] sm:$0xff] %vm1906_vm8, %v1948_v15 }
 0x263   : > { %1641 = vrot.lane.b32.xlu0 %v2313_v50, %s2434_s7  ;;  %1673 = vrot.lane.b32.xlu1 %v2329_v31, %s2434_s7  ;;  %v2352_v50 = vld [vmem:[%s2487_s22 + $0xfa] sm:$0xff] }
 0x264   : > { %1834 = vrot.lane.b32.xlu2 %v2341_v48, %s2435_s8 }
 0x265   : > { %v1463_v28 = vpop.permute.xlu0 %1462  ;;  %v1560_v62 = vpop.permute.xlu1 %1559 }
 0x266   : > { %1534 = vst.msk [vmem:[#allocation2 + $0x68] sm:$0xff] %vm1520_vm6, %v1463_v28  ;;  %v1974_v44 = vld [vmem:[#allocation2 + $0x70] sm:$0xff]  ;;  %v1944_v37 = vpop.permute.xlu2 %1943 }
 0x267   : > { %1570 = vst.msk [vmem:[#allocation2 + $0xe8] sm:$0xff] %vm1520_vm6, %v1560_v62  ;;  %1993 = vmatpush.xpose.msra.mxu0 %v1974_v44  ;;  %v1990_v32 = vld [vmem:[#allocation2 + $0xf0] sm:$0xff] }
 0x268   : > { %1727 = vst.msk [vmem:[#allocation2 + $0x68] sm:$0xff] %vm1713_vm7, %v1656_v21  ;;  %2013 = vmatpush.xpose.msra.mxu1 %v1990_v32  ;;  %v2353_v21 = vld [vmem:[%s2487_s22 + $0x10a] sm:$0xff] }
 0x269   : > { %v2307_v62 = vld [vmem:[%s2487_s22 + $0x31] sm:$0xff] }
 0x26a   : > { %v2323_v44 = vld [vmem:[%s2487_s22 + $0xf1] sm:$0xff] }
 0x26b   : > { %1866 = vrot.lane.b32.xlu0 %v2357_v61, %s2435_s8  ;;  %1478 = vrot.lane.b32.xlu1 %v2300_v54, %s2433_s6  ;;  %v2335_v61 = vld [vmem:[%s2487_s22 + $0x32] sm:$0xff] }
 0x26c   : > { %1639 = vrot.lane.b32.xlu2 %v2312_v49, %s2434_s7 }
 0x26d   : > { %v1753_v57 = vpop.permute.xlu0 %1752  ;;  %v1849_v33 = vpop.permute.xlu1 %1848 }
 0x26e   : > { %1763 = vst.msk [vmem:[#allocation2 + $0xe8] sm:$0xff] %vm1713_vm7, %v1753_v57  ;;  %v1652_v42 = vpop.permute.xlu2 %1651 }
 0x26f   : > { %1920 = vst.msk [vmem:[#allocation2 + $0x68] sm:$0xff] %vm1906_vm8, %v1849_v33  ;;  %v2351_v33 = vld [vmem:[%s2487_s22 + $0xf2] sm:$0xff] }
 0x270   : > { %1956 = vst.msk [vmem:[#allocation2 + $0xe8] sm:$0xff] %vm1906_vm8, %v1946_v27 }
 0x273   : > { %1671 = vrot.lane.b32.xlu0 %v2328_v46, %s2434_s7  ;;  %1832 = vrot.lane.b32.xlu1 %v2340_v55, %s2435_s8 }
 0x274   : > { %1864 = vrot.lane.b32.xlu2 %v2356_v56, %s2435_s8 }
 0x275   : > { %v1461_v60 = vpop.permute.xlu0 %1460  ;;  %v1558_v34 = vpop.permute.xlu1 %1557 }
 0x276   : > { %1533 = vst.msk [vmem:[#allocation2 + $0x60] sm:$0xff] %vm1520_vm6, %v1461_v60  ;;  %v1973_v53 = vld [vmem:[#allocation2 + $0x68] sm:$0xff]  ;;  %v1877_v45 = vpop.permute.xlu2 %1876 }
 0x277   : > { %1569 = vst.msk [vmem:[#allocation2 + $0xe0] sm:$0xff] %vm1520_vm6, %v1558_v34  ;;  %1994 = vmatpush.xpose.msra.mxu0 %v1973_v53  ;;  %v1989_v59 = vld [vmem:[#allocation2 + $0xe8] sm:$0xff] }
 0x278   : > { %1726 = vst.msk [vmem:[#allocation2 + $0x60] sm:$0xff] %vm1713_vm7, %v1654_v52  ;;  %2014 = vmatpush.xpose.msra.mxu1 %v1989_v59  ;;  %v2295_v52 = vld [vmem:[%s2487_s22 + $0xf0] sm:$0xff] }
 0x27b   : > { %1476 = vrot.lane.b32.xlu0 %v2299_v63, %s2433_s6  ;;  %1637 = vrot.lane.b32.xlu1 %v2311_v0, %s2434_s7 }
 0x27c   : > { %1669 = vrot.lane.b32.xlu2 %v2327_v51, %s2434_s7 }
 0x27d   : > { %v1751_v39 = vpop.permute.xlu0 %1750  ;;  %v1847_v35 = vpop.permute.xlu1 %1846 }
 0x27e   : > { %1762 = vst.msk [vmem:[#allocation2 + $0xe0] sm:$0xff] %vm1713_vm7, %v1751_v39  ;;  %v1650_v3 = vpop.permute.xlu2 %1649 }
 0x27f   : > { %1919 = vst.msk [vmem:[#allocation2 + $0x60] sm:$0xff] %vm1906_vm8, %v1847_v35 }
 0x280   : > { %1955 = vst.msk [vmem:[#allocation2 + $0xe0] sm:$0xff] %vm1906_vm8, %v1944_v37 }
 0x283   : > { %1830 = vrot.lane.b32.xlu0 %v3233_v47, %s2435_s8  ;;  %1862 = vrot.lane.b32.xlu1 %v2355_v40, %s2435_s8  ;;  %v2326_v47 = vld [vmem:[%s2487_s22 + $0x111] sm:$0xff] }
 0x284   : > { %1474 = vrot.lane.b32.xlu2 %v2298_v1, %s2433_s6 }
 0x285   : > { %v1459_v4 = vpop.permute.xlu0 %1458  ;;  %v1491_v2 = vpop.permute.xlu1 %1490 }
 0x286   : > { %1532 = vst.msk [vmem:[#allocation2 + $0x58] sm:$0xff] %vm1520_vm6, %v1459_v4  ;;  %v1972_v43 = vld [vmem:[#allocation2 + $0x60] sm:$0xff]  ;;  %v1875_v7 = vpop.permute.xlu2 %1874 }
 0x287   : > { %1548 = vst.msk [vmem:[#allocation2 + $0xd8] sm:$0xff] %vm1520_vm6, %v1491_v2  ;;  %1995 = vmatpush.xpose.msra.mxu0 %v1972_v43  ;;  %v1988_v5 = vld [vmem:[#allocation2 + $0xe0] sm:$0xff] }
 0x288   : > { %1725 = vst.msk [vmem:[#allocation2 + $0x58] sm:$0xff] %vm1713_vm7, %v1652_v42  ;;  %2015 = vmatpush.xpose.msra.mxu1 %v1988_v5 }
 0x28b   : > { %1635 = vrot.lane.b32.xlu0 %v2310_v6, %s2434_s7  ;;  %1667 = vrot.lane.b32.xlu1 %v2326_v47, %s2434_s7 }
 0x28c   : > { %1828 = vrot.lane.b32.xlu2 %v2338_v8, %s2435_s8 }
 0x28d   : > { %v1684_v9 = vpop.permute.xlu0 %1683  ;;  %v1845_v10 = vpop.permute.xlu1 %1844 }
 0x28e   : > { %1741 = vst.msk [vmem:[#allocation2 + $0xd8] sm:$0xff] %vm1713_vm7, %v1684_v9  ;;  %v1648_v13 = vpop.permute.xlu2 %1647 }
 0x28f   : > { %1918 = vst.msk [vmem:[#allocation2 + $0x58] sm:$0xff] %vm1906_vm8, %v1845_v10 }
 0x290   : > { %1934 = vst.msk [vmem:[#allocation2 + $0xd8] sm:$0xff] %vm1906_vm8, %v1877_v45 }
 0x293   : > { %1860 = vrot.lane.b32.xlu0 %v2354_v11, %s2435_s8  ;;  %1472 = vrot.lane.b32.xlu1 %v2297_v12, %s2433_s6 }
 0x294   : > { %1633 = vrot.lane.b32.xlu2 %v2309_v14, %s2434_s7 }
 0x295   : > { %v1457_v58 = vpop.permute.xlu0 %1456  ;;  %v1489_v15 = vpop.permute.xlu1 %1488 }
 0x296   : > { %1531 = vst.msk [vmem:[#allocation2 + $0x50] sm:$0xff] %vm1520_vm6, %v1457_v58  ;;  %v1971_v16 = vld [vmem:[#allocation2 + $0x58] sm:$0xff]  ;;  %v1873_v20 = vpop.permute.xlu2 %1872 }
 0x297   : > { %1547 = vst.msk [vmem:[#allocation2 + $0xd0] sm:$0xff] %vm1520_vm6, %v1489_v15  ;;  %1996 = vmatpush.xpose.msra.mxu0 %v1971_v16  ;;  %v1987_v17 = vld [vmem:[#allocation2 + $0xd8] sm:$0xff] }
 0x298   : > { %1724 = vst.msk [vmem:[#allocation2 + $0x50] sm:$0xff] %vm1713_vm7, %v1650_v3  ;;  %2016 = vmatpush.xpose.msra.mxu1 %v1987_v17 }
 0x29b   : > { %1665 = vrot.lane.b32.xlu0 %v2325_v18, %s2434_s7  ;;  %1826 = vrot.lane.b32.xlu1 %v2337_v19, %s2435_s8 }
 0x29c   : > { %1858 = vrot.lane.b32.xlu2 %v2353_v21, %s2435_s8 }
 0x29d   : > { %v1682_v22 = vpop.permute.xlu0 %1681  ;;  %v1843_v23 = vpop.permute.xlu1 %1842 }
 0x29e   : > { %1740 = vst.msk [vmem:[#allocation2 + $0xd0] sm:$0xff] %vm1713_vm7, %v1682_v22  ;;  %v1646_v25 = vpop.permute.xlu2 %1645 }
 0x29f   : > { %1917 = vst.msk [vmem:[#allocation2 + $0x50] sm:$0xff] %vm1906_vm8, %v1843_v23 }
 0x2a0   : > { %1933 = vst.msk [vmem:[#allocation2 + $0xd0] sm:$0xff] %vm1906_vm8, %v1875_v7 }
 0x2a3   : > { %1470 = vrot.lane.b32.xlu0 %v2296_v36, %s2433_s6  ;;  %1631 = vrot.lane.b32.xlu1 %v2308_v24, %s2434_s7 }
 0x2a4   : > { %1663 = vrot.lane.b32.xlu2 %v2324_v26, %s2434_s7 }
 0x2a5   : > { %v1455_v38 = vpop.permute.xlu0 %1454  ;;  %v1487_v27 = vpop.permute.xlu1 %1486 }
 0x2a6   : > { %1530 = vst.msk [vmem:[#allocation2 + $0x48] sm:$0xff] %vm1520_vm6, %v1455_v38  ;;  %v1970_v41 = vld [vmem:[#allocation2 + $0x50] sm:$0xff]  ;;  %v1871_v31 = vpop.permute.xlu2 %1870 }
 0x2a7   : > { %1546 = vst.msk [vmem:[#allocation2 + $0xc8] sm:$0xff] %vm1520_vm6, %v1487_v27  ;;  %1997 = vmatpush.xpose.msra.mxu0 %v1970_v41  ;;  %v1986_v29 = vld [vmem:[#allocation2 + $0xd0] sm:$0xff] }
 0x2a8   : > { %1723 = vst.msk [vmem:[#allocation2 + $0x48] sm:$0xff] %vm1713_vm7, %v1648_v13  ;;  %2017 = vmatpush.xpose.msra.mxu1 %v1986_v29 }
 0x2ab   : > { %1824 = vrot.lane.b32.xlu0 %v2336_v30, %s2435_s8  ;;  %1856 = vrot.lane.b32.xlu1 %v2352_v50, %s2435_s8 }
 0x2ac   : > { %1468 = vrot.lane.b32.xlu2 %v2295_v52, %s2433_s6 }
 0x2ad   : > { %v1680_v48 = vpop.permute.xlu0 %1679  ;;  %v1841_v28 = vpop.permute.xlu1 %1840 }
 0x2ae   : > { %1739 = vst.msk [vmem:[#allocation2 + $0xc8] sm:$0xff] %vm1713_vm7, %v1680_v48  ;;  %v1676_v32 = vpop.permute.xlu2 %1675 }
 0x2af   : > { %1916 = vst.msk [vmem:[#allocation2 + $0x48] sm:$0xff] %vm1906_vm8, %v1841_v28 }
 0x2b0   : > { %1932 = vst.msk [vmem:[#allocation2 + $0xc8] sm:$0xff] %vm1906_vm8, %v1873_v20 }
 0x2b3   : > { %1629 = vrot.lane.b32.xlu0 %v2307_v62, %s2434_s7  ;;  %1661 = vrot.lane.b32.xlu1 %v2323_v44, %s2434_s7 }
 0x2b4   : > { %1822 = vrot.lane.b32.xlu2 %v2335_v61, %s2435_s8  ;;  %v1959_v61 = vld [vmem:[%s3669_s2] sm:$0xff] }
 0x2b5   : > { %v1453_v54 = vpop.permute.xlu0 %1452  ;;  %v1485_v37 = vpop.permute.xlu1 %1484 }
 0x2b6   : > { %1529 = vst.msk [vmem:[#allocation2 + $0x40] sm:$0xff] %vm1520_vm6, %v1453_v54  ;;  %v1969_v49 = vld [vmem:[#allocation2 + $0x48] sm:$0xff]  ;;  %v1481_v46 = vpop.permute.xlu2 %1480 }
 0x2b7   : > { %1545 = vst.msk [vmem:[#allocation2 + $0xc0] sm:$0xff] %vm1520_vm6, %v1485_v37  ;;  %1998 = vmatpush.xpose.msra.mxu0 %v1969_v49  ;;  %v1985_v57 = vld [vmem:[#allocation2 + $0xc8] sm:$0xff] }
 0x2b8   : > { %1722 = vst.msk [vmem:[#allocation2 + $0x40] sm:$0xff] %vm1713_vm7, %v1646_v25  ;;  %2018 = vmatpush.xpose.msra.mxu1 %v1985_v57 }
 0x2b9   : > { %1543 = vst.msk [vmem:[#allocation2 + $0xb0] sm:$0xff] %vm1520_vm6, %v1481_v46 }
 0x2bb   : > { %1854 = vrot.lane.b32.xlu0 %v2351_v33, %s2435_s8 }
 0x2bd   : > { %v1678_v55 = vpop.permute.xlu0 %1677  ;;  %v1839_v42 = vpop.permute.xlu1 %1838 }
 0x2be   : > { %1738 = vst.msk [vmem:[#allocation2 + $0xc0] sm:$0xff] %vm1713_vm7, %v1678_v55  ;;  %v1835_v56 = vpop.permute.xlu2 %1834 }
 0x2bf   : > { %1915 = vst.msk [vmem:[#allocation2 + $0x40] sm:$0xff] %vm1906_vm8, %v1839_v42 }
 0x2c0   : > { %1931 = vst.msk [vmem:[#allocation2 + $0xc0] sm:$0xff] %vm1906_vm8, %v1871_v31 }
 0x2c5   : > { %v1483_v60 = vpop.permute.xlu0 %1482  ;;  %v1644_v34 = vpop.permute.xlu1 %1643 }
 0x2c6   : > { %1544 = vst.msk [vmem:[#allocation2 + $0xb8] sm:$0xff] %vm1520_vm6, %v1483_v60  ;;  %v1968_v53 = vld [vmem:[#allocation2 + $0x40] sm:$0xff]  ;;  %v1640_v63 = vpop.permute.xlu2 %1639 }
 0x2c7   : > { %1721 = vst.msk [vmem:[#allocation2 + $0x38] sm:$0xff] %vm1713_vm7, %v1644_v34  ;;  %1999 = vmatpush.xpose.msra.mxu0 %v1968_v53  ;;  %v1984_v59 = vld [vmem:[#allocation2 + $0xc0] sm:$0xff] }
 0x2c8   : > { %1737 = vst.msk [vmem:[#allocation2 + $0xb8] sm:$0xff] %vm1713_vm7, %v1676_v32  ;;  %2019 = vmatpush.xpose.msra.mxu1 %v1984_v59 }
 0x2c9   : > { %1719 = vst.msk [vmem:[#allocation2 + $0x28] sm:$0xff] %vm1713_vm7, %v1640_v63 }
 0x2cd   : > { %v1837_v0 = vpop.permute.xlu0 %1836  ;;  %v1869_v45 = vpop.permute.xlu1 %1868 }
 0x2ce   : > { %1914 = vst.msk [vmem:[#allocation2 + $0x38] sm:$0xff] %vm1906_vm8, %v1837_v0  ;;  %v1865_v51 = vpop.permute.xlu2 %1864 }
 0x2cf   : > { %1930 = vst.msk [vmem:[#allocation2 + $0xb8] sm:$0xff] %vm1906_vm8, %v1869_v45 }
 0x2d5   : > { %v1642_v39 = vpop.permute.xlu0 %1641  ;;  %v1967_v35 = vld [vmem:[#allocation2 + $0x38] sm:$0xff]  ;;  %v1674_v40 = vpop.permute.xlu1 %1673 }
 0x2d6   : > { %1720 = vst.msk [vmem:[#allocation2 + $0x30] sm:$0xff] %vm1713_vm7, %v1642_v39  ;;  %2000 = vmatpush.xpose.msra.mxu0 %v1967_v35  ;;  %v1983_v3 = vld [vmem:[#allocation2 + $0xb8] sm:$0xff]  ;;  %v1670_v1 = vpop.permute.xlu2 %1669 }
 0x2d7   : > { %1736 = vst.msk [vmem:[#allocation2 + $0xb0] sm:$0xff] %vm1713_vm7, %v1674_v40  ;;  %2020 = vmatpush.xpose.msra.mxu1 %v1983_v3 }
 0x2d8   : > { %1913 = vst.msk [vmem:[#allocation2 + $0x30] sm:$0xff] %vm1906_vm8, %v1835_v56 }
 0x2dd   : > { %v1867_v4 = vpop.permute.xlu0 %1866  ;;  %v1479_v2 = vpop.permute.xlu1 %1478 }
 0x2de   : > { %1929 = vst.msk [vmem:[#allocation2 + $0xb0] sm:$0xff] %vm1906_vm8, %v1867_v4  ;;  %v1475_v5 = vpop.permute.xlu2 %1474 }
 0x2df   : > { %1542 = vst.msk [vmem:[#allocation2 + $0xa8] sm:$0xff] %vm1520_vm6, %v1479_v2  ;;  %v1966_v43 = vld [vmem:[#allocation2 + $0x30] sm:$0xff] }
 0x2e0   : > { %2001 = vmatpush.xpose.msra.mxu0 %v1966_v43  ;;  %1540 = vst.msk [vmem:[#allocation2 + $0x98] sm:$0xff] %vm1520_vm6, %v1475_v5 }
 0x2e5   : > { %v1672_v6 = vpop.permute.xlu0 %1671  ;;  %v1982_v47 = vld [vmem:[#allocation2 + $0xb0] sm:$0xff]  ;;  %v1833_v7 = vpop.permute.xlu1 %1832 }
 0x2e6   : > { %1735 = vst.msk [vmem:[#allocation2 + $0xa8] sm:$0xff] %vm1713_vm7, %v1672_v6  ;;  %2021 = vmatpush.xpose.msra.mxu1 %v1982_v47  ;;  %v1829_v8 = vpop.permute.xlu2 %1828 }
 0x2e7   : > { %1912 = vst.msk [vmem:[#allocation2 + $0x28] sm:$0xff] %vm1906_vm8, %v1833_v7 }
 0x2e8   : > { %1928 = vst.msk [vmem:[#allocation2 + $0xa8] sm:$0xff] %vm1906_vm8, %v1865_v51 }
 0x2ed   : > { %v1477_v9 = vpop.permute.xlu0 %1476  ;;  %v1638_v10 = vpop.permute.xlu1 %1637 }
 0x2ee   : > { %1541 = vst.msk [vmem:[#allocation2 + $0xa0] sm:$0xff] %vm1520_vm6, %v1477_v9  ;;  %v1965_v11 = vld [vmem:[#allocation2 + $0x28] sm:$0xff]  ;;  %v1634_v13 = vpop.permute.xlu2 %1633 }
 0x2ef   : > { %1718 = vst.msk [vmem:[#allocation2 + $0x20] sm:$0xff] %vm1713_vm7, %v1638_v10  ;;  %2002 = vmatpush.xpose.msra.mxu0 %v1965_v11  ;;  %v1981_v12 = vld [vmem:[#allocation2 + $0xa8] sm:$0xff] }
 0x2f0   : > { %1734 = vst.msk [vmem:[#allocation2 + $0xa0] sm:$0xff] %vm1713_vm7, %v1670_v1  ;;  %2022 = vmatpush.xpose.msra.mxu1 %v1981_v12 }
 0x2f1   : > { %1716 = vst.msk [vmem:[#allocation2 + $0x10] sm:$0xff] %vm1713_vm7, %v1634_v13 }
 0x2f5   : > { %v1831_v14 = vpop.permute.xlu0 %1830  ;;  %v1863_v58 = vpop.permute.xlu1 %1862 }
 0x2f6   : > { %1911 = vst.msk [vmem:[#allocation2 + $0x20] sm:$0xff] %vm1906_vm8, %v1831_v14  ;;  %v1859_v15 = vpop.permute.xlu2 %1858 }
 0x2f7   : > { %1927 = vst.msk [vmem:[#allocation2 + $0xa0] sm:$0xff] %vm1906_vm8, %v1863_v58 }
 0x2fd   : > { %v1636_v16 = vpop.permute.xlu0 %1635  ;;  %v1964_v17 = vld [vmem:[#allocation2 + $0x20] sm:$0xff]  ;;  %v1668_v18 = vpop.permute.xlu1 %1667 }
 0x2fe   : > { %1717 = vst.msk [vmem:[#allocation2 + $0x18] sm:$0xff] %vm1713_vm7, %v1636_v16  ;;  %2003 = vmatpush.xpose.msra.mxu0 %v1964_v17  ;;  %v1980_v19 = vld [vmem:[#allocation2 + $0xa0] sm:$0xff]  ;;  %v1664_v20 = vpop.permute.xlu2 %1663 }
 0x2ff   : > { %1733 = vst.msk [vmem:[#allocation2 + $0x98] sm:$0xff] %vm1713_vm7, %v1668_v18  ;;  %2023 = vmatpush.xpose.msra.mxu1 %v1980_v19 }
 0x300   : > { %1910 = vst.msk [vmem:[#allocation2 + $0x18] sm:$0xff] %vm1906_vm8, %v1829_v8 }
 0x305   : > { %v1861_v21 = vpop.permute.xlu0 %1860  ;;  %v1473_v22 = vpop.permute.xlu1 %1472 }
 0x306   : > { %1926 = vst.msk [vmem:[#allocation2 + $0x98] sm:$0xff] %vm1906_vm8, %v1861_v21  ;;  %v1469_v36 = vpop.permute.xlu2 %1468 }
 0x307   : > { %1539 = vst.msk [vmem:[#allocation2 + $0x90] sm:$0xff] %vm1520_vm6, %v1473_v22  ;;  %v1963_v23 = vld [vmem:[#allocation2 + $0x18] sm:$0xff] }
 0x308   : > { %2004 = vmatpush.xpose.msra.mxu0 %v1963_v23  ;;  %1537 = vst.msk [vmem:[#allocation2 + $0x80] sm:$0xff] %vm1520_vm6, %v1469_v36 }
 0x30d   : > { %v1666_v24 = vpop.permute.xlu0 %1665  ;;  %v1979_v25 = vld [vmem:[#allocation2 + $0x98] sm:$0xff]  ;;  %v1827_v26 = vpop.permute.xlu1 %1826 }
 0x30e   : > { %1732 = vst.msk [vmem:[#allocation2 + $0x90] sm:$0xff] %vm1713_vm7, %v1666_v24  ;;  %2024 = vmatpush.xpose.msra.mxu1 %v1979_v25  ;;  %v1823_v31 = vpop.permute.xlu2 %1822 }
 0x30f   : > { %1909 = vst.msk [vmem:[#allocation2 + $0x10] sm:$0xff] %vm1906_vm8, %v1827_v26 }
 0x310   : > { %1925 = vst.msk [vmem:[#allocation2 + $0x90] sm:$0xff] %vm1906_vm8, %v1859_v15 }
 0x315   : > { %v1471_v38 = vpop.permute.xlu0 %1470  ;;  %v1632_v27 = vpop.permute.xlu1 %1631 }
 0x316   : > { %1538 = vst.msk [vmem:[#allocation2 + $0x88] sm:$0xff] %vm1520_vm6, %v1471_v38  ;;  %v1962_v41 = vld [vmem:[#allocation2 + $0x10] sm:$0xff] }
 0x317   : > { %1715 = vst.msk [vmem:[#allocation2 + $0x8] sm:$0xff] %vm1713_vm7, %v1632_v27  ;;  %2005 = vmatpush.xpose.msra.mxu0 %v1962_v41  ;;  %v1978_v29 = vld [vmem:[#allocation2 + $0x90] sm:$0xff] }
 0x318   : > { %1731 = vst.msk [vmem:[#allocation2 + $0x88] sm:$0xff] %vm1713_vm7, %v1664_v20  ;;  %2025 = vmatpush.xpose.msra.mxu1 %v1978_v29 }
 0x31d   : > { %v1825_v30 = vpop.permute.xlu0 %1824  ;;  %v1857_v50 = vpop.permute.xlu1 %1856 }
 0x31e   : > { %1908 = vst.msk [vmem:[#allocation2 + $0x8] sm:$0xff] %vm1906_vm8, %v1825_v30 }
 0x31f   : > { %1924 = vst.msk [vmem:[#allocation2 + $0x88] sm:$0xff] %vm1906_vm8, %v1857_v50 }
 0x325   : > { %v1630_v52 = vpop.permute.xlu0 %1629  ;;  %v1961_v48 = vld [vmem:[#allocation2 + $0x8] sm:$0xff]  ;;  %v1662_v28 = vpop.permute.xlu1 %1661 }
 0x326   : > { %1714 = vst.msk [vmem:[#allocation2] sm:$0xff] %vm1713_vm7, %v1630_v52  ;;  %2006 = vmatpush.xpose.msra.mxu0 %v1961_v48  ;;  %v1977_v62 = vld [vmem:[#allocation2 + $0x88] sm:$0xff] }
 0x327   : > { %1730 = vst.msk [vmem:[#allocation2 + $0x80] sm:$0xff] %vm1713_vm7, %v1662_v28  ;;  %2026 = vmatpush.xpose.msra.mxu1 %v1977_v62 }
 0x328   : > { %1907 = vst.msk [vmem:[#allocation2] sm:$0xff] %vm1906_vm8, %v1823_v31 }
 0x32d   : > { %v1855_v44 = vpop.permute.xlu0 %1854 }
 0x32e   : > { %1923 = vst.msk [vmem:[#allocation2 + $0x80] sm:$0xff] %vm1906_vm8, %v1855_v44 }
 0x32f   : > { %v1960_v32 = vld [vmem:[#allocation2] sm:$0xff] }
 0x330   : > { %2007 = vmatpush.xpose.msra.mxu0 %v1960_v32 }
 0x333   : > { %2008 = vmatmul.f32.vlgmr.msra.gmra.mxu0 %v1959_v61 }
 0x335   : > { %v1976_v54 = vld [vmem:[#allocation2 + $0x80] sm:$0xff] }
 0x336   : > { %2027 = vmatpush.xpose.msra.mxu1 %v1976_v54 }
 0x339   : > { %2028 = vmatmul.f32.vlgmr.msra.gmra.mxu1 %v1959_v61 }
 0x3b0   : > { %v2009_v37 = vpop.f32.mrf.mxu0 }
 0x3b1   : > { %v2035_v49 = vmul.f32 %v2009_v37, %v2009_v37 }
 0x3b6   : > { %v2029_v57 = vpop.f32.mrf.mxu1 }
 0x3b7   : > { %v2032_v33 = vadd.f32 %v2029_v57, %v2009_v37  ;;  %v2036_v46 = vmul.f32 %v2029_v57, %v2029_v57 }
 0x3b9   : > { %v2037_v55 = vadd.f32 %v2036_v46, %v2035_v49  ;;  %2033 = vadd.xlane.f32.xlu1 %v2032_v33 }
 0x3bb   : > { %2038 = vadd.xlane.f32.xlu2 %v2037_v55 }
 0x42c   : > { %v2034_v42 = vpop.xlane.xlu1 %2033 }
 0x42d   : > { %2045 = vst.msk [vmem:[%s311_s14] sm:$0xff] %vm2044_vm9, %v2034_v42 }
 0x42e   : > { %v2039_v56 = vpop.xlane.xlu2 %2038 }
 0x42f   : > { %2046 = vst.msk [vmem:[%s315_s21] sm:$0xff] %vm2044_vm9, %v2039_v56 }
 0x430 PF: > { %s15_s17 = sadd.s32 1, %s2425_s17   ;;  %s3759_s15 = smov %s2421_s16 }
 0x431   : > { %p12_p5 = scmp.ge.s32.totalorder %s15_s17, 4   ;;  %s3760_s16 = smov %s3762_s18 }
 0x433   :  { %14 = sbr.rel (!%p12_p5) target bundleno = 2 (0x2), region = 87 }

</bundles_post_ra>
